<compile_context>
chip_gen: v7x
topology: tpu7x:2x2x1
jax: 0.10.0
libtpu: 0.0.40
codegen_flags: <defaults>
</compile_context>

<pallas_src>
import functools
import math

import jax
import jax.numpy as jnp
import numpy as np
from jax import lax
from jax.experimental import pallas as pl
from jax.experimental.pallas import tpu as pltpu

NUM_HEADS = 8


def _gelu_tanh(x):
    # tanh-approximate GELU (same form as jax.nn.gelu(approximate=True)); jnp.tanh
    # lowers to the EUP slot, keeping the nonlinearity off the VALU.
    c = jnp.float32(math.sqrt(2.0 / math.pi))
    return 0.5 * x * (1.0 + jnp.tanh(c * (x + jnp.float32(0.044715) * (x * x * x))))


def emergence_core_kernel(
    x_ref,
    wqkv_ref, bqkv_ref, wo_ref, bo_ref,
    w1_ref, b1_ref, w2_ref, b2_ref, w3_ref, b3_ref,
    o_ref,
    q_sc, k_sc, v_sc,
    *, block_rows,
):
    S, D = x_ref.shape
    hd = D // NUM_HEADS
    cd = wqkv_ref.dtype                              # matmul operand dtype (bf16)
    scale = jnp.float32(1.0 / math.sqrt(hd))

    # --- fused q/k/v projection: one (S,D)x(D,3D) MXU matmul, f32 accumulation ----
    xc = x_ref[...].astype(cd)
    qkv = jnp.dot(xc, wqkv_ref[...], preferred_element_type=jnp.float32) + bqkv_ref[...]
    # 1/sqrt(hd) folded into q (S*D muls instead of S*S per head); stage q/k/v as
    # bf16 in VMEM scratch so the row loop below reads cheap ref slices.
    q_sc[...] = (qkv[:, :D] * scale).astype(cd)
    k_sc[...] = qkv[:, D:2 * D].astype(cd)
    v_sc[...] = qkv[:, 2 * D:].astype(cd)

    def process_rows(r0, rows):
        # --- attention for one q row block: (rows, S) scores, never (S, S) --------
        q_blk = q_sc[pl.ds(r0, rows), :]             # (rows, D) bf16
        k = k_sc[...]                                 # (S, D)  bf16
        v = v_sc[...]
        attn = jnp.zeros((rows, D), jnp.float32)
        # Output projection folded into the head loop: no ctx concatenate / relayout.
        # TODO(synk): on v6e/v7x with hd < 256 a head-major (H, S, hd) layout would
        # fill the 2x256^2 MXU better; kept lane-sliced here for simplicity.
        for h in range(NUM_HEADS):
            lo = h * hd
            s = lax.dot_general(q_blk[:, lo:lo + hd], k[:, lo:lo + hd],
                                (((1,), (1,)), ((), ())),
                                preferred_element_type=jnp.float32)   # (rows, S)
            s = s - jnp.max(s, axis=-1, keepdims=True)
            p = jnp.exp(s)
            inv = pl.reciprocal(jnp.sum(p, axis=-1, keepdims=True), approx=True)
            ho = jnp.dot(p.astype(cd), v[:, lo:lo + hd],
                         preferred_element_type=jnp.float32) * inv    # (rows, hd)
            attn = attn + jnp.dot(ho.astype(cd), wo_ref[pl.ds(lo, hd), :],
                                  preferred_element_type=jnp.float32)
        attn = attn + bo_ref[...]

        # --- critical_mlp: D -> 4D -> GELU -> 2D -> GELU -> D, + residual ---------
        h1 = _gelu_tanh(jnp.dot(attn.astype(cd), w1_ref[...],
                                preferred_element_type=jnp.float32) + b1_ref[...])
        h2 = _gelu_tanh(jnp.dot(h1.astype(cd), w2_ref[...],
                                preferred_element_type=jnp.float32) + b2_ref[...])
        out = jnp.dot(h2.astype(cd), w3_ref[...],
                      preferred_element_type=jnp.float32) + b3_ref[...]
        o_ref[pl.ds(r0, rows), :] = (out + x_ref[pl.ds(r0, rows), :]).astype(o_ref.dtype)

    n_blocks = S // block_rows
    if n_blocks <= 1:
        process_rows(0, S)
    else:
        def body(i, carry):
            process_rows(pl.multiple_of(i * block_rows, block_rows), block_rows)
            return carry
        # Unrolled: small static trip count; lets block i+1's matmuls overlap block
        # i's GELU / store epilogue.
        lax.fori_loop(0, n_blocks, body, 0, unroll=True)


def _pick_row_block(S, target):
    """Largest multiple of 8 <= target that divides S (or S itself)."""
    if S <= target:
        return S
    t = (target // 8) * 8
    while t >= 8:
        if S % t == 0:
            return t
        t -= 8
    # TODO(synk): ragged S (not a multiple of 8) falls back to the unblocked full-S
    # path; a full (S, 4D) f32 h1 is a VMEM footgun there for very large S.
    return S


def emergence_core(x, params, *, row_block=None):
    B, S, D = x.shape
    if D % NUM_HEADS != 0:
        raise ValueError("dim must be divisible by 8 heads")
    wqkv = params[0]
    assert wqkv.shape == (D, 3 * D)
    wdt = wqkv.dtype

    # Generation-aware VMEM budget (v7x: 64 MiB/TC, v5e/v6e: 128 MiB).
    try:
        vmem_cap = int(pltpu.get_tpu_info().vmem_capacity_bytes)
    except Exception:
        vmem_cap = 64 * 2**20
    if row_block is None:
        row_block = 256 if vmem_cap <= 96 * 2**20 else 512
    tile = _pick_row_block(S, row_block)

    kernel = functools.partial(emergence_core_kernel, block_rows=tile)

    # VMEM estimate: single-buffered weights + double-buffered x/out blocks +
    # q/k/v bf16 scratch + per-row-block intermediates (scores, attn, h1, h2).
    w_bytes = sum(int(p.size) * p.dtype.itemsize for p in params)
    io_bytes = 2 * S * D * x.dtype.itemsize
    qkv_sc_bytes = 3 * S * D * jnp.dtype(wdt).itemsize
    inter_bytes = (S * 3 * D) * 4 + (tile * S) * 6 + tile * 7 * D * 6
    est = w_bytes + 2 * io_bytes + qkv_sc_bytes + inter_bytes
    vmem_limit = min(max(int(est * 1.4), 32 * 2**20), int(vmem_cap * 0.9))

    cost = pl.CostEstimate(
        flops=int(B * S * (36 * D * D + 4 * S * D)),
        transcendentals=int(B * S * (S * NUM_HEADS + 6 * D)),
        bytes_accessed=int(w_bytes + 2 * B * S * D * x.dtype.itemsize),
    )

    def build(weight_pipeline_mode):
        kw = {} if weight_pipeline_mode is None else {"pipeline_mode": weight_pipeline_mode}
        # Weights/biases are grid-invariant (constant block index) -> fetched once.
        weight_specs = [pl.BlockSpec(p.shape, lambda b: (0, 0), **kw) for p in params]
        grid_spec = pltpu.PrefetchScalarGridSpec(
            num_scalar_prefetch=0,
            grid=(B,),
            in_specs=[pl.BlockSpec((None, S, D), lambda b: (b, 0, 0))] + weight_specs,
            out_specs=pl.BlockSpec((None, S, D), lambda b: (b, 0, 0)),
            scratch_shapes=[pltpu.VMEM((S, D), wdt)] * 3,   # q / k / v staging
        )
        # TODO(synk): when B < num TensorCores (v7x has 2/chip) a second "parallel"
        # grid axis over q row blocks would keep both cores busy; that needs K/V
        # recompute or a two-pass structure, so it is left out here (use B % 2 == 0).
        return pl.pallas_call(
            kernel,
            out_shape=jax.ShapeDtypeStruct((B, S, D), x.dtype),
            grid_spec=grid_spec,
            compiler_params=pltpu.CompilerParams(
                dimension_semantics=("parallel",),
                vmem_limit_bytes=vmem_limit,
            ),
            cost_estimate=cost,
        )

    try:
        # Single-buffer the resident weights (halves weight VMEM residency).
        return build(pl.Buffered(1))(x, *params)
    except Exception:
        # Fallback for JAX builds that do not support pipeline_mode on top-level
        # BlockSpecs; default (double-buffered) weight residency is still correct.
        return build(None)(x, *params)


def init_params(key, dim, weight_dtype=jnp.bfloat16):
    """Deterministic synthetic parameters with PyTorch-like uniform scaling.

    Weights are pre-transposed to (in_features, out_features) bf16 so every projection
    is a plain `x @ W + b` MXU matmul; q/k/v weights/biases are pre-concatenated into a
    single (D, 3D) / (1, 3D) pair for the fused QKV matmul.  Biases stay f32.
    """
    def lin(k, fan_in, fan_out):
        bound = 1.0 / math.sqrt(fan_in)
        kw, kb = jax.random.split(k)
        w = jax.random.uniform(kw, (fan_in, fan_out), jnp.float32,
                               -bound, bound).astype(weight_dtype)
        b = jax.random.uniform(kb, (1, fan_out), jnp.float32, -bound, bound)
        return w, b

    ks = jax.random.split(key, 7)
    wq, bq = lin(ks[0], dim, dim)
    wk, bk = lin(ks[1], dim, dim)
    wv, bv = lin(ks[2], dim, dim)
    wqkv = jnp.concatenate([wq, wk, wv], axis=1)      # (D, 3D) bf16
    bqkv = jnp.concatenate([bq, bk, bv], axis=1)      # (1, 3D) f32
    wo, bo = lin(ks[3], dim, dim)
    w1, b1 = lin(ks[4], dim, dim * 4)
    w2, b2 = lin(ks[5], dim * 4, dim * 2)
    w3, b3 = lin(ks[6], dim * 2, dim)
    return (wqkv, bqkv, wo, bo, w1, b1, w2, b2, w3, b3)


def reference(x, params):
    """Pure-JAX f32 reference reproducing the PyTorch forward (same bf16 weights,
    exact erf GELU as in nn.GELU())."""
    pf = [p.astype(jnp.float32) for p in params]
    wqkv, bqkv, wo, bo, w1, b1, w2, b2, w3, b3 = pf
    B, S, D = x.shape
    hd = D // NUM_HEADS
    qkv = x @ wqkv + bqkv
    q = qkv[..., :D].reshape(B, S, NUM_HEADS, hd).transpose(0, 2, 1, 3)
    k = qkv[..., D:2 * D].reshape(B, S, NUM_HEADS, hd).transpose(0, 2, 1, 3)
    v = qkv[..., 2 * D:].reshape(B, S, NUM_HEADS, hd).transpose(0, 2, 1, 3)
    s = jnp.einsum('bhqd,bhkd->bhqk', q, k) / math.sqrt(hd)
    p = jax.nn.softmax(s, axis=-1)
    ctx = jnp.einsum('bhqk,bhkd->bhqd', p, v).transpose(0, 2, 1, 3).reshape(B, S, D)
    attn = ctx @ wo + bo

    def gelu(t):  # exact (erf) GELU, PyTorch default
        return 0.5 * t * (1.0 + lax.erf(t / math.sqrt(2.0)))

    h1 = gelu(attn @ w1 + b1)
    h2 = gelu(h1 @ w2 + b2)
    return h2 @ w3 + b3 + x


if __name__ == "__main__":
    key = jax.random.PRNGKey(0)
    k1, k2, k3, k4 = jax.random.split(key, 4)

    # Demo-sized: dim=32 -> 8 heads of head_dim=4, single row block.
    B, S, D = 2, 8, 32
    x = jax.random.normal(k1, (B, S, D), dtype=jnp.float32)
    params = init_params(k2, D)
    out = jax.block_until_ready(emergence_core(x, params))
    np.testing.assert_allclose(np.asarray(out), np.asarray(reference(x, params)),
                               rtol=2e-2, atol=2e-2)

    # Slightly larger shape exercising the q-row-blocked attention + unrolled MLP
    # loop path (2 row blocks of 128 rows, head_dim=16).
    B2, S2, D2 = 2, 256, 128
    x2 = jax.random.normal(k3, (B2, S2, D2), dtype=jnp.float32)
    params2 = init_params(k4, D2)
    out2 = jax.block_until_ready(emergence_core(x2, params2, row_block=128))
    np.testing.assert_allclose(np.asarray(out2), np.asarray(reference(x2, params2)),
                               rtol=2e-2, atol=2e-2)

    print("KERNEL_OK")
</pallas_src>

<mosaic_0001>
module attributes {stable_mosaic.version = 11 : i64} {
  func.func @emergence_core_kernel(%arg0: i32, %arg1: memref<1x8x32xf32, #tpu.memory_space<vmem>>, %arg2: memref<32x96xbf16, #tpu.memory_space<vmem>>, %arg3: memref<1x96xf32, #tpu.memory_space<vmem>>, %arg4: memref<32x32xbf16, #tpu.memory_space<vmem>>, %arg5: memref<1x32xf32, #tpu.memory_space<vmem>>, %arg6: memref<32x128xbf16, #tpu.memory_space<vmem>>, %arg7: memref<1x128xf32, #tpu.memory_space<vmem>>, %arg8: memref<128x64xbf16, #tpu.memory_space<vmem>>, %arg9: memref<1x64xf32, #tpu.memory_space<vmem>>, %arg10: memref<64x32xbf16, #tpu.memory_space<vmem>>, %arg11: memref<1x32xf32, #tpu.memory_space<vmem>>, %arg12: memref<1x8x32xf32, #tpu.memory_space<vmem>>, %arg13: memref<8x32xbf16, #tpu.memory_space<vmem>>, %arg14: memref<8x32xbf16, #tpu.memory_space<vmem>>, %arg15: memref<8x32xbf16, #tpu.memory_space<vmem>>) attributes {dimension_semantics = [#tpu.dimension_semantics<parallel>], iteration_bounds = array<i64: 2>, scalar_prefetch = 0 : i64, scratch_operands = 3 : i64, tpu.core_type = #tpu.core_type<tc>, window_params = [{transform_indices = @transform_0, window_bounds = array<i64: 1, 8, 32>}, {pipeline_mode = #tpu.pipeline_mode<synchronous>, transform_indices = @transform_1, window_bounds = array<i64: 32, 96>}, {pipeline_mode = #tpu.pipeline_mode<synchronous>, transform_indices = @transform_2, window_bounds = array<i64: 1, 96>}, {pipeline_mode = #tpu.pipeline_mode<synchronous>, transform_indices = @transform_3, window_bounds = array<i64: 32, 32>}, {pipeline_mode = #tpu.pipeline_mode<synchronous>, transform_indices = @transform_4, window_bounds = array<i64: 1, 32>}, {pipeline_mode = #tpu.pipeline_mode<synchronous>, transform_indices = @transform_5, window_bounds = array<i64: 32, 128>}, {pipeline_mode = #tpu.pipeline_mode<synchronous>, transform_indices = @transform_6, window_bounds = array<i64: 1, 128>}, {pipeline_mode = #tpu.pipeline_mode<synchronous>, transform_indices = @transform_7, window_bounds = array<i64: 128, 64>}, {pipeline_mode = #tpu.pipeline_mode<synchronous>, transform_indices = @transform_8, window_bounds = array<i64: 1, 64>}, {pipeline_mode = #tpu.pipeline_mode<synchronous>, transform_indices = @transform_9, window_bounds = array<i64: 64, 32>}, {pipeline_mode = #tpu.pipeline_mode<synchronous>, transform_indices = @transform_10, window_bounds = array<i64: 1, 32>}, {transform_indices = @transform_11, window_bounds = array<i64: 1, 8, 32>}]} {
    %c0 = arith.constant 0 : index
    %c0_0 = arith.constant 0 : index
    %c0_1 = arith.constant 0 : index
    %0 = vector.load %arg1[%c0, %c0_0, %c0_1] : memref<1x8x32xf32, #tpu.memory_space<vmem>>, vector<1x8x32xf32>
    %1 = vector.shape_cast %0 : vector<1x8x32xf32> to vector<8x32xf32>
    %2 = arith.truncf %1 : vector<8x32xf32> to vector<8x32xbf16>
    %c0_2 = arith.constant 0 : index
    %c0_3 = arith.constant 0 : index
    %3 = vector.load %arg2[%c0_2, %c0_3] : memref<32x96xbf16, #tpu.memory_space<vmem>>, vector<32x96xbf16>
    %cst = arith.constant dense<0.000000e+00> : vector<8x96xf32>
    %4 = tpu.matmul %2, %3, %cst {dimension_numbers = #tpu.dot_dimension_numbers<[1], [0], [0], [1], [0, 0, 1, 1], [], []>} : vector<8x32xbf16>, vector<32x96xbf16>, vector<8x96xf32> -> vector<8x96xf32>
    %c0_4 = arith.constant 0 : index
    %c0_5 = arith.constant 0 : index
    %5 = vector.load %arg3[%c0_4, %c0_5] : memref<1x96xf32, #tpu.memory_space<vmem>>, vector<1x96xf32>
    %6 = vector.broadcast %5 : vector<1x96xf32> to vector<8x96xf32>
    %7 = arith.addf %4, %6 : vector<8x96xf32>
    %8 = vector.extract_strided_slice %7 {offsets = [0, 0], sizes = [8, 32], strides = [1, 1]} : vector<8x96xf32> to vector<8x32xf32>
    %cst_6 = arith.constant 5.000000e-01 : f32
    %9 = vector.broadcast %cst_6 : f32 to vector<8x32xf32>
    %10 = arith.mulf %8, %9 : vector<8x32xf32>
    %11 = arith.truncf %10 : vector<8x32xf32> to vector<8x32xbf16>
    %c0_7 = arith.constant 0 : index
    %c0_8 = arith.constant 0 : index
    %12 = vector.load %arg13[%c0_7, %c0_8] : memref<8x32xbf16, #tpu.memory_space<vmem>>, vector<8x32xbf16>
    tpu.vector_store %arg13[%c0_7, %c0_8], %11 {strides = array<i32>} : memref<8x32xbf16, #tpu.memory_space<vmem>>, vector<8x32xbf16>,
    %13 = vector.extract_strided_slice %7 {offsets = [0, 32], sizes = [8, 32], strides = [1, 1]} : vector<8x96xf32> to vector<8x32xf32>
    %14 = arith.truncf %13 : vector<8x32xf32> to vector<8x32xbf16>
    %c0_9 = arith.constant 0 : index
    %c0_10 = arith.constant 0 : index
    %15 = vector.load %arg14[%c0_9, %c0_10] : memref<8x32xbf16, #tpu.memory_space<vmem>>, vector<8x32xbf16>
    tpu.vector_store %arg14[%c0_9, %c0_10], %14 {strides = array<i32>} : memref<8x32xbf16, #tpu.memory_space<vmem>>, vector<8x32xbf16>,
    %16 = vector.extract_strided_slice %7 {offsets = [0, 64], sizes = [8, 32], strides = [1, 1]} : vector<8x96xf32> to vector<8x32xf32>
    %17 = arith.truncf %16 : vector<8x32xf32> to vector<8x32xbf16>
    %c0_11 = arith.constant 0 : index
    %c0_12 = arith.constant 0 : index
    %18 = vector.load %arg15[%c0_11, %c0_12] : memref<8x32xbf16, #tpu.memory_space<vmem>>, vector<8x32xbf16>
    tpu.vector_store %arg15[%c0_11, %c0_12], %17 {strides = array<i32>} : memref<8x32xbf16, #tpu.memory_space<vmem>>, vector<8x32xbf16>,
    %c0_13 = arith.constant 0 : index
    %c0_14 = arith.constant 0 : index
    %19 = vector.load %arg13[%c0_13, %c0_14] : memref<8x32xbf16, #tpu.memory_space<vmem>>, vector<8x32xbf16>
    %c0_15 = arith.constant 0 : index
    %c0_16 = arith.constant 0 : index
    %20 = vector.load %arg14[%c0_15, %c0_16] : memref<8x32xbf16, #tpu.memory_space<vmem>>, vector<8x32xbf16>
    %c0_17 = arith.constant 0 : index
    %c0_18 = arith.constant 0 : index
    %21 = vector.load %arg15[%c0_17, %c0_18] : memref<8x32xbf16, #tpu.memory_space<vmem>>, vector<8x32xbf16>
    %cst_19 = arith.constant 0.000000e+00 : f32
    %22 = vector.broadcast %cst_19 : f32 to vector<8x32xf32>
    %23 = vector.extract_strided_slice %19 {offsets = [0, 0], sizes = [8, 4], strides = [1, 1]} : vector<8x32xbf16> to vector<8x4xbf16>
    %24 = vector.extract_strided_slice %20 {offsets = [0, 0], sizes = [8, 4], strides = [1, 1]} : vector<8x32xbf16> to vector<8x4xbf16>
    %cst_20 = arith.constant dense<0.000000e+00> : vector<8x8xf32>
    %25 = tpu.matmul %23, %24, %cst_20 {dimension_numbers = #tpu.dot_dimension_numbers<[1], [1], [0], [0], [0, 0, 1, 0], [], []>} : vector<8x4xbf16>, vector<8x4xbf16>, vector<8x8xf32> -> vector<8x8xf32>
    %cst_21 = arith.constant dense<0xFF800000> : vector<8xf32>
    %26 = vector.multi_reduction <maximumf>, %25, %cst_21 [1] : vector<8x8xf32> to vector<8xf32>
    %27 = vector.shape_cast %26 : vector<8xf32> to vector<8x1xf32>
    %28 = vector.broadcast %27 : vector<8x1xf32> to vector<8x8xf32>
    %29 = arith.subf %25, %28 : vector<8x8xf32>
    %30 = math.exp %29 : vector<8x8xf32>
    %cst_22 = arith.constant dense<0.000000e+00> : vector<8xf32>
    %31 = vector.multi_reduction <add>, %30, %cst_22 [1] : vector<8x8xf32> to vector<8xf32>
    %32 = vector.shape_cast %31 : vector<8xf32> to vector<8x1xf32>
    %33 = tpu.reciprocal %32 {approx = true} : vector<8x1xf32> -> vector<8x1xf32>
    %34 = arith.truncf %30 : vector<8x8xf32> to vector<8x8xbf16>
    %35 = vector.extract_strided_slice %21 {offsets = [0, 0], sizes = [8, 4], strides = [1, 1]} : vector<8x32xbf16> to vector<8x4xbf16>
    %cst_23 = arith.constant dense<0.000000e+00> : vector<8x4xf32>
    %36 = tpu.matmul %34, %35, %cst_23 {dimension_numbers = #tpu.dot_dimension_numbers<[1], [0], [0], [1], [0, 0, 1, 1], [], []>} : vector<8x8xbf16>, vector<8x4xbf16>, vector<8x4xf32> -> vector<8x4xf32>
    %37 = vector.broadcast %33 : vector<8x1xf32> to vector<8x4xf32>
    %38 = arith.mulf %36, %37 : vector<8x4xf32>
    %39 = arith.truncf %38 : vector<8x4xf32> to vector<8x4xbf16>
    %c0_24 = arith.constant 0 : index
    %c0_25 = arith.constant 0 : index
    %40 = vector.load %arg4[%c0_24, %c0_25] : memref<32x32xbf16, #tpu.memory_space<vmem>>, vector<4x32xbf16>
    %cst_26 = arith.constant dense<0.000000e+00> : vector<8x32xf32>
    %41 = tpu.matmul %39, %40, %cst_26 {dimension_numbers = #tpu.dot_dimension_numbers<[1], [0], [0], [1], [0, 0, 1, 1], [], []>} : vector<8x4xbf16>, vector<4x32xbf16>, vector<8x32xf32> -> vector<8x32xf32>
    %42 = arith.addf %22, %41 : vector<8x32xf32>
    %43 = vector.extract_strided_slice %19 {offsets = [0, 4], sizes = [8, 4], strides = [1, 1]} : vector<8x32xbf16> to vector<8x4xbf16>
    %44 = vector.extract_strided_slice %20 {offsets = [0, 4], sizes = [8, 4], strides = [1, 1]} : vector<8x32xbf16> to vector<8x4xbf16>
    %cst_27 = arith.constant dense<0.000000e+00> : vector<8x8xf32>
    %45 = tpu.matmul %43, %44, %cst_27 {dimension_numbers = #tpu.dot_dimension_numbers<[1], [1], [0], [0], [0, 0, 1, 0], [], []>} : vector<8x4xbf16>, vector<8x4xbf16>, vector<8x8xf32> -> vector<8x8xf32>
    %cst_28 = arith.constant dense<0xFF800000> : vector<8xf32>
    %46 = vector.multi_reduction <maximumf>, %45, %cst_28 [1] : vector<8x8xf32> to vector<8xf32>
    %47 = vector.shape_cast %46 : vector<8xf32> to vector<8x1xf32>
    %48 = vector.broadcast %47 : vector<8x1xf32> to vector<8x8xf32>
    %49 = arith.subf %45, %48 : vector<8x8xf32>
    %50 = math.exp %49 : vector<8x8xf32>
    %cst_29 = arith.constant dense<0.000000e+00> : vector<8xf32>
    %51 = vector.multi_reduction <add>, %50, %cst_29 [1] : vector<8x8xf32> to vector<8xf32>
    %52 = vector.shape_cast %51 : vector<8xf32> to vector<8x1xf32>
    %53 = tpu.reciprocal %52 {approx = true} : vector<8x1xf32> -> vector<8x1xf32>
    %54 = arith.truncf %50 : vector<8x8xf32> to vector<8x8xbf16>
    %55 = vector.extract_strided_slice %21 {offsets = [0, 4], sizes = [8, 4], strides = [1, 1]} : vector<8x32xbf16> to vector<8x4xbf16>
    %cst_30 = arith.constant dense<0.000000e+00> : vector<8x4xf32>
    %56 = tpu.matmul %54, %55, %cst_30 {dimension_numbers = #tpu.dot_dimension_numbers<[1], [0], [0], [1], [0, 0, 1, 1], [], []>} : vector<8x8xbf16>, vector<8x4xbf16>, vector<8x4xf32> -> vector<8x4xf32>
    %57 = vector.broadcast %53 : vector<8x1xf32> to vector<8x4xf32>
    %58 = arith.mulf %56, %57 : vector<8x4xf32>
    %59 = arith.truncf %58 : vector<8x4xf32> to vector<8x4xbf16>
    %c4 = arith.constant 4 : index
    %c0_31 = arith.constant 0 : index
    %60 = vector.load %arg4[%c4, %c0_31] : memref<32x32xbf16, #tpu.memory_space<vmem>>, vector<4x32xbf16>
    %cst_32 = arith.constant dense<0.000000e+00> : vector<8x32xf32>
    %61 = tpu.matmul %59, %60, %cst_32 {dimension_numbers = #tpu.dot_dimension_numbers<[1], [0], [0], [1], [0, 0, 1, 1], [], []>} : vector<8x4xbf16>, vector<4x32xbf16>, vector<8x32xf32> -> vector<8x32xf32>
    %62 = arith.addf %42, %61 : vector<8x32xf32>
    %63 = vector.extract_strided_slice %19 {offsets = [0, 8], sizes = [8, 4], strides = [1, 1]} : vector<8x32xbf16> to vector<8x4xbf16>
    %64 = vector.extract_strided_slice %20 {offsets = [0, 8], sizes = [8, 4], strides = [1, 1]} : vector<8x32xbf16> to vector<8x4xbf16>
    %cst_33 = arith.constant dense<0.000000e+00> : vector<8x8xf32>
    %65 = tpu.matmul %63, %64, %cst_33 {dimension_numbers = #tpu.dot_dimension_numbers<[1], [1], [0], [0], [0, 0, 1, 0], [], []>} : vector<8x4xbf16>, vector<8x4xbf16>, vector<8x8xf32> -> vector<8x8xf32>
    %cst_34 = arith.constant dense<0xFF800000> : vector<8xf32>
    %66 = vector.multi_reduction <maximumf>, %65, %cst_34 [1] : vector<8x8xf32> to vector<8xf32>
    %67 = vector.shape_cast %66 : vector<8xf32> to vector<8x1xf32>
    %68 = vector.broadcast %67 : vector<8x1xf32> to vector<8x8xf32>
    %69 = arith.subf %65, %68 : vector<8x8xf32>
    %70 = math.exp %69 : vector<8x8xf32>
    %cst_35 = arith.constant dense<0.000000e+00> : vector<8xf32>
    %71 = vector.multi_reduction <add>, %70, %cst_35 [1] : vector<8x8xf32> to vector<8xf32>
    %72 = vector.shape_cast %71 : vector<8xf32> to vector<8x1xf32>
    %73 = tpu.reciprocal %72 {approx = true} : vector<8x1xf32> -> vector<8x1xf32>
    %74 = arith.truncf %70 : vector<8x8xf32> to vector<8x8xbf16>
    %75 = vector.extract_strided_slice %21 {offsets = [0, 8], sizes = [8, 4], strides = [1, 1]} : vector<8x32xbf16> to vector<8x4xbf16>
    %cst_36 = arith.constant dense<0.000000e+00> : vector<8x4xf32>
    %76 = tpu.matmul %74, %75, %cst_36 {dimension_numbers = #tpu.dot_dimension_numbers<[1], [0], [0], [1], [0, 0, 1, 1], [], []>} : vector<8x8xbf16>, vector<8x4xbf16>, vector<8x4xf32> -> vector<8x4xf32>
    %77 = vector.broadcast %73 : vector<8x1xf32> to vector<8x4xf32>
    %78 = arith.mulf %76, %77 : vector<8x4xf32>
    %79 = arith.truncf %78 : vector<8x4xf32> to vector<8x4xbf16>
    %c8 = arith.constant 8 : index
    %c0_37 = arith.constant 0 : index
    %80 = vector.load %arg4[%c8, %c0_37] : memref<32x32xbf16, #tpu.memory_space<vmem>>, vector<4x32xbf16>
    %cst_38 = arith.constant dense<0.000000e+00> : vector<8x32xf32>
    %81 = tpu.matmul %79, %80, %cst_38 {dimension_numbers = #tpu.dot_dimension_numbers<[1], [0], [0], [1], [0, 0, 1, 1], [], []>} : vector<8x4xbf16>, vector<4x32xbf16>, vector<8x32xf32> -> vector<8x32xf32>
    %82 = arith.addf %62, %81 : vector<8x32xf32>
    %83 = vector.extract_strided_slice %19 {offsets = [0, 12], sizes = [8, 4], strides = [1, 1]} : vector<8x32xbf16> to vector<8x4xbf16>
    %84 = vector.extract_strided_slice %20 {offsets = [0, 12], sizes = [8, 4], strides = [1, 1]} : vector<8x32xbf16> to vector<8x4xbf16>
    %cst_39 = arith.constant dense<0.000000e+00> : vector<8x8xf32>
    %85 = tpu.matmul %83, %84, %cst_39 {dimension_numbers = #tpu.dot_dimension_numbers<[1], [1], [0], [0], [0, 0, 1, 0], [], []>} : vector<8x4xbf16>, vector<8x4xbf16>, vector<8x8xf32> -> vector<8x8xf32>
    %cst_40 = arith.constant dense<0xFF800000> : vector<8xf32>
    %86 = vector.multi_reduction <maximumf>, %85, %cst_40 [1] : vector<8x8xf32> to vector<8xf32>
    %87 = vector.shape_cast %86 : vector<8xf32> to vector<8x1xf32>
    %88 = vector.broadcast %87 : vector<8x1xf32> to vector<8x8xf32>
    %89 = arith.subf %85, %88 : vector<8x8xf32>
    %90 = math.exp %89 : vector<8x8xf32>
    %cst_41 = arith.constant dense<0.000000e+00> : vector<8xf32>
    %91 = vector.multi_reduction <add>, %90, %cst_41 [1] : vector<8x8xf32> to vector<8xf32>
    %92 = vector.shape_cast %91 : vector<8xf32> to vector<8x1xf32>
    %93 = tpu.reciprocal %92 {approx = true} : vector<8x1xf32> -> vector<8x1xf32>
    %94 = arith.truncf %90 : vector<8x8xf32> to vector<8x8xbf16>
    %95 = vector.extract_strided_slice %21 {offsets = [0, 12], sizes = [8, 4], strides = [1, 1]} : vector<8x32xbf16> to vector<8x4xbf16>
    %cst_42 = arith.constant dense<0.000000e+00> : vector<8x4xf32>
    %96 = tpu.matmul %94, %95, %cst_42 {dimension_numbers = #tpu.dot_dimension_numbers<[1], [0], [0], [1], [0, 0, 1, 1], [], []>} : vector<8x8xbf16>, vector<8x4xbf16>, vector<8x4xf32> -> vector<8x4xf32>
    %97 = vector.broadcast %93 : vector<8x1xf32> to vector<8x4xf32>
    %98 = arith.mulf %96, %97 : vector<8x4xf32>
    %99 = arith.truncf %98 : vector<8x4xf32> to vector<8x4xbf16>
    %c12 = arith.constant 12 : index
    %c0_43 = arith.constant 0 : index
    %100 = vector.load %arg4[%c12, %c0_43] : memref<32x32xbf16, #tpu.memory_space<vmem>>, vector<4x32xbf16>
    %cst_44 = arith.constant dense<0.000000e+00> : vector<8x32xf32>
    %101 = tpu.matmul %99, %100, %cst_44 {dimension_numbers = #tpu.dot_dimension_numbers<[1], [0], [0], [1], [0, 0, 1, 1], [], []>} : vector<8x4xbf16>, vector<4x32xbf16>, vector<8x32xf32> -> vector<8x32xf32>
    %102 = arith.addf %82, %101 : vector<8x32xf32>
    %103 = vector.extract_strided_slice %19 {offsets = [0, 16], sizes = [8, 4], strides = [1, 1]} : vector<8x32xbf16> to vector<8x4xbf16>
    %104 = vector.extract_strided_slice %20 {offsets = [0, 16], sizes = [8, 4], strides = [1, 1]} : vector<8x32xbf16> to vector<8x4xbf16>
    %cst_45 = arith.constant dense<0.000000e+00> : vector<8x8xf32>
    %105 = tpu.matmul %103, %104, %cst_45 {dimension_numbers = #tpu.dot_dimension_numbers<[1], [1], [0], [0], [0, 0, 1, 0], [], []>} : vector<8x4xbf16>, vector<8x4xbf16>, vector<8x8xf32> -> vector<8x8xf32>
    %cst_46 = arith.constant dense<0xFF800000> : vector<8xf32>
    %106 = vector.multi_reduction <maximumf>, %105, %cst_46 [1] : vector<8x8xf32> to vector<8xf32>
    %107 = vector.shape_cast %106 : vector<8xf32> to vector<8x1xf32>
    %108 = vector.broadcast %107 : vector<8x1xf32> to vector<8x8xf32>
    %109 = arith.subf %105, %108 : vector<8x8xf32>
    %110 = math.exp %109 : vector<8x8xf32>
    %cst_47 = arith.constant dense<0.000000e+00> : vector<8xf32>
    %111 = vector.multi_reduction <add>, %110, %cst_47 [1] : vector<8x8xf32> to vector<8xf32>
    %112 = vector.shape_cast %111 : vector<8xf32> to vector<8x1xf32>
    %113 = tpu.reciprocal %112 {approx = true} : vector<8x1xf32> -> vector<8x1xf32>
    %114 = arith.truncf %110 : vector<8x8xf32> to vector<8x8xbf16>
    %115 = vector.extract_strided_slice %21 {offsets = [0, 16], sizes = [8, 4], strides = [1, 1]} : vector<8x32xbf16> to vector<8x4xbf16>
    %cst_48 = arith.constant dense<0.000000e+00> : vector<8x4xf32>
    %116 = tpu.matmul %114, %115, %cst_48 {dimension_numbers = #tpu.dot_dimension_numbers<[1], [0], [0], [1], [0, 0, 1, 1], [], []>} : vector<8x8xbf16>, vector<8x4xbf16>, vector<8x4xf32> -> vector<8x4xf32>
    %117 = vector.broadcast %113 : vector<8x1xf32> to vector<8x4xf32>
    %118 = arith.mulf %116, %117 : vector<8x4xf32>
    %119 = arith.truncf %118 : vector<8x4xf32> to vector<8x4xbf16>
    %c16 = arith.constant 16 : index
    %c0_49 = arith.constant 0 : index
    %120 = vector.load %arg4[%c16, %c0_49] : memref<32x32xbf16, #tpu.memory_space<vmem>>, vector<4x32xbf16>
    %cst_50 = arith.constant dense<0.000000e+00> : vector<8x32xf32>
    %121 = tpu.matmul %119, %120, %cst_50 {dimension_numbers = #tpu.dot_dimension_numbers<[1], [0], [0], [1], [0, 0, 1, 1], [], []>} : vector<8x4xbf16>, vector<4x32xbf16>, vector<8x32xf32> -> vector<8x32xf32>
    %122 = arith.addf %102, %121 : vector<8x32xf32>
    %123 = vector.extract_strided_slice %19 {offsets = [0, 20], sizes = [8, 4], strides = [1, 1]} : vector<8x32xbf16> to vector<8x4xbf16>
    %124 = vector.extract_strided_slice %20 {offsets = [0, 20], sizes = [8, 4], strides = [1, 1]} : vector<8x32xbf16> to vector<8x4xbf16>
    %cst_51 = arith.constant dense<0.000000e+00> : vector<8x8xf32>
    %125 = tpu.matmul %123, %124, %cst_51 {dimension_numbers = #tpu.dot_dimension_numbers<[1], [1], [0], [0], [0, 0, 1, 0], [], []>} : vector<8x4xbf16>, vector<8x4xbf16>, vector<8x8xf32> -> vector<8x8xf32>
    %cst_52 = arith.constant dense<0xFF800000> : vector<8xf32>
    %126 = vector.multi_reduction <maximumf>, %125, %cst_52 [1] : vector<8x8xf32> to vector<8xf32>
    %127 = vector.shape_cast %126 : vector<8xf32> to vector<8x1xf32>
    %128 = vector.broadcast %127 : vector<8x1xf32> to vector<8x8xf32>
    %129 = arith.subf %125, %128 : vector<8x8xf32>
    %130 = math.exp %129 : vector<8x8xf32>
    %cst_53 = arith.constant dense<0.000000e+00> : vector<8xf32>
    %131 = vector.multi_reduction <add>, %130, %cst_53 [1] : vector<8x8xf32> to vector<8xf32>
    %132 = vector.shape_cast %131 : vector<8xf32> to vector<8x1xf32>
    %133 = tpu.reciprocal %132 {approx = true} : vector<8x1xf32> -> vector<8x1xf32>
    %134 = arith.truncf %130 : vector<8x8xf32> to vector<8x8xbf16>
    %135 = vector.extract_strided_slice %21 {offsets = [0, 20], sizes = [8, 4], strides = [1, 1]} : vector<8x32xbf16> to vector<8x4xbf16>
    %cst_54 = arith.constant dense<0.000000e+00> : vector<8x4xf32>
    %136 = tpu.matmul %134, %135, %cst_54 {dimension_numbers = #tpu.dot_dimension_numbers<[1], [0], [0], [1], [0, 0, 1, 1], [], []>} : vector<8x8xbf16>, vector<8x4xbf16>, vector<8x4xf32> -> vector<8x4xf32>
    %137 = vector.broadcast %133 : vector<8x1xf32> to vector<8x4xf32>
    %138 = arith.mulf %136, %137 : vector<8x4xf32>
    %139 = arith.truncf %138 : vector<8x4xf32> to vector<8x4xbf16>
    %c20 = arith.constant 20 : index
    %c0_55 = arith.constant 0 : index
    %140 = vector.load %arg4[%c20, %c0_55] : memref<32x32xbf16, #tpu.memory_space<vmem>>, vector<4x32xbf16>
    %cst_56 = arith.constant dense<0.000000e+00> : vector<8x32xf32>
    %141 = tpu.matmul %139, %140, %cst_56 {dimension_numbers = #tpu.dot_dimension_numbers<[1], [0], [0], [1], [0, 0, 1, 1], [], []>} : vector<8x4xbf16>, vector<4x32xbf16>, vector<8x32xf32> -> vector<8x32xf32>
    %142 = arith.addf %122, %141 : vector<8x32xf32>
    %143 = vector.extract_strided_slice %19 {offsets = [0, 24], sizes = [8, 4], strides = [1, 1]} : vector<8x32xbf16> to vector<8x4xbf16>
    %144 = vector.extract_strided_slice %20 {offsets = [0, 24], sizes = [8, 4], strides = [1, 1]} : vector<8x32xbf16> to vector<8x4xbf16>
    %cst_57 = arith.constant dense<0.000000e+00> : vector<8x8xf32>
    %145 = tpu.matmul %143, %144, %cst_57 {dimension_numbers = #tpu.dot_dimension_numbers<[1], [1], [0], [0], [0, 0, 1, 0], [], []>} : vector<8x4xbf16>, vector<8x4xbf16>, vector<8x8xf32> -> vector<8x8xf32>
    %cst_58 = arith.constant dense<0xFF800000> : vector<8xf32>
    %146 = vector.multi_reduction <maximumf>, %145, %cst_58 [1] : vector<8x8xf32> to vector<8xf32>
    %147 = vector.shape_cast %146 : vector<8xf32> to vector<8x1xf32>
    %148 = vector.broadcast %147 : vector<8x1xf32> to vector<8x8xf32>
    %149 = arith.subf %145, %148 : vector<8x8xf32>
    %150 = math.exp %149 : vector<8x8xf32>
    %cst_59 = arith.constant dense<0.000000e+00> : vector<8xf32>
    %151 = vector.multi_reduction <add>, %150, %cst_59 [1] : vector<8x8xf32> to vector<8xf32>
    %152 = vector.shape_cast %151 : vector<8xf32> to vector<8x1xf32>
    %153 = tpu.reciprocal %152 {approx = true} : vector<8x1xf32> -> vector<8x1xf32>
    %154 = arith.truncf %150 : vector<8x8xf32> to vector<8x8xbf16>
    %155 = vector.extract_strided_slice %21 {offsets = [0, 24], sizes = [8, 4], strides = [1, 1]} : vector<8x32xbf16> to vector<8x4xbf16>
    %cst_60 = arith.constant dense<0.000000e+00> : vector<8x4xf32>
    %156 = tpu.matmul %154, %155, %cst_60 {dimension_numbers = #tpu.dot_dimension_numbers<[1], [0], [0], [1], [0, 0, 1, 1], [], []>} : vector<8x8xbf16>, vector<8x4xbf16>, vector<8x4xf32> -> vector<8x4xf32>
    %157 = vector.broadcast %153 : vector<8x1xf32> to vector<8x4xf32>
    %158 = arith.mulf %156, %157 : vector<8x4xf32>
    %159 = arith.truncf %158 : vector<8x4xf32> to vector<8x4xbf16>
    %c24 = arith.constant 24 : index
    %c0_61 = arith.constant 0 : index
    %160 = vector.load %arg4[%c24, %c0_61] : memref<32x32xbf16, #tpu.memory_space<vmem>>, vector<4x32xbf16>
    %cst_62 = arith.constant dense<0.000000e+00> : vector<8x32xf32>
    %161 = tpu.matmul %159, %160, %cst_62 {dimension_numbers = #tpu.dot_dimension_numbers<[1], [0], [0], [1], [0, 0, 1, 1], [], []>} : vector<8x4xbf16>, vector<4x32xbf16>, vector<8x32xf32> -> vector<8x32xf32>
    %162 = arith.addf %142, %161 : vector<8x32xf32>
    %163 = vector.extract_strided_slice %19 {offsets = [0, 28], sizes = [8, 4], strides = [1, 1]} : vector<8x32xbf16> to vector<8x4xbf16>
    %164 = vector.extract_strided_slice %20 {offsets = [0, 28], sizes = [8, 4], strides = [1, 1]} : vector<8x32xbf16> to vector<8x4xbf16>
    %cst_63 = arith.constant dense<0.000000e+00> : vector<8x8xf32>
    %165 = tpu.matmul %163, %164, %cst_63 {dimension_numbers = #tpu.dot_dimension_numbers<[1], [1], [0], [0], [0, 0, 1, 0], [], []>} : vector<8x4xbf16>, vector<8x4xbf16>, vector<8x8xf32> -> vector<8x8xf32>
    %cst_64 = arith.constant dense<0xFF800000> : vector<8xf32>
    %166 = vector.multi_reduction <maximumf>, %165, %cst_64 [1] : vector<8x8xf32> to vector<8xf32>
    %167 = vector.shape_cast %166 : vector<8xf32> to vector<8x1xf32>
    %168 = vector.broadcast %167 : vector<8x1xf32> to vector<8x8xf32>
    %169 = arith.subf %165, %168 : vector<8x8xf32>
    %170 = math.exp %169 : vector<8x8xf32>
    %cst_65 = arith.constant dense<0.000000e+00> : vector<8xf32>
    %171 = vector.multi_reduction <add>, %170, %cst_65 [1] : vector<8x8xf32> to vector<8xf32>
    %172 = vector.shape_cast %171 : vector<8xf32> to vector<8x1xf32>
    %173 = tpu.reciprocal %172 {approx = true} : vector<8x1xf32> -> vector<8x1xf32>
    %174 = arith.truncf %170 : vector<8x8xf32> to vector<8x8xbf16>
    %175 = vector.extract_strided_slice %21 {offsets = [0, 28], sizes = [8, 4], strides = [1, 1]} : vector<8x32xbf16> to vector<8x4xbf16>
    %cst_66 = arith.constant dense<0.000000e+00> : vector<8x4xf32>
    %176 = tpu.matmul %174, %175, %cst_66 {dimension_numbers = #tpu.dot_dimension_numbers<[1], [0], [0], [1], [0, 0, 1, 1], [], []>} : vector<8x8xbf16>, vector<8x4xbf16>, vector<8x4xf32> -> vector<8x4xf32>
    %177 = vector.broadcast %173 : vector<8x1xf32> to vector<8x4xf32>
    %178 = arith.mulf %176, %177 : vector<8x4xf32>
    %179 = arith.truncf %178 : vector<8x4xf32> to vector<8x4xbf16>
    %c28 = arith.constant 28 : index
    %c0_67 = arith.constant 0 : index
    %180 = vector.load %arg4[%c28, %c0_67] : memref<32x32xbf16, #tpu.memory_space<vmem>>, vector<4x32xbf16>
    %cst_68 = arith.constant dense<0.000000e+00> : vector<8x32xf32>
    %181 = tpu.matmul %179, %180, %cst_68 {dimension_numbers = #tpu.dot_dimension_numbers<[1], [0], [0], [1], [0, 0, 1, 1], [], []>} : vector<8x4xbf16>, vector<4x32xbf16>, vector<8x32xf32> -> vector<8x32xf32>
    %182 = arith.addf %162, %181 : vector<8x32xf32>
    %c0_69 = arith.constant 0 : index
    %c0_70 = arith.constant 0 : index
    %183 = vector.load %arg5[%c0_69, %c0_70] : memref<1x32xf32, #tpu.memory_space<vmem>>, vector<1x32xf32>
    %184 = vector.broadcast %183 : vector<1x32xf32> to vector<8x32xf32>
    %185 = arith.addf %182, %184 : vector<8x32xf32>
    %186 = arith.truncf %185 : vector<8x32xf32> to vector<8x32xbf16>
    %c0_71 = arith.constant 0 : index
    %c0_72 = arith.constant 0 : index
    %187 = vector.load %arg6[%c0_71, %c0_72] : memref<32x128xbf16, #tpu.memory_space<vmem>>, vector<32x128xbf16>
    %cst_73 = arith.constant dense<0.000000e+00> : vector<8x128xf32>
    %188 = tpu.matmul %186, %187, %cst_73 {dimension_numbers = #tpu.dot_dimension_numbers<[1], [0], [0], [1], [0, 0, 1, 1], [], []>} : vector<8x32xbf16>, vector<32x128xbf16>, vector<8x128xf32> -> vector<8x128xf32>
    %c0_74 = arith.constant 0 : index
    %c0_75 = arith.constant 0 : index
    %189 = vector.load %arg7[%c0_74, %c0_75] : memref<1x128xf32, #tpu.memory_space<vmem>>, vector<1x128xf32>
    %190 = vector.broadcast %189 : vector<1x128xf32> to vector<8x128xf32>
    %191 = arith.addf %188, %190 : vector<8x128xf32>
    %cst_76 = arith.constant 5.000000e-01 : f32
    %192 = vector.broadcast %cst_76 : f32 to vector<8x128xf32>
    %193 = arith.mulf %192, %191 : vector<8x128xf32>
    %194 = arith.mulf %191, %191 : vector<8x128xf32>
    %195 = arith.mulf %194, %191 : vector<8x128xf32>
    %cst_77 = arith.constant 4.471500e-02 : f32
    %196 = vector.broadcast %cst_77 : f32 to vector<8x128xf32>
    %197 = arith.mulf %196, %195 : vector<8x128xf32>
    %198 = arith.addf %191, %197 : vector<8x128xf32>
    %cst_78 = arith.constant 0.797884583 : f32
    %199 = vector.broadcast %cst_78 : f32 to vector<8x128xf32>
    %200 = arith.mulf %199, %198 : vector<8x128xf32>
    %201 = math.tanh %200 : vector<8x128xf32>
    %cst_79 = arith.constant 1.000000e+00 : f32
    %202 = vector.broadcast %cst_79 : f32 to vector<8x128xf32>
    %203 = arith.addf %202, %201 : vector<8x128xf32>
    %204 = arith.mulf %193, %203 : vector<8x128xf32>
    %205 = arith.truncf %204 : vector<8x128xf32> to vector<8x128xbf16>
    %c0_80 = arith.constant 0 : index
    %c0_81 = arith.constant 0 : index
    %206 = vector.load %arg8[%c0_80, %c0_81] : memref<128x64xbf16, #tpu.memory_space<vmem>>, vector<128x64xbf16>
    %cst_82 = arith.constant dense<0.000000e+00> : vector<8x64xf32>
    %207 = tpu.matmul %205, %206, %cst_82 {dimension_numbers = #tpu.dot_dimension_numbers<[1], [0], [0], [1], [0, 0, 1, 1], [], []>} : vector<8x128xbf16>, vector<128x64xbf16>, vector<8x64xf32> -> vector<8x64xf32>
    %c0_83 = arith.constant 0 : index
    %c0_84 = arith.constant 0 : index
    %208 = vector.load %arg9[%c0_83, %c0_84] : memref<1x64xf32, #tpu.memory_space<vmem>>, vector<1x64xf32>
    %209 = vector.broadcast %208 : vector<1x64xf32> to vector<8x64xf32>
    %210 = arith.addf %207, %209 : vector<8x64xf32>
    %cst_85 = arith.constant 5.000000e-01 : f32
    %211 = vector.broadcast %cst_85 : f32 to vector<8x64xf32>
    %212 = arith.mulf %211, %210 : vector<8x64xf32>
    %213 = arith.mulf %210, %210 : vector<8x64xf32>
    %214 = arith.mulf %213, %210 : vector<8x64xf32>
    %cst_86 = arith.constant 4.471500e-02 : f32
    %215 = vector.broadcast %cst_86 : f32 to vector<8x64xf32>
    %216 = arith.mulf %215, %214 : vector<8x64xf32>
    %217 = arith.addf %210, %216 : vector<8x64xf32>
    %cst_87 = arith.constant 0.797884583 : f32
    %218 = vector.broadcast %cst_87 : f32 to vector<8x64xf32>
    %219 = arith.mulf %218, %217 : vector<8x64xf32>
    %220 = math.tanh %219 : vector<8x64xf32>
    %cst_88 = arith.constant 1.000000e+00 : f32
    %221 = vector.broadcast %cst_88 : f32 to vector<8x64xf32>
    %222 = arith.addf %221, %220 : vector<8x64xf32>
    %223 = arith.mulf %212, %222 : vector<8x64xf32>
    %224 = arith.truncf %223 : vector<8x64xf32> to vector<8x64xbf16>
    %c0_89 = arith.constant 0 : index
    %c0_90 = arith.constant 0 : index
    %225 = vector.load %arg10[%c0_89, %c0_90] : memref<64x32xbf16, #tpu.memory_space<vmem>>, vector<64x32xbf16>
    %cst_91 = arith.constant dense<0.000000e+00> : vector<8x32xf32>
    %226 = tpu.matmul %224, %225, %cst_91 {dimension_numbers = #tpu.dot_dimension_numbers<[1], [0], [0], [1], [0, 0, 1, 1], [], []>} : vector<8x64xbf16>, vector<64x32xbf16>, vector<8x32xf32> -> vector<8x32xf32>
    %c0_92 = arith.constant 0 : index
    %c0_93 = arith.constant 0 : index
    %227 = vector.load %arg11[%c0_92, %c0_93] : memref<1x32xf32, #tpu.memory_space<vmem>>, vector<1x32xf32>
    %228 = vector.broadcast %227 : vector<1x32xf32> to vector<8x32xf32>
    %229 = arith.addf %226, %228 : vector<8x32xf32>
    %c0_94 = arith.constant 0 : index
    %c0_95 = arith.constant 0 : index
    %c0_96 = arith.constant 0 : index
    %230 = vector.load %arg1[%c0_94, %c0_95, %c0_96] : memref<1x8x32xf32, #tpu.memory_space<vmem>>, vector<1x8x32xf32>
    %231 = vector.shape_cast %230 : vector<1x8x32xf32> to vector<8x32xf32>
    %232 = arith.addf %229, %231 : vector<8x32xf32>
    %c0_97 = arith.constant 0 : index
    %c0_98 = arith.constant 0 : index
    %c0_99 = arith.constant 0 : index
    %233 = vector.load %arg12[%c0_97, %c0_98, %c0_99] : memref<1x8x32xf32, #tpu.memory_space<vmem>>, vector<1x8x32xf32>
    %234 = vector.shape_cast %233 : vector<1x8x32xf32> to vector<8x32xf32>
    %235 = vector.shape_cast %232 : vector<8x32xf32> to vector<1x8x32xf32>
    tpu.vector_store %arg12[%c0_97, %c0_98, %c0_99], %235 {strides = array<i32>} : memref<1x8x32xf32, #tpu.memory_space<vmem>>, vector<1x8x32xf32>,
    return
  }
  func.func @transform_0(%arg0: i32) -> (i32, i32, i32) {
    %c0_i32 = arith.constant 0 : i32
    %c0_i32_0 = arith.constant 0 : i32
    %c0_i32_1 = arith.constant 0 : i32
    return %arg0, %c0_i32, %c0_i32_0 : i32, i32, i32
  }
  func.func @transform_1(%arg0: i32) -> (i32, i32) {
    %c0_i32 = arith.constant 0 : i32
    %c0_i32_0 = arith.constant 0 : i32
    %c0_i32_1 = arith.constant 0 : i32
    return %c0_i32, %c0_i32_0 : i32, i32
  }
  func.func @transform_2(%arg0: i32) -> (i32, i32) {
    %c0_i32 = arith.constant 0 : i32
    %c0_i32_0 = arith.constant 0 : i32
    %c0_i32_1 = arith.constant 0 : i32
    return %c0_i32, %c0_i32_0 : i32, i32
  }
  func.func @transform_3(%arg0: i32) -> (i32, i32) {
    %c0_i32 = arith.constant 0 : i32
    %c0_i32_0 = arith.constant 0 : i32
    %c0_i32_1 = arith.constant 0 : i32
    return %c0_i32, %c0_i32_0 : i32, i32
  }
  func.func @transform_4(%arg0: i32) -> (i32, i32) {
    %c0_i32 = arith.constant 0 : i32
    %c0_i32_0 = arith.constant 0 : i32
    %c0_i32_1 = arith.constant 0 : i32
    return %c0_i32, %c0_i32_0 : i32, i32
  }
  func.func @transform_5(%arg0: i32) -> (i32, i32) {
    %c0_i32 = arith.constant 0 : i32
    %c0_i32_0 = arith.constant 0 : i32
    %c0_i32_1 = arith.constant 0 : i32
    return %c0_i32, %c0_i32_0 : i32, i32
  }
  func.func @transform_6(%arg0: i32) -> (i32, i32) {
    %c0_i32 = arith.constant 0 : i32
    %c0_i32_0 = arith.constant 0 : i32
    %c0_i32_1 = arith.constant 0 : i32
    return %c0_i32, %c0_i32_0 : i32, i32
  }
  func.func @transform_7(%arg0: i32) -> (i32, i32) {
    %c0_i32 = arith.constant 0 : i32
    %c0_i32_0 = arith.constant 0 : i32
    %c0_i32_1 = arith.constant 0 : i32
    return %c0_i32, %c0_i32_0 : i32, i32
  }
  func.func @transform_8(%arg0: i32) -> (i32, i32) {
    %c0_i32 = arith.constant 0 : i32
    %c0_i32_0 = arith.constant 0 : i32
    %c0_i32_1 = arith.constant 0 : i32
    return %c0_i32, %c0_i32_0 : i32, i32
  }
  func.func @transform_9(%arg0: i32) -> (i32, i32) {
    %c0_i32 = arith.constant 0 : i32
    %c0_i32_0 = arith.constant 0 : i32
    %c0_i32_1 = arith.constant 0 : i32
    return %c0_i32, %c0_i32_0 : i32, i32
  }
  func.func @transform_10(%arg0: i32) -> (i32, i32) {
    %c0_i32 = arith.constant 0 : i32
    %c0_i32_0 = arith.constant 0 : i32
    %c0_i32_1 = arith.constant 0 : i32
    return %c0_i32, %c0_i32_0 : i32, i32
  }
  func.func @transform_11(%arg0: i32) -> (i32, i32, i32) {
    %c0_i32 = arith.constant 0 : i32
    %c0_i32_0 = arith.constant 0 : i32
    %c0_i32_1 = arith.constant 0 : i32
    return %arg0, %c0_i32, %c0_i32_0 : i32, i32, i32
  }
}

module attributes {stable_mosaic.version = 11 : i64} {
  func.func @emergence_core_kernel(%arg0: i32, %arg1: memref<1x8x32xf32, #tpu.memory_space<vmem>>, %arg2: memref<32x96xbf16, #tpu.memory_space<vmem>>, %arg3: memref<1x96xf32, #tpu.memory_space<vmem>>, %arg4: memref<32x32xbf16, #tpu.memory_space<vmem>>, %arg5: memref<1x32xf32, #tpu.memory_space<vmem>>, %arg6: memref<32x128xbf16, #tpu.memory_space<vmem>>, %arg7: memref<1x128xf32, #tpu.memory_space<vmem>>, %arg8: memref<128x64xbf16, #tpu.memory_space<vmem>>, %arg9: memref<1x64xf32, #tpu.memory_space<vmem>>, %arg10: memref<64x32xbf16, #tpu.memory_space<vmem>>, %arg11: memref<1x32xf32, #tpu.memory_space<vmem>>, %arg12: memref<1x8x32xf32, #tpu.memory_space<vmem>>, %arg13: memref<8x32xbf16, #tpu.memory_space<vmem>>, %arg14: memref<8x32xbf16, #tpu.memory_space<vmem>>, %arg15: memref<8x32xbf16, #tpu.memory_space<vmem>>) attributes {dimension_semantics = [#tpu.dimension_semantics<parallel>], iteration_bounds = array<i64: 2>, scalar_prefetch = 0 : i64, scratch_operands = 3 : i64, tpu.core_type = #tpu.core_type<tc>, window_params = [{transform_indices = @transform_0, window_bounds = array<i64: 1, 8, 32>}, {pipeline_mode = #tpu.pipeline_mode<synchronous>, transform_indices = @transform_1, window_bounds = array<i64: 32, 96>}, {pipeline_mode = #tpu.pipeline_mode<synchronous>, transform_indices = @transform_2, window_bounds = array<i64: 1, 96>}, {pipeline_mode = #tpu.pipeline_mode<synchronous>, transform_indices = @transform_3, window_bounds = array<i64: 32, 32>}, {pipeline_mode = #tpu.pipeline_mode<synchronous>, transform_indices = @transform_4, window_bounds = array<i64: 1, 32>}, {pipeline_mode = #tpu.pipeline_mode<synchronous>, transform_indices = @transform_5, window_bounds = array<i64: 32, 128>}, {pipeline_mode = #tpu.pipeline_mode<synchronous>, transform_indices = @transform_6, window_bounds = array<i64: 1, 128>}, {pipeline_mode = #tpu.pipeline_mode<synchronous>, transform_indices = @transform_7, window_bounds = array<i64: 128, 64>}, {pipeline_mode = #tpu.pipeline_mode<synchronous>, transform_indices = @transform_8, window_bounds = array<i64: 1, 64>}, {pipeline_mode = #tpu.pipeline_mode<synchronous>, transform_indices = @transform_9, window_bounds = array<i64: 64, 32>}, {pipeline_mode = #tpu.pipeline_mode<synchronous>, transform_indices = @transform_10, window_bounds = array<i64: 1, 32>}, {transform_indices = @transform_11, window_bounds = array<i64: 1, 8, 32>}]} {
    %c0 = arith.constant 0 : index
    %c0_0 = arith.constant 0 : index
    %c0_1 = arith.constant 0 : index
    %0 = vector.load %arg1[%c0, %c0_0, %c0_1] : memref<1x8x32xf32, #tpu.memory_space<vmem>>, vector<1x8x32xf32>
    %1 = vector.shape_cast %0 : vector<1x8x32xf32> to vector<8x32xf32>
    %2 = arith.truncf %1 : vector<8x32xf32> to vector<8x32xbf16>
    %c0_2 = arith.constant 0 : index
    %c0_3 = arith.constant 0 : index
    %3 = vector.load %arg2[%c0_2, %c0_3] : memref<32x96xbf16, #tpu.memory_space<vmem>>, vector<32x96xbf16>
    %cst = arith.constant dense<0.000000e+00> : vector<8x96xf32>
    %4 = tpu.matmul %2, %3, %cst {dimension_numbers = #tpu.dot_dimension_numbers<[1], [0], [0], [1], [0, 0, 1, 1], [], []>} : vector<8x32xbf16>, vector<32x96xbf16>, vector<8x96xf32> -> vector<8x96xf32>
    %c0_4 = arith.constant 0 : index
    %c0_5 = arith.constant 0 : index
    %5 = vector.load %arg3[%c0_4, %c0_5] : memref<1x96xf32, #tpu.memory_space<vmem>>, vector<1x96xf32>
    %6 = vector.broadcast %5 : vector<1x96xf32> to vector<8x96xf32>
    %7 = arith.addf %4, %6 : vector<8x96xf32>
    %8 = vector.extract_strided_slice %7 {offsets = [0, 0], sizes = [8, 32], strides = [1, 1]} : vector<8x96xf32> to vector<8x32xf32>
    %cst_6 = arith.constant 5.000000e-01 : f32
    %9 = vector.broadcast %cst_6 : f32 to vector<8x32xf32>
    %10 = arith.mulf %8, %9 : vector<8x32xf32>
    %11 = arith.truncf %10 : vector<8x32xf32> to vector<8x32xbf16>
    %c0_7 = arith.constant 0 : index
    %c0_8 = arith.constant 0 : index
    %12 = vector.load %arg13[%c0_7, %c0_8] : memref<8x32xbf16, #tpu.memory_space<vmem>>, vector<8x32xbf16>
    tpu.vector_store %arg13[%c0_7, %c0_8], %11 {strides = array<i32>} : memref<8x32xbf16, #tpu.memory_space<vmem>>, vector<8x32xbf16>,
    %13 = vector.extract_strided_slice %7 {offsets = [0, 32], sizes = [8, 32], strides = [1, 1]} : vector<8x96xf32> to vector<8x32xf32>
    %14 = arith.truncf %13 : vector<8x32xf32> to vector<8x32xbf16>
    %c0_9 = arith.constant 0 : index
    %c0_10 = arith.constant 0 : index
    %15 = vector.load %arg14[%c0_9, %c0_10] : memref<8x32xbf16, #tpu.memory_space<vmem>>, vector<8x32xbf16>
    tpu.vector_store %arg14[%c0_9, %c0_10], %14 {strides = array<i32>} : memref<8x32xbf16, #tpu.memory_space<vmem>>, vector<8x32xbf16>,
    %16 = vector.extract_strided_slice %7 {offsets = [0, 64], sizes = [8, 32], strides = [1, 1]} : vector<8x96xf32> to vector<8x32xf32>
    %17 = arith.truncf %16 : vector<8x32xf32> to vector<8x32xbf16>
    %c0_11 = arith.constant 0 : index
    %c0_12 = arith.constant 0 : index
    %18 = vector.load %arg15[%c0_11, %c0_12] : memref<8x32xbf16, #tpu.memory_space<vmem>>, vector<8x32xbf16>
    tpu.vector_store %arg15[%c0_11, %c0_12], %17 {strides = array<i32>} : memref<8x32xbf16, #tpu.memory_space<vmem>>, vector<8x32xbf16>,
    %c0_13 = arith.constant 0 : index
    %c0_14 = arith.constant 0 : index
    %19 = vector.load %arg13[%c0_13, %c0_14] : memref<8x32xbf16, #tpu.memory_space<vmem>>, vector<8x32xbf16>
    %c0_15 = arith.constant 0 : index
    %c0_16 = arith.constant 0 : index
    %20 = vector.load %arg14[%c0_15, %c0_16] : memref<8x32xbf16, #tpu.memory_space<vmem>>, vector<8x32xbf16>
    %c0_17 = arith.constant 0 : index
    %c0_18 = arith.constant 0 : index
    %21 = vector.load %arg15[%c0_17, %c0_18] : memref<8x32xbf16, #tpu.memory_space<vmem>>, vector<8x32xbf16>
    %cst_19 = arith.constant 0.000000e+00 : f32
    %22 = vector.broadcast %cst_19 : f32 to vector<8x32xf32>
    %23 = vector.extract_strided_slice %19 {offsets = [0, 0], sizes = [8, 4], strides = [1, 1]} : vector<8x32xbf16> to vector<8x4xbf16>
    %24 = vector.extract_strided_slice %20 {offsets = [0, 0], sizes = [8, 4], strides = [1, 1]} : vector<8x32xbf16> to vector<8x4xbf16>
    %cst_20 = arith.constant dense<0.000000e+00> : vector<8x8xf32>
    %25 = tpu.matmul %23, %24, %cst_20 {dimension_numbers = #tpu.dot_dimension_numbers<[1], [1], [0], [0], [0, 0, 1, 0], [], []>} : vector<8x4xbf16>, vector<8x4xbf16>, vector<8x8xf32> -> vector<8x8xf32>
    %cst_21 = arith.constant dense<0xFF800000> : vector<8xf32>
    %26 = vector.multi_reduction <maximumf>, %25, %cst_21 [1] : vector<8x8xf32> to vector<8xf32>
    %27 = vector.shape_cast %26 : vector<8xf32> to vector<8x1xf32>
    %28 = vector.broadcast %27 : vector<8x1xf32> to vector<8x8xf32>
    %29 = arith.subf %25, %28 : vector<8x8xf32>
    %30 = math.exp %29 : vector<8x8xf32>
    %cst_22 = arith.constant dense<0.000000e+00> : vector<8xf32>
    %31 = vector.multi_reduction <add>, %30, %cst_22 [1] : vector<8x8xf32> to vector<8xf32>
    %32 = vector.shape_cast %31 : vector<8xf32> to vector<8x1xf32>
    %33 = tpu.reciprocal %32 {approx = true} : vector<8x1xf32> -> vector<8x1xf32>
    %34 = arith.truncf %30 : vector<8x8xf32> to vector<8x8xbf16>
    %35 = vector.extract_strided_slice %21 {offsets = [0, 0], sizes = [8, 4], strides = [1, 1]} : vector<8x32xbf16> to vector<8x4xbf16>
    %cst_23 = arith.constant dense<0.000000e+00> : vector<8x4xf32>
    %36 = tpu.matmul %34, %35, %cst_23 {dimension_numbers = #tpu.dot_dimension_numbers<[1], [0], [0], [1], [0, 0, 1, 1], [], []>} : vector<8x8xbf16>, vector<8x4xbf16>, vector<8x4xf32> -> vector<8x4xf32>
    %37 = vector.broadcast %33 : vector<8x1xf32> to vector<8x4xf32>
    %38 = arith.mulf %36, %37 : vector<8x4xf32>
    %39 = arith.truncf %38 : vector<8x4xf32> to vector<8x4xbf16>
    %c0_24 = arith.constant 0 : index
    %c0_25 = arith.constant 0 : index
    %40 = vector.load %arg4[%c0_24, %c0_25] : memref<32x32xbf16, #tpu.memory_space<vmem>>, vector<4x32xbf16>
    %cst_26 = arith.constant dense<0.000000e+00> : vector<8x32xf32>
    %41 = tpu.matmul %39, %40, %cst_26 {dimension_numbers = #tpu.dot_dimension_numbers<[1], [0], [0], [1], [0, 0, 1, 1], [], []>} : vector<8x4xbf16>, vector<4x32xbf16>, vector<8x32xf32> -> vector<8x32xf32>
    %42 = arith.addf %22, %41 : vector<8x32xf32>
    %43 = vector.extract_strided_slice %19 {offsets = [0, 4], sizes = [8, 4], strides = [1, 1]} : vector<8x32xbf16> to vector<8x4xbf16>
    %44 = vector.extract_strided_slice %20 {offsets = [0, 4], sizes = [8, 4], strides = [1, 1]} : vector<8x32xbf16> to vector<8x4xbf16>
    %cst_27 = arith.constant dense<0.000000e+00> : vector<8x8xf32>
    %45 = tpu.matmul %43, %44, %cst_27 {dimension_numbers = #tpu.dot_dimension_numbers<[1], [1], [0], [0], [0, 0, 1, 0], [], []>} : vector<8x4xbf16>, vector<8x4xbf16>, vector<8x8xf32> -> vector<8x8xf32>
    %cst_28 = arith.constant dense<0xFF800000> : vector<8xf32>
    %46 = vector.multi_reduction <maximumf>, %45, %cst_28 [1] : vector<8x8xf32> to vector<8xf32>
    %47 = vector.shape_cast %46 : vector<8xf32> to vector<8x1xf32>
    %48 = vector.broadcast %47 : vector<8x1xf32> to vector<8x8xf32>
    %49 = arith.subf %45, %48 : vector<8x8xf32>
    %50 = math.exp %49 : vector<8x8xf32>
    %cst_29 = arith.constant dense<0.000000e+00> : vector<8xf32>
    %51 = vector.multi_reduction <add>, %50, %cst_29 [1] : vector<8x8xf32> to vector<8xf32>
    %52 = vector.shape_cast %51 : vector<8xf32> to vector<8x1xf32>
    %53 = tpu.reciprocal %52 {approx = true} : vector<8x1xf32> -> vector<8x1xf32>
    %54 = arith.truncf %50 : vector<8x8xf32> to vector<8x8xbf16>
    %55 = vector.extract_strided_slice %21 {offsets = [0, 4], sizes = [8, 4], strides = [1, 1]} : vector<8x32xbf16> to vector<8x4xbf16>
    %cst_30 = arith.constant dense<0.000000e+00> : vector<8x4xf32>
    %56 = tpu.matmul %54, %55, %cst_30 {dimension_numbers = #tpu.dot_dimension_numbers<[1], [0], [0], [1], [0, 0, 1, 1], [], []>} : vector<8x8xbf16>, vector<8x4xbf16>, vector<8x4xf32> -> vector<8x4xf32>
    %57 = vector.broadcast %53 : vector<8x1xf32> to vector<8x4xf32>
    %58 = arith.mulf %56, %57 : vector<8x4xf32>
    %59 = arith.truncf %58 : vector<8x4xf32> to vector<8x4xbf16>
    %c4 = arith.constant 4 : index
    %c0_31 = arith.constant 0 : index
    %60 = vector.load %arg4[%c4, %c0_31] : memref<32x32xbf16, #tpu.memory_space<vmem>>, vector<4x32xbf16>
    %cst_32 = arith.constant dense<0.000000e+00> : vector<8x32xf32>
    %61 = tpu.matmul %59, %60, %cst_32 {dimension_numbers = #tpu.dot_dimension_numbers<[1], [0], [0], [1], [0, 0, 1, 1], [], []>} : vector<8x4xbf16>, vector<4x32xbf16>, vector<8x32xf32> -> vector<8x32xf32>
    %62 = arith.addf %42, %61 : vector<8x32xf32>
    %63 = vector.extract_strided_slice %19 {offsets = [0, 8], sizes = [8, 4], strides = [1, 1]} : vector<8x32xbf16> to vector<8x4xbf16>
    %64 = vector.extract_strided_slice %20 {offsets = [0, 8], sizes = [8, 4], strides = [1, 1]} : vector<8x32xbf16> to vector<8x4xbf16>
    %cst_33 = arith.constant dense<0.000000e+00> : vector<8x8xf32>
    %65 = tpu.matmul %63, %64, %cst_33 {dimension_numbers = #tpu.dot_dimension_numbers<[1], [1], [0], [0], [0, 0, 1, 0], [], []>} : vector<8x4xbf16>, vector<8x4xbf16>, vector<8x8xf32> -> vector<8x8xf32>
    %cst_34 = arith.constant dense<0xFF800000> : vector<8xf32>
    %66 = vector.multi_reduction <maximumf>, %65, %cst_34 [1] : vector<8x8xf32> to vector<8xf32>
    %67 = vector.shape_cast %66 : vector<8xf32> to vector<8x1xf32>
    %68 = vector.broadcast %67 : vector<8x1xf32> to vector<8x8xf32>
    %69 = arith.subf %65, %68 : vector<8x8xf32>
    %70 = math.exp %69 : vector<8x8xf32>
    %cst_35 = arith.constant dense<0.000000e+00> : vector<8xf32>
    %71 = vector.multi_reduction <add>, %70, %cst_35 [1] : vector<8x8xf32> to vector<8xf32>
    %72 = vector.shape_cast %71 : vector<8xf32> to vector<8x1xf32>
    %73 = tpu.reciprocal %72 {approx = true} : vector<8x1xf32> -> vector<8x1xf32>
    %74 = arith.truncf %70 : vector<8x8xf32> to vector<8x8xbf16>
    %75 = vector.extract_strided_slice %21 {offsets = [0, 8], sizes = [8, 4], strides = [1, 1]} : vector<8x32xbf16> to vector<8x4xbf16>
    %cst_36 = arith.constant dense<0.000000e+00> : vector<8x4xf32>
    %76 = tpu.matmul %74, %75, %cst_36 {dimension_numbers = #tpu.dot_dimension_numbers<[1], [0], [0], [1], [0, 0, 1, 1], [], []>} : vector<8x8xbf16>, vector<8x4xbf16>, vector<8x4xf32> -> vector<8x4xf32>
    %77 = vector.broadcast %73 : vector<8x1xf32> to vector<8x4xf32>
    %78 = arith.mulf %76, %77 : vector<8x4xf32>
    %79 = arith.truncf %78 : vector<8x4xf32> to vector<8x4xbf16>
    %c8 = arith.constant 8 : index
    %c0_37 = arith.constant 0 : index
    %80 = vector.load %arg4[%c8, %c0_37] : memref<32x32xbf16, #tpu.memory_space<vmem>>, vector<4x32xbf16>
    %cst_38 = arith.constant dense<0.000000e+00> : vector<8x32xf32>
    %81 = tpu.matmul %79, %80, %cst_38 {dimension_numbers = #tpu.dot_dimension_numbers<[1], [0], [0], [1], [0, 0, 1, 1], [], []>} : vector<8x4xbf16>, vector<4x32xbf16>, vector<8x32xf32> -> vector<8x32xf32>
    %82 = arith.addf %62, %81 : vector<8x32xf32>
    %83 = vector.extract_strided_slice %19 {offsets = [0, 12], sizes = [8, 4], strides = [1, 1]} : vector<8x32xbf16> to vector<8x4xbf16>
    %84 = vector.extract_strided_slice %20 {offsets = [0, 12], sizes = [8, 4], strides = [1, 1]} : vector<8x32xbf16> to vector<8x4xbf16>
    %cst_39 = arith.constant dense<0.000000e+00> : vector<8x8xf32>
    %85 = tpu.matmul %83, %84, %cst_39 {dimension_numbers = #tpu.dot_dimension_numbers<[1], [1], [0], [0], [0, 0, 1, 0], [], []>} : vector<8x4xbf16>, vector<8x4xbf16>, vector<8x8xf32> -> vector<8x8xf32>
    %cst_40 = arith.constant dense<0xFF800000> : vector<8xf32>
    %86 = vector.multi_reduction <maximumf>, %85, %cst_40 [1] : vector<8x8xf32> to vector<8xf32>
    %87 = vector.shape_cast %86 : vector<8xf32> to vector<8x1xf32>
    %88 = vector.broadcast %87 : vector<8x1xf32> to vector<8x8xf32>
    %89 = arith.subf %85, %88 : vector<8x8xf32>
    %90 = math.exp %89 : vector<8x8xf32>
    %cst_41 = arith.constant dense<0.000000e+00> : vector<8xf32>
    %91 = vector.multi_reduction <add>, %90, %cst_41 [1] : vector<8x8xf32> to vector<8xf32>
    %92 = vector.shape_cast %91 : vector<8xf32> to vector<8x1xf32>
    %93 = tpu.reciprocal %92 {approx = true} : vector<8x1xf32> -> vector<8x1xf32>
    %94 = arith.truncf %90 : vector<8x8xf32> to vector<8x8xbf16>
    %95 = vector.extract_strided_slice %21 {offsets = [0, 12], sizes = [8, 4], strides = [1, 1]} : vector<8x32xbf16> to vector<8x4xbf16>
    %cst_42 = arith.constant dense<0.000000e+00> : vector<8x4xf32>
    %96 = tpu.matmul %94, %95, %cst_42 {dimension_numbers = #tpu.dot_dimension_numbers<[1], [0], [0], [1], [0, 0, 1, 1], [], []>} : vector<8x8xbf16>, vector<8x4xbf16>, vector<8x4xf32> -> vector<8x4xf32>
    %97 = vector.broadcast %93 : vector<8x1xf32> to vector<8x4xf32>
    %98 = arith.mulf %96, %97 : vector<8x4xf32>
    %99 = arith.truncf %98 : vector<8x4xf32> to vector<8x4xbf16>
    %c12 = arith.constant 12 : index
    %c0_43 = arith.constant 0 : index
    %100 = vector.load %arg4[%c12, %c0_43] : memref<32x32xbf16, #tpu.memory_space<vmem>>, vector<4x32xbf16>
    %cst_44 = arith.constant dense<0.000000e+00> : vector<8x32xf32>
    %101 = tpu.matmul %99, %100, %cst_44 {dimension_numbers = #tpu.dot_dimension_numbers<[1], [0], [0], [1], [0, 0, 1, 1], [], []>} : vector<8x4xbf16>, vector<4x32xbf16>, vector<8x32xf32> -> vector<8x32xf32>
    %102 = arith.addf %82, %101 : vector<8x32xf32>
    %103 = vector.extract_strided_slice %19 {offsets = [0, 16], sizes = [8, 4], strides = [1, 1]} : vector<8x32xbf16> to vector<8x4xbf16>
    %104 = vector.extract_strided_slice %20 {offsets = [0, 16], sizes = [8, 4], strides = [1, 1]} : vector<8x32xbf16> to vector<8x4xbf16>
    %cst_45 = arith.constant dense<0.000000e+00> : vector<8x8xf32>
    %105 = tpu.matmul %103, %104, %cst_45 {dimension_numbers = #tpu.dot_dimension_numbers<[1], [1], [0], [0], [0, 0, 1, 0], [], []>} : vector<8x4xbf16>, vector<8x4xbf16>, vector<8x8xf32> -> vector<8x8xf32>
    %cst_46 = arith.constant dense<0xFF800000> : vector<8xf32>
    %106 = vector.multi_reduction <maximumf>, %105, %cst_46 [1] : vector<8x8xf32> to vector<8xf32>
    %107 = vector.shape_cast %106 : vector<8xf32> to vector<8x1xf32>
    %108 = vector.broadcast %107 : vector<8x1xf32> to vector<8x8xf32>
    %109 = arith.subf %105, %108 : vector<8x8xf32>
    %110 = math.exp %109 : vector<8x8xf32>
    %cst_47 = arith.constant dense<0.000000e+00> : vector<8xf32>
    %111 = vector.multi_reduction <add>, %110, %cst_47 [1] : vector<8x8xf32> to vector<8xf32>
    %112 = vector.shape_cast %111 : vector<8xf32> to vector<8x1xf32>
    %113 = tpu.reciprocal %112 {approx = true} : vector<8x1xf32> -> vector<8x1xf32>
    %114 = arith.truncf %110 : vector<8x8xf32> to vector<8x8xbf16>
    %115 = vector.extract_strided_slice %21 {offsets = [0, 16], sizes = [8, 4], strides = [1, 1]} : vector<8x32xbf16> to vector<8x4xbf16>
    %cst_48 = arith.constant dense<0.000000e+00> : vector<8x4xf32>
    %116 = tpu.matmul %114, %115, %cst_48 {dimension_numbers = #tpu.dot_dimension_numbers<[1], [0], [0], [1], [0, 0, 1, 1], [], []>} : vector<8x8xbf16>, vector<8x4xbf16>, vector<8x4xf32> -> vector<8x4xf32>
    %117 = vector.broadcast %113 : vector<8x1xf32> to vector<8x4xf32>
    %118 = arith.mulf %116, %117 : vector<8x4xf32>
    %119 = arith.truncf %118 : vector<8x4xf32> to vector<8x4xbf16>
    %c16 = arith.constant 16 : index
    %c0_49 = arith.constant 0 : index
    %120 = vector.load %arg4[%c16, %c0_49] : memref<32x32xbf16, #tpu.memory_space<vmem>>, vector<4x32xbf16>
    %cst_50 = arith.constant dense<0.000000e+00> : vector<8x32xf32>
    %121 = tpu.matmul %119, %120, %cst_50 {dimension_numbers = #tpu.dot_dimension_numbers<[1], [0], [0], [1], [0, 0, 1, 1], [], []>} : vector<8x4xbf16>, vector<4x32xbf16>, vector<8x32xf32> -> vector<8x32xf32>
    %122 = arith.addf %102, %121 : vector<8x32xf32>
    %123 = vector.extract_strided_slice %19 {offsets = [0, 20], sizes = [8, 4], strides = [1, 1]} : vector<8x32xbf16> to vector<8x4xbf16>
    %124 = vector.extract_strided_slice %20 {offsets = [0, 20], sizes = [8, 4], strides = [1, 1]} : vector<8x32xbf16> to vector<8x4xbf16>
    %cst_51 = arith.constant dense<0.000000e+00> : vector<8x8xf32>
    %125 = tpu.matmul %123, %124, %cst_51 {dimension_numbers = #tpu.dot_dimension_numbers<[1], [1], [0], [0], [0, 0, 1, 0], [], []>} : vector<8x4xbf16>, vector<8x4xbf16>, vector<8x8xf32> -> vector<8x8xf32>
    %cst_52 = arith.constant dense<0xFF800000> : vector<8xf32>
    %126 = vector.multi_reduction <maximumf>, %125, %cst_52 [1] : vector<8x8xf32> to vector<8xf32>
    %127 = vector.shape_cast %126 : vector<8xf32> to vector<8x1xf32>
    %128 = vector.broadcast %127 : vector<8x1xf32> to vector<8x8xf32>
    %129 = arith.subf %125, %128 : vector<8x8xf32>
    %130 = math.exp %129 : vector<8x8xf32>
    %cst_53 = arith.constant dense<0.000000e+00> : vector<8xf32>
    %131 = vector.multi_reduction <add>, %130, %cst_53 [1] : vector<8x8xf32> to vector<8xf32>
    %132 = vector.shape_cast %131 : vector<8xf32> to vector<8x1xf32>
    %133 = tpu.reciprocal %132 {approx = true} : vector<8x1xf32> -> vector<8x1xf32>
    %134 = arith.truncf %130 : vector<8x8xf32> to vector<8x8xbf16>
    %135 = vector.extract_strided_slice %21 {offsets = [0, 20], sizes = [8, 4], strides = [1, 1]} : vector<8x32xbf16> to vector<8x4xbf16>
    %cst_54 = arith.constant dense<0.000000e+00> : vector<8x4xf32>
    %136 = tpu.matmul %134, %135, %cst_54 {dimension_numbers = #tpu.dot_dimension_numbers<[1], [0], [0], [1], [0, 0, 1, 1], [], []>} : vector<8x8xbf16>, vector<8x4xbf16>, vector<8x4xf32> -> vector<8x4xf32>
    %137 = vector.broadcast %133 : vector<8x1xf32> to vector<8x4xf32>
    %138 = arith.mulf %136, %137 : vector<8x4xf32>
    %139 = arith.truncf %138 : vector<8x4xf32> to vector<8x4xbf16>
    %c20 = arith.constant 20 : index
    %c0_55 = arith.constant 0 : index
    %140 = vector.load %arg4[%c20, %c0_55] : memref<32x32xbf16, #tpu.memory_space<vmem>>, vector<4x32xbf16>
    %cst_56 = arith.constant dense<0.000000e+00> : vector<8x32xf32>
    %141 = tpu.matmul %139, %140, %cst_56 {dimension_numbers = #tpu.dot_dimension_numbers<[1], [0], [0], [1], [0, 0, 1, 1], [], []>} : vector<8x4xbf16>, vector<4x32xbf16>, vector<8x32xf32> -> vector<8x32xf32>
    %142 = arith.addf %122, %141 : vector<8x32xf32>
    %143 = vector.extract_strided_slice %19 {offsets = [0, 24], sizes = [8, 4], strides = [1, 1]} : vector<8x32xbf16> to vector<8x4xbf16>
    %144 = vector.extract_strided_slice %20 {offsets = [0, 24], sizes = [8, 4], strides = [1, 1]} : vector<8x32xbf16> to vector<8x4xbf16>
    %cst_57 = arith.constant dense<0.000000e+00> : vector<8x8xf32>
    %145 = tpu.matmul %143, %144, %cst_57 {dimension_numbers = #tpu.dot_dimension_numbers<[1], [1], [0], [0], [0, 0, 1, 0], [], []>} : vector<8x4xbf16>, vector<8x4xbf16>, vector<8x8xf32> -> vector<8x8xf32>
    %cst_58 = arith.constant dense<0xFF800000> : vector<8xf32>
    %146 = vector.multi_reduction <maximumf>, %145, %cst_58 [1] : vector<8x8xf32> to vector<8xf32>
    %147 = vector.shape_cast %146 : vector<8xf32> to vector<8x1xf32>
    %148 = vector.broadcast %147 : vector<8x1xf32> to vector<8x8xf32>
    %149 = arith.subf %145, %148 : vector<8x8xf32>
    %150 = math.exp %149 : vector<8x8xf32>
    %cst_59 = arith.constant dense<0.000000e+00> : vector<8xf32>
    %151 = vector.multi_reduction <add>, %150, %cst_59 [1] : vector<8x8xf32> to vector<8xf32>
    %152 = vector.shape_cast %151 : vector<8xf32> to vector<8x1xf32>
    %153 = tpu.reciprocal %152 {approx = true} : vector<8x1xf32> -> vector<8x1xf32>
    %154 = arith.truncf %150 : vector<8x8xf32> to vector<8x8xbf16>
    %155 = vector.extract_strided_slice %21 {offsets = [0, 24], sizes = [8, 4], strides = [1, 1]} : vector<8x32xbf16> to vector<8x4xbf16>
    %cst_60 = arith.constant dense<0.000000e+00> : vector<8x4xf32>
    %156 = tpu.matmul %154, %155, %cst_60 {dimension_numbers = #tpu.dot_dimension_numbers<[1], [0], [0], [1], [0, 0, 1, 1], [], []>} : vector<8x8xbf16>, vector<8x4xbf16>, vector<8x4xf32> -> vector<8x4xf32>
    %157 = vector.broadcast %153 : vector<8x1xf32> to vector<8x4xf32>
    %158 = arith.mulf %156, %157 : vector<8x4xf32>
    %159 = arith.truncf %158 : vector<8x4xf32> to vector<8x4xbf16>
    %c24 = arith.constant 24 : index
    %c0_61 = arith.constant 0 : index
    %160 = vector.load %arg4[%c24, %c0_61] : memref<32x32xbf16, #tpu.memory_space<vmem>>, vector<4x32xbf16>
    %cst_62 = arith.constant dense<0.000000e+00> : vector<8x32xf32>
    %161 = tpu.matmul %159, %160, %cst_62 {dimension_numbers = #tpu.dot_dimension_numbers<[1], [0], [0], [1], [0, 0, 1, 1], [], []>} : vector<8x4xbf16>, vector<4x32xbf16>, vector<8x32xf32> -> vector<8x32xf32>
    %162 = arith.addf %142, %161 : vector<8x32xf32>
    %163 = vector.extract_strided_slice %19 {offsets = [0, 28], sizes = [8, 4], strides = [1, 1]} : vector<8x32xbf16> to vector<8x4xbf16>
    %164 = vector.extract_strided_slice %20 {offsets = [0, 28], sizes = [8, 4], strides = [1, 1]} : vector<8x32xbf16> to vector<8x4xbf16>
    %cst_63 = arith.constant dense<0.000000e+00> : vector<8x8xf32>
    %165 = tpu.matmul %163, %164, %cst_63 {dimension_numbers = #tpu.dot_dimension_numbers<[1], [1], [0], [0], [0, 0, 1, 0], [], []>} : vector<8x4xbf16>, vector<8x4xbf16>, vector<8x8xf32> -> vector<8x8xf32>
    %cst_64 = arith.constant dense<0xFF800000> : vector<8xf32>
    %166 = vector.multi_reduction <maximumf>, %165, %cst_64 [1] : vector<8x8xf32> to vector<8xf32>
    %167 = vector.shape_cast %166 : vector<8xf32> to vector<8x1xf32>
    %168 = vector.broadcast %167 : vector<8x1xf32> to vector<8x8xf32>
    %169 = arith.subf %165, %168 : vector<8x8xf32>
    %170 = math.exp %169 : vector<8x8xf32>
    %cst_65 = arith.constant dense<0.000000e+00> : vector<8xf32>
    %171 = vector.multi_reduction <add>, %170, %cst_65 [1] : vector<8x8xf32> to vector<8xf32>
    %172 = vector.shape_cast %171 : vector<8xf32> to vector<8x1xf32>
    %173 = tpu.reciprocal %172 {approx = true} : vector<8x1xf32> -> vector<8x1xf32>
    %174 = arith.truncf %170 : vector<8x8xf32> to vector<8x8xbf16>
    %175 = vector.extract_strided_slice %21 {offsets = [0, 28], sizes = [8, 4], strides = [1, 1]} : vector<8x32xbf16> to vector<8x4xbf16>
    %cst_66 = arith.constant dense<0.000000e+00> : vector<8x4xf32>
    %176 = tpu.matmul %174, %175, %cst_66 {dimension_numbers = #tpu.dot_dimension_numbers<[1], [0], [0], [1], [0, 0, 1, 1], [], []>} : vector<8x8xbf16>, vector<8x4xbf16>, vector<8x4xf32> -> vector<8x4xf32>
    %177 = vector.broadcast %173 : vector<8x1xf32> to vector<8x4xf32>
    %178 = arith.mulf %176, %177 : vector<8x4xf32>
    %179 = arith.truncf %178 : vector<8x4xf32> to vector<8x4xbf16>
    %c28 = arith.constant 28 : index
    %c0_67 = arith.constant 0 : index
    %180 = vector.load %arg4[%c28, %c0_67] : memref<32x32xbf16, #tpu.memory_space<vmem>>, vector<4x32xbf16>
    %cst_68 = arith.constant dense<0.000000e+00> : vector<8x32xf32>
    %181 = tpu.matmul %179, %180, %cst_68 {dimension_numbers = #tpu.dot_dimension_numbers<[1], [0], [0], [1], [0, 0, 1, 1], [], []>} : vector<8x4xbf16>, vector<4x32xbf16>, vector<8x32xf32> -> vector<8x32xf32>
    %182 = arith.addf %162, %181 : vector<8x32xf32>
    %c0_69 = arith.constant 0 : index
    %c0_70 = arith.constant 0 : index
    %183 = vector.load %arg5[%c0_69, %c0_70] : memref<1x32xf32, #tpu.memory_space<vmem>>, vector<1x32xf32>
    %184 = vector.broadcast %183 : vector<1x32xf32> to vector<8x32xf32>
    %185 = arith.addf %182, %184 : vector<8x32xf32>
    %186 = arith.truncf %185 : vector<8x32xf32> to vector<8x32xbf16>
    %c0_71 = arith.constant 0 : index
    %c0_72 = arith.constant 0 : index
    %187 = vector.load %arg6[%c0_71, %c0_72] : memref<32x128xbf16, #tpu.memory_space<vmem>>, vector<32x128xbf16>
    %cst_73 = arith.constant dense<0.000000e+00> : vector<8x128xf32>
    %188 = tpu.matmul %186, %187, %cst_73 {dimension_numbers = #tpu.dot_dimension_numbers<[1], [0], [0], [1], [0, 0, 1, 1], [], []>} : vector<8x32xbf16>, vector<32x128xbf16>, vector<8x128xf32> -> vector<8x128xf32>
    %c0_74 = arith.constant 0 : index
    %c0_75 = arith.constant 0 : index
    %189 = vector.load %arg7[%c0_74, %c0_75] : memref<1x128xf32, #tpu.memory_space<vmem>>, vector<1x128xf32>
    %190 = vector.broadcast %189 : vector<1x128xf32> to vector<8x128xf32>
    %191 = arith.addf %188, %190 : vector<8x128xf32>
    %cst_76 = arith.constant 5.000000e-01 : f32
    %192 = vector.broadcast %cst_76 : f32 to vector<8x128xf32>
    %193 = arith.mulf %192, %191 : vector<8x128xf32>
    %194 = arith.mulf %191, %191 : vector<8x128xf32>
    %195 = arith.mulf %194, %191 : vector<8x128xf32>
    %cst_77 = arith.constant 4.471500e-02 : f32
    %196 = vector.broadcast %cst_77 : f32 to vector<8x128xf32>
    %197 = arith.mulf %196, %195 : vector<8x128xf32>
    %198 = arith.addf %191, %197 : vector<8x128xf32>
    %cst_78 = arith.constant 0.797884583 : f32
    %199 = vector.broadcast %cst_78 : f32 to vector<8x128xf32>
    %200 = arith.mulf %199, %198 : vector<8x128xf32>
    %201 = math.tanh %200 : vector<8x128xf32>
    %cst_79 = arith.constant 1.000000e+00 : f32
    %202 = vector.broadcast %cst_79 : f32 to vector<8x128xf32>
    %203 = arith.addf %202, %201 : vector<8x128xf32>
    %204 = arith.mulf %193, %203 : vector<8x128xf32>
    %205 = arith.truncf %204 : vector<8x128xf32> to vector<8x128xbf16>
    %c0_80 = arith.constant 0 : index
    %c0_81 = arith.constant 0 : index
    %206 = vector.load %arg8[%c0_80, %c0_81] : memref<128x64xbf16, #tpu.memory_space<vmem>>, vector<128x64xbf16>
    %cst_82 = arith.constant dense<0.000000e+00> : vector<8x64xf32>
    %207 = tpu.matmul %205, %206, %cst_82 {dimension_numbers = #tpu.dot_dimension_numbers<[1], [0], [0], [1], [0, 0, 1, 1], [], []>} : vector<8x128xbf16>, vector<128x64xbf16>, vector<8x64xf32> -> vector<8x64xf32>
    %c0_83 = arith.constant 0 : index
    %c0_84 = arith.constant 0 : index
    %208 = vector.load %arg9[%c0_83, %c0_84] : memref<1x64xf32, #tpu.memory_space<vmem>>, vector<1x64xf32>
    %209 = vector.broadcast %208 : vector<1x64xf32> to vector<8x64xf32>
    %210 = arith.addf %207, %209 : vector<8x64xf32>
    %cst_85 = arith.constant 5.000000e-01 : f32
    %211 = vector.broadcast %cst_85 : f32 to vector<8x64xf32>
    %212 = arith.mulf %211, %210 : vector<8x64xf32>
    %213 = arith.mulf %210, %210 : vector<8x64xf32>
    %214 = arith.mulf %213, %210 : vector<8x64xf32>
    %cst_86 = arith.constant 4.471500e-02 : f32
    %215 = vector.broadcast %cst_86 : f32 to vector<8x64xf32>
    %216 = arith.mulf %215, %214 : vector<8x64xf32>
    %217 = arith.addf %210, %216 : vector<8x64xf32>
    %cst_87 = arith.constant 0.797884583 : f32
    %218 = vector.broadcast %cst_87 : f32 to vector<8x64xf32>
    %219 = arith.mulf %218, %217 : vector<8x64xf32>
    %220 = math.tanh %219 : vector<8x64xf32>
    %cst_88 = arith.constant 1.000000e+00 : f32
    %221 = vector.broadcast %cst_88 : f32 to vector<8x64xf32>
    %222 = arith.addf %221, %220 : vector<8x64xf32>
    %223 = arith.mulf %212, %222 : vector<8x64xf32>
    %224 = arith.truncf %223 : vector<8x64xf32> to vector<8x64xbf16>
    %c0_89 = arith.constant 0 : index
    %c0_90 = arith.constant 0 : index
    %225 = vector.load %arg10[%c0_89, %c0_90] : memref<64x32xbf16, #tpu.memory_space<vmem>>, vector<64x32xbf16>
    %cst_91 = arith.constant dense<0.000000e+00> : vector<8x32xf32>
    %226 = tpu.matmul %224, %225, %cst_91 {dimension_numbers = #tpu.dot_dimension_numbers<[1], [0], [0], [1], [0, 0, 1, 1], [], []>} : vector<8x64xbf16>, vector<64x32xbf16>, vector<8x32xf32> -> vector<8x32xf32>
    %c0_92 = arith.constant 0 : index
    %c0_93 = arith.constant 0 : index
    %227 = vector.load %arg11[%c0_92, %c0_93] : memref<1x32xf32, #tpu.memory_space<vmem>>, vector<1x32xf32>
    %228 = vector.broadcast %227 : vector<1x32xf32> to vector<8x32xf32>
    %229 = arith.addf %226, %228 : vector<8x32xf32>
    %c0_94 = arith.constant 0 : index
    %c0_95 = arith.constant 0 : index
    %c0_96 = arith.constant 0 : index
    %230 = vector.load %arg1[%c0_94, %c0_95, %c0_96] : memref<1x8x32xf32, #tpu.memory_space<vmem>>, vector<1x8x32xf32>
    %231 = vector.shape_cast %230 : vector<1x8x32xf32> to vector<8x32xf32>
    %232 = arith.addf %229, %231 : vector<8x32xf32>
    %c0_97 = arith.constant 0 : index
    %c0_98 = arith.constant 0 : index
    %c0_99 = arith.constant 0 : index
    %233 = vector.load %arg12[%c0_97, %c0_98, %c0_99] : memref<1x8x32xf32, #tpu.memory_space<vmem>>, vector<1x8x32xf32>
    %234 = vector.shape_cast %233 : vector<1x8x32xf32> to vector<8x32xf32>
    %235 = vector.shape_cast %232 : vector<8x32xf32> to vector<1x8x32xf32>
    tpu.vector_store %arg12[%c0_97, %c0_98, %c0_99], %235 {strides = array<i32>} : memref<1x8x32xf32, #tpu.memory_space<vmem>>, vector<1x8x32xf32>,
    return
  }
  func.func @transform_0(%arg0: i32) -> (i32, i32, i32) {
    %c0_i32 = arith.constant 0 : i32
    %c0_i32_0 = arith.constant 0 : i32
    %c0_i32_1 = arith.constant 0 : i32
    return %arg0, %c0_i32, %c0_i32_0 : i32, i32, i32
  }
  func.func @transform_1(%arg0: i32) -> (i32, i32) {
    %c0_i32 = arith.constant 0 : i32
    %c0_i32_0 = arith.constant 0 : i32
    %c0_i32_1 = arith.constant 0 : i32
    return %c0_i32, %c0_i32_0 : i32, i32
  }
  func.func @transform_2(%arg0: i32) -> (i32, i32) {
    %c0_i32 = arith.constant 0 : i32
    %c0_i32_0 = arith.constant 0 : i32
    %c0_i32_1 = arith.constant 0 : i32
    return %c0_i32, %c0_i32_0 : i32, i32
  }
  func.func @transform_3(%arg0: i32) -> (i32, i32) {
    %c0_i32 = arith.constant 0 : i32
    %c0_i32_0 = arith.constant 0 : i32
    %c0_i32_1 = arith.constant 0 : i32
    return %c0_i32, %c0_i32_0 : i32, i32
  }
  func.func @transform_4(%arg0: i32) -> (i32, i32) {
    %c0_i32 = arith.constant 0 : i32
    %c0_i32_0 = arith.constant 0 : i32
    %c0_i32_1 = arith.constant 0 : i32
    return %c0_i32, %c0_i32_0 : i32, i32
  }
  func.func @transform_5(%arg0: i32) -> (i32, i32) {
    %c0_i32 = arith.constant 0 : i32
    %c0_i32_0 = arith.constant 0 : i32
    %c0_i32_1 = arith.constant 0 : i32
    return %c0_i32, %c0_i32_0 : i32, i32
  }
  func.func @transform_6(%arg0: i32) -> (i32, i32) {
    %c0_i32 = arith.constant 0 : i32
    %c0_i32_0 = arith.constant 0 : i32
    %c0_i32_1 = arith.constant 0 : i32
    return %c0_i32, %c0_i32_0 : i32, i32
  }
  func.func @transform_7(%arg0: i32) -> (i32, i32) {
    %c0_i32 = arith.constant 0 : i32
    %c0_i32_0 = arith.constant 0 : i32
    %c0_i32_1 = arith.constant 0 : i32
    return %c0_i32, %c0_i32_0 : i32, i32
  }
  func.func @transform_8(%arg0: i32) -> (i32, i32) {
    %c0_i32 = arith.constant 0 : i32
    %c0_i32_0 = arith.constant 0 : i32
    %c0_i32_1 = arith.constant 0 : i32
    return %c0_i32, %c0_i32_0 : i32, i32
  }
  func.func @transform_9(%arg0: i32) -> (i32, i32) {
    %c0_i32 = arith.constant 0 : i32
    %c0_i32_0 = arith.constant 0 : i32
    %c0_i32_1 = arith.constant 0 : i32
    return %c0_i32, %c0_i32_0 : i32, i32
  }
  func.func @transform_10(%arg0: i32) -> (i32, i32) {
    %c0_i32 = arith.constant 0 : i32
    %c0_i32_0 = arith.constant 0 : i32
    %c0_i32_1 = arith.constant 0 : i32
    return %c0_i32, %c0_i32_0 : i32, i32
  }
  func.func @transform_11(%arg0: i32) -> (i32, i32, i32) {
    %c0_i32 = arith.constant 0 : i32
    %c0_i32_0 = arith.constant 0 : i32
    %c0_i32_1 = arith.constant 0 : i32
    return %arg0, %c0_i32, %c0_i32_0 : i32, i32, i32
  }
}

</mosaic_0001>

<bundles_post_ra>
// kernel: tpu_custom_call.1
= control target key start
LH: loop header
LB: loop body
LE: loop exit
PB: predicated region body
PF: predicated region fallthrough
CT: control target
= control target key end

     0   :  { %s3109_s0 = inlined_call_operand.vmem [shape: f32[2,8,32], index: 0, kind: input, shape index: {}]   ;;  %s3110_s1 = inlined_call_operand.vmem [shape: bf16[32,96], index: 1, kind: input, shape index: {}]   ;;  %s3111_s2 = inlined_call_operand.vmem [shape: f32[1,96], index: 2, kind: input, shape index: {}]   ;;  %s3112_s3 = inlined_call_operand.vmem [shape: bf16[32,32], index: 3, kind: input, shape index: {}]   ;;  %s3113_s4 = inlined_call_operand.vmem [shape: f32[1,32], index: 4, kind: input, shape index: {}]   ;;  %s3114_s5 = inlined_call_operand.vmem [shape: bf16[32,128], index: 5, kind: input, shape index: {}]   ;;  %s3115_s6 = inlined_call_operand.vmem [shape: f32[1,128], index: 6, kind: input, shape index: {}]   ;;  %s3116_s7 = inlined_call_operand.vmem [shape: bf16[128,64], index: 7, kind: input, shape index: {}]   ;;  %s3117_s8 = inlined_call_operand.vmem [shape: f32[1,64], index: 8, kind: input, shape index: {}]   ;;  %s3118_s9 = inlined_call_operand.vmem [shape: bf16[64,32], index: 9, kind: input, shape index: {}]   ;;  %s3119_s10 = inlined_call_operand.vmem [shape: f32[1,32], index: 10, kind: input, shape index: {}]   ;;  %s3120_s11 = inlined_call_operand.hbm [shape: f32[2,8,32], index: 11, kind: output, shape index: {}]  }
   0x1   :  { %3121 = sst [smem:[#allocation8_spill]] %s3109_s0 }
   0x2   :  { %16 = vsyncpa [#allocation6], 0 }
   0x3   :  { %18 = vsyncpa [#allocation6 + $0x1], 0  ;;  %s2701_s17 = smov 0   ;;  %s2703_s18 = smov 0  }
   0x4   :  { %s2705_s19 = smov 0   ;;  %s2707_s20 = smov 0  }
   0x5 LB: > { %s2722_s21 = sadd.s32 4294967295, %s2627_s20   ;;  %s2129_s22 = sadd.s32 4294967294, %s2627_s20   ;;  %s2627_s20 = sphi %s2707_s20, %s3128_s20   ;;  %s2623_s19 = sphi %s2705_s19, %s3127_s19   ;;  %s2619_s18 = sphi %s2703_s18, %s3126_s18   ;;  %s2615_s17 = sphi %s2701_s17, %s3125_s17  }
   0x6   : > { %s2726_s23 = sadd.s32 1, %s2627_s20   ;;  %s267_s24 = sadd.s32 1, %s2623_s19 }
   0x7   : > { %s264_s25 = ssub.s32 %s2627_s20, %s2726_s23  ;;  %p277_p0 = scmp.ne.s32.totalorder %s2623_s19, %s2619_s18 }
   0x8   : > { %p265_p1 = scmp.eq.s32.totalorder %s264_s25, 0  ;;  %p278_p2 = scmp.eq.s32.totalorder %s2722_s21, 1 }
   0x9   : > { %p283_p3 = scmp.ne.s32.totalorder %s2619_s18, %s2615_s17  ;;  %p284_p4 = scmp.eq.s32.totalorder %s2129_s22, 1 }
   0xa   : > { %s2737_s26 = scalar_select %p265_p1, %s2623_s19, %s267_s24  }
   0xb   : > { %p2739_p5 = por %p278_p2, %p277_p0  ;;  %p2743_p6 = por %p284_p4, %p283_p3 }
   0xc   : > { %p2132_p7 = scmp.ge.s32.totalorder %s2627_s20, 1  ;;  %p339_p8 = scmp.lt.s32.totalorder %s2627_s20, 3 }
   0xe   : > { %p340_p9 = pnand %p2132_p7, %p339_p8 }
   0xf   : > { %v2506_v0 = vld [vmem:[%s3110_s1] sm:$0xff] (!%p340_p9)   ;;  %v2629_v1 = vmov (!%p340_p9), 0.0   ;;  %v2507_v2 = vld [vmem:[%s3110_s1 + $0x8] sm:$0xff] (!%p340_p9)   ;;  %vm2630_vm0 = vmmov (!%p340_p9), 0   ;;  %p378_p10 = scmp.lt.s32.totalorder (!%p340_p9), %s2722_s21, 1  ;;  %s3124_s0 = sld [smem:[#allocation8_spill]] (!%p340_p9) }
  0x10   : > { %343 = sbr.rel (%p340_p9) target bundleno = 4508 (0x119c), region = 64  ;;  %2264 = vmatprep.subr.bf16.mxu1 (!%p340_p9), %v2629_v1  ;;  %2278 = vmatprep.subr.bf16.mxu0 (!%p340_p9), %v2629_v1  ;;  %vm408_vm1 = vcmask (!%p340_p9), 261120   ;;  %v2135_v5 = vld [vmem:[%s3111_s2] ss:$0 sm:$0xff] (!%p340_p9)  ;;  %vm454_vm2 = vcmask (!%p340_p9), 257024   ;;  %s2631_s30 = smov (!%p340_p9), 96  }
  0x11   : > { %2265 = vmatpush3.bf16.msra.mxu1 (!%p340_p9), %v2506_v0  ;;  %2268 = vmatprep.mubr.msk.bf16.mxu1 (!%p340_p9), %vm2630_vm0, %v2629_v1  ;;  %s2632_s12 = smov (!%p340_p9), 124   ;;  %s2633_s13 = smov (!%p340_p9), 64   ;;  %vm471_vm3 = vcmask (!%p340_p9), 31744   ;;  %vm533_vm4 = vcmask (!%p340_p9), 1043456   ;;  %vm518_vm5 = vcmask (!%p340_p9), 64512   ;;  %vm708_vm6 = vcmask (!%p340_p9), 1041408  }
  0x12   : > { %2266 = vmatprep.subr.bf16.mxu1 (!%p340_p9), %v2629_v1  ;;  %2280 = vmatprep.mubr.msk.bf16.mxu0 (!%p340_p9), %vm2630_vm0, %v2629_v1  ;;  %v579_v48 = vld [vmem:[%s3112_s3] sm:$0x3] (!%p340_p9)  ;;  %s2638_s22 = smov (!%p340_p9), 104   ;;  %vm2009_vm7 = vcmask (!%p340_p9), 523264   ;;  %s375_s16 = sand.u32 (!%p340_p9), 1, %s2619_s18  }
  0x13   : > { %v756_v52 = vsel (!%p340_p9), %vm708_vm6, %v579_v48, 0  ;;  %v2511_v53 = vld [vmem:[%s3112_s3] ss:$0 sps:$4 sm:$0xcc] (!%p340_p9)  }
  0x14   : > { %v704_v54 = vrot.slane (!%p340_p9), %v2511_v53, 2 }
  0x15   : > { %2267 = vmatpush3.bf16.msra.mxu1 (!%p340_p9), %v2507_v2 }
  0x16   : > { %2272 = vmatprep.subr.bf16.mxu1 (!%p340_p9), %v2629_v1  ;;  %v710_v55 = vsel (!%p340_p9), %vm708_vm6, %v704_v54, 0 }
  0x17   : > { %s379_s14 = scalar_select %p378_p10, %s2722_s21, 1 }
  0x19   : > { %s2134_s15 = sshll.u32 %s379_s14, 3  ;;  %s2634_s14 = smov 120  }
  0x1a   : > { %s2767_s24 = scalar_lea.vmem %s3124_s0, %s2134_s15  ;;  %s2635_s15 = smov 116  }
  0x1b   : > { %v383_v3 = vld [vmem:[%s2767_s24] sm:$0xff] }
  0x1c   : > { %v384_v4 = vpack.c.bf16 %v383_v3, %v383_v3 }
  0x1e   : > { %2269 = vmatmul.mubr.msk.bf16.vlgmr.msra.gmra.mrb[0].mxu1 %vm408_vm1, %v384_v4 }
  0x1f   : > { %2274 = vmatprep.mubr.msk.bf16.mxu1 %vm2630_vm0, %v2629_v1 }
  0xf1   : > { %v446_v6 = vpop.f32.mrb[0].mxu1 }
  0xf2   : > { %v447_v7 = vadd.f32 %v2135_v5, %v446_v6  ;;  %v2270_v8 = vpop.f32.mrb[1].mxu1 }
  0xf3   : > { %v449_v9 = vpop.f32.mrb[2].mxu1 }
  0xf4   : > { %v452_v10 = vmul.f32 0.5, %v447_v7  ;;  %v2271_v11 = vpop.f32.mrb[3].mxu1  ;;  %v2195_v12 = vpack.c.bf16 %v447_v7, %v447_v7 }
  0xf6   : > { %v453_v13 = vpack.c.bf16 %v452_v10, %v452_v10  ;;  %460 = vrot.lane.b32.xlu0 %v2195_v12, %s2631_s30  ;;  %s2636_s30 = smov 112  }
  0xf8   : > { %455 = vst.msk [vmem:[#allocation2] sm:$0xf] %vm454_vm2, %v453_v13 }
  0xff   : > { %v468_v14 = vld [vmem:[#allocation2] sm:$0xf] }
 0x100   : > { %v2778_v15 = vcombine.low %v468_v14, %v468_v14 }
 0x102   : > { %583 = vrot.lane.b32.xlu1 %v2778_v15, %s2632_s12 }
 0x106   : > { %464 = vrot.lane.b32.xlu1 %v2195_v12, %s2633_s13 }
 0x168   : > { %v461_v16 = vpop.permute.xlu0 %460 }
 0x169   : > { %463 = vst.msk [vmem:[#allocation3] sm:$0xf] %vm454_vm2, %v461_v16 }
 0x170   : > { %v469_v17 = vld [vmem:[#allocation3] sm:$0xf] }
 0x171   : > { %v476_v18 = vsel %vm471_vm3, %v469_v17, 0  ;;  %v2784_v19 = vcombine.low %v469_v17, %v469_v17 }
 0x172   : > { %2273 = vmatpush3.bf16.xpose.msra.mxu1 %v476_v18 }
 0x173   : > { %588 = vrot.lane.b32.xlu0 %v2784_v19, %s2632_s12  ;;  %2284 = vmatprep.subr.bf16.mxu1 %v2629_v1 }
 0x174   : > { %v584_v20 = vpop.permute.xlu1 %583 }
 0x178   : > { %v465_v21 = vpop.permute.xlu1 %464 }
 0x179   : > { %467 = vst.msk [vmem:[#allocation4] sm:$0xf] %vm454_vm2, %v465_v21  ;;  %2275 = vmatmul.mubr.msk.bf16.vlgmr.msra.gmra.mrb[4].mxu1 %vm471_vm3, %v468_v14 }
 0x17a   : > { %2286 = vmatprep.mubr.msk.bf16.mxu1 %vm2630_vm0, %v2629_v1 }
 0x180   : > { %v470_v22 = vld [vmem:[#allocation4] sm:$0xf] }
 0x181   : > { %v535_v23 = vsel %vm533_vm4, %v470_v22, 0  ;;  %v2801_v31 = vcombine.low %v470_v22, %v470_v22 }
 0x182   : > { %2279 = vmatpush3.bf16.msra.mxu0 %v535_v23 }
 0x183   : > { %2290 = vmatprep.subr.bf16.mxu0 %v2629_v1 }
 0x1e5   : > { %v589_v24 = vpop.permute.xlu0 %588 }
 0x1e6   : > { %v594_v25 = vsel %vm471_vm3, %v589_v24, 0 }
 0x1e7   : > { %2285 = vmatpush3.bf16.xpose.msra.mxu1 %v594_v25 }
 0x1e8   : > { %2296 = vmatprep.subr.bf16.mxu1 %v2629_v1 }
 0x1ee   : > { %2287 = vmatmul.mubr.msk.bf16.vlgmr.msra.gmra.mrb[8].mxu1 %vm471_vm3, %v584_v20 }
 0x1ef   : > { %2298 = vmatprep.mubr.msk.bf16.mxu1 %vm2630_vm0, %v2629_v1  ;;  %2297 = vmatpush3.bf16.msra.mxu1 %v710_v55 }
 0x1f0   : > { %2308 = vmatprep.subr.bf16.mxu1 %v2629_v1 }
 0x24c   : > { %v512_v26 = vpop.f32.mrb[4].mxu1 }
 0x24d   : > { %v2276_v27 = vpop.f32.mrb[5].mxu1  ;;  %v519_v28 = vsel %vm518_vm5, %v512_v26, -inf }
 0x24e   : > { %520 = vmax.xlane.f32.xlu0 %v519_v28  ;;  %v515_v29 = vpop.f32.mrb[6].mxu1 }
 0x24f   : > { %v2277_v30 = vpop.f32.mrb[7].mxu1 }
 0x264   : > { %650 = vrot.lane.b32.xlu0 %v2801_v31, %s2632_s12 }
 0x268   : > { %798 = vrot.lane.b32.xlu0 %v2778_v15, %s2634_s14 }
 0x2c1   : > { %v630_v32 = vpop.f32.mrb[8].mxu1 }
 0x2c2   : > { %v2288_v33 = vpop.f32.mrb[9].mxu1  ;;  %v636_v34 = vsel %vm518_vm5, %v630_v32, -inf }
 0x2c3   : > { %637 = vmax.xlane.f32.xlu1 %v636_v34  ;;  %v633_v35 = vpop.f32.mrb[10].mxu1 }
 0x2c4   : > { %v2289_v36 = vpop.f32.mrb[11].mxu1 }
 0x2db   : > { %v521_v37 = vpop.xlane.xlu0 %520 }
 0x2dc   : > { %v522_v38 = vsub.f32 %v512_v26, %v521_v37 }
 0x2de   : > { %v523_v39 = vmul.f32 1.442695, %v522_v38 }
 0x2df   : > { %v651_v41 = vpop.permute.xlu0 %650 }
 0x2e0   : > { %2529 = vpow2.f32 %v523_v39  ;;  %v656_v44 = vsel %vm533_vm4, %v651_v41, 0 }
 0x2e3   : > { %v799_v56 = vpop.permute.xlu0 %798 }
 0x2ea   : > { %v2530_v40 = vpop.eup %2529 }
 0x2eb   : > { %v525_v42 = vsel %vm518_vm5, %v2530_v40, 0.0  ;;  %v529_v43 = vpack.c.bf16 %v2530_v40, %v2530_v40  ;;  %v909_v40 = vld [vmem:[%s3112_s3 + $0x4] sm:$0x3] }
 0x2ec   : > { %526 = vadd.xlane.f32.xlu0 %v525_v42  ;;  %v914_v41 = vsel %vm708_vm6, %v909_v40, 0 }
 0x2ed   : > { %2281 = vmatmul.mubr.msk.bf16.vlgmr.msra.gmra.mrb[0].mxu0 %vm518_vm5, %v529_v43 }
 0x2ee   : > { %2291 = vmatpush3.bf16.msra.mxu0 %v656_v44  ;;  %2292 = vmatprep.mubr.msk.bf16.mxu0 %vm2630_vm0, %v2629_v1 }
 0x2ef   : > { %2302 = vmatprep.subr.bf16.mxu0 %v2629_v1 }
 0x302   : > { %859 = vrot.lane.b32.xlu0 %v2801_v31, %s2634_s14 }
 0x306   : > { %957 = vrot.lane.b32.xlu0 %v2778_v15, %s2635_s15 }
 0x350   : > { %v638_v45 = vpop.xlane.xlu1 %637 }
 0x351   : > { %v639_v46 = vsub.f32 %v630_v32, %v638_v45 }
 0x353   : > { %v640_v47 = vmul.f32 1.442695, %v639_v46 }
 0x355   : > { %2531 = vpow2.f32 %v640_v47 }
 0x35f   : > { %v2532_v49 = vpop.eup %2531 }
 0x360   : > { %v642_v50 = vsel %vm518_vm5, %v2532_v49, 0.0  ;;  %v646_v51 = vpack.c.bf16 %v2532_v49, %v2532_v49 }
 0x361   : > { %643 = vadd.xlane.f32.xlu1 %v642_v50 }
 0x362   : > { %2293 = vmatmul.mubr.msk.bf16.vlgmr.msra.gmra.mrb[4].mxu0 %vm518_vm5, %v646_v51 }
 0x363   : > { %2303 = vmatpush3.bf16.msra.mxu0 %v756_v52  ;;  %2304 = vmatprep.mubr.msk.bf16.mxu0 %vm2630_vm0, %v2629_v1 }
 0x364   : > { %2314 = vmatprep.subr.bf16.mxu0 %v2629_v1 }
 0x372   : > { %800 = vrot.lane.b32.xlu1 %v2784_v19, %s2634_s14  ;;  %s2637_s14 = smov 108  }
 0x379   : > { %v527_v57 = vpop.xlane.xlu0 %526 }
 0x37a   : > { %2533 = vrcp.f32 %v527_v57 }
 0x37d   : > { %v860_v62 = vpop.permute.xlu0 %859 }
 0x37e   : > { %v865_v3 = vsel %vm533_vm4, %v860_v62, 0 }
 0x381   : > { %v958_v39 = vpop.permute.xlu0 %957 }
 0x384   : > { %v2534_v58 = vpop.eup %2533 }
 0x3c0   : > { %v571_v59 = vpop.f32.mrb[0].mxu0 }
 0x3c1   : > { %v577_v60 = vmul.f32 %v2534_v58, %v571_v59  ;;  %v2282_v61 = vpop.f32.mrb[1].mxu0 }
 0x3c2   : > { %v574_v63 = vpop.f32.mrb[2].mxu0 }
 0x3c3   : > { %v578_v0 = vpack.c.bf16 %v577_v60, %v577_v60  ;;  %v2283_v2 = vpop.f32.mrb[3].mxu0 }
 0x3c5   : > { %2305 = vmatmul.mubr.msk.bf16.vlgmr.msra.gmra.mrb[8].mxu0 %vm471_vm3, %v578_v0 }
 0x3c6   : > { %2315 = vmatpush3.bf16.msra.mxu0 %v865_v3  ;;  %2316 = vmatprep.mubr.msk.bf16.mxu0 %vm2630_vm0, %v2629_v1 }
 0x3c7   : > { %2326 = vmatprep.subr.bf16.mxu0 %v2629_v1 }
 0x3ee   : > { %v644_v4 = vpop.xlane.xlu1 %643 }
 0x3ef   : > { %2535 = vrcp.f32 %v644_v4 }
 0x3f2   : > { %v801_v9 = vpop.permute.xlu1 %800 }
 0x3f3   : > { %v806_v13 = vsel %vm471_vm3, %v801_v9, 0 }
 0x3f9   : > { %v2536_v5 = vpop.eup %2535 }
 0x435   : > { %v692_v6 = vpop.f32.mrb[4].mxu0 }
 0x436   : > { %v698_v7 = vmul.f32 %v2536_v5, %v692_v6  ;;  %v2294_v8 = vpop.f32.mrb[5].mxu0 }
 0x437   : > { %v695_v10 = vpop.f32.mrb[6].mxu0  ;;  %v2512_v8 = vld [vmem:[%s3112_s3 + $0x4] ss:$0 sps:$4 sm:$0xcc]  }
 0x438   : > { %v699_v11 = vpack.c.bf16 %v698_v7, %v698_v7  ;;  %v2295_v12 = vpop.f32.mrb[7].mxu0  ;;  %v1072_v9 = vrot.slane %v2512_v8, 2 }
 0x43a   : > { %2299 = vmatmul.mubr.msk.bf16.vlgmr.msra.gmra.mrb[12].mxu1 %vm471_vm3, %v699_v11  ;;  %v1077_v10 = vsel %vm708_vm6, %v1072_v9, 0 }
 0x43b   : > { %2309 = vmatpush3.bf16.xpose.msra.mxu1 %v806_v13  ;;  %2310 = vmatprep.mubr.msk.bf16.mxu1 %vm2630_vm0, %v2629_v1 }
 0x43c   : > { %2320 = vmatprep.subr.bf16.mxu1 %v2629_v1 }
 0x442   : > { %2311 = vmatmul.mubr.msk.bf16.vlgmr.msra.gmra.mrb[16].mxu1 %vm471_vm3, %v799_v56 }
 0x443   : > { %2322 = vmatprep.mubr.msk.bf16.mxu1 %vm2630_vm0, %v2629_v1  ;;  %2321 = vmatpush3.bf16.msra.mxu1 %v914_v41 }
 0x444   : > { %2332 = vmatprep.subr.bf16.mxu1 %v2629_v1 }
 0x498   : > { %v792_v14 = vpop.f32.mrb[8].mxu0 }
 0x499   : > { %v2306_v16 = vpop.f32.mrb[9].mxu0 }
 0x49a   : > { %v795_v17 = vpop.f32.mrb[10].mxu0 }
 0x49b   : > { %v2307_v18 = vpop.f32.mrb[11].mxu0 }
 0x50d   : > { %v746_v20 = vpop.f32.mrb[12].mxu1 }
 0x50e   : > { %v2847_v21 = vadd.f32 %v792_v14, %v746_v20  ;;  %v2300_v22 = vpop.f32.mrb[13].mxu1 }
 0x50f   : > { %v749_v23 = vpop.f32.mrb[14].mxu1 }
 0x510   : > { %v2301_v24 = vpop.f32.mrb[15].mxu1 }
 0x515   : > { %v842_v25 = vpop.f32.mrb[16].mxu1 }
 0x516   : > { %v2312_v26 = vpop.f32.mrb[17].mxu1  ;;  %v848_v27 = vsel %vm518_vm5, %v842_v25, -inf }
 0x517   : > { %849 = vmax.xlane.f32.xlu1 %v848_v27  ;;  %v845_v28 = vpop.f32.mrb[18].mxu1 }
 0x518   : > { %v2313_v29 = vpop.f32.mrb[19].mxu1 }
 0x528   : > { %959 = vrot.lane.b32.xlu1 %v2784_v19, %s2635_s15 }
 0x5a4   : > { %v850_v30 = vpop.xlane.xlu1 %849 }
 0x5a5   : > { %v851_v32 = vsub.f32 %v842_v25, %v850_v30 }
 0x5a7   : > { %v852_v33 = vmul.f32 1.442695, %v851_v32 }
 0x5a8   : > { %v960_v35 = vpop.permute.xlu1 %959 }
 0x5a9   : > { %2537 = vpow2.f32 %v852_v33  ;;  %v965_v38 = vsel %vm471_vm3, %v960_v35, 0 }
 0x5b3   : > { %v2538_v34 = vpop.eup %2537 }
 0x5b4   : > { %v854_v36 = vsel %vm518_vm5, %v2538_v34, 0.0  ;;  %v858_v37 = vpack.c.bf16 %v2538_v34, %v2538_v34 }
 0x5b5   : > { %855 = vadd.xlane.f32.xlu1 %v854_v36 }
 0x5b6   : > { %2317 = vmatmul.mubr.msk.bf16.vlgmr.msra.gmra.mrb[12].mxu0 %vm518_vm5, %v858_v37 }
 0x5b7   : > { %2327 = vmatpush3.bf16.xpose.msra.mxu0 %v965_v38  ;;  %2328 = vmatprep.mubr.msk.bf16.mxu0 %vm2630_vm0, %v2629_v1 }
 0x5b8   : > { %2338 = vmatprep.subr.bf16.mxu0 %v2629_v1 }
 0x5be   : > { %2329 = vmatmul.mubr.msk.bf16.vlgmr.msra.gmra.mrb[16].mxu0 %vm471_vm3, %v958_v39 }
 0x5bf   : > { %2340 = vmatprep.mubr.msk.bf16.mxu0 %vm2630_vm0, %v2629_v1  ;;  %2339 = vmatpush3.bf16.msra.mxu0 %v1077_v10 }
 0x5c0   : > { %2350 = vmatprep.subr.bf16.mxu0 %v2629_v1 }
 0x5c6   : > { %1122 = vrot.lane.b32.xlu1 %v2784_v19, %s2636_s30 }
 0x5ca   : > { %1120 = vrot.lane.b32.xlu1 %v2778_v15, %s2636_s30 }
 0x642   : > { %v856_v42 = vpop.xlane.xlu1 %855 }
 0x643   : > { %2539 = vrcp.f32 %v856_v42 }
 0x646   : > { %v1123_v61 = vpop.permute.xlu1 %1122 }
 0x647   : > { %v1128_v0 = vsel %vm471_vm3, %v1123_v61, 0 }
 0x64a   : > { %v1121_v2 = vpop.permute.xlu1 %1120 }
 0x64d   : > { %v2540_v43 = vpop.eup %2539 }
 0x689   : > { %v901_v44 = vpop.f32.mrb[12].mxu0 }
 0x68a   : > { %v907_v45 = vmul.f32 %v2540_v43, %v901_v44  ;;  %v2318_v46 = vpop.f32.mrb[13].mxu0  ;;  %v1231_v43 = vld [vmem:[%s3112_s3 + $0x8] sm:$0x3] }
 0x68b   : > { %v904_v47 = vpop.f32.mrb[14].mxu0  ;;  %v1236_v44 = vsel %vm708_vm6, %v1231_v43, 0 }
 0x68c   : > { %v908_v48 = vpack.c.bf16 %v907_v45, %v907_v45  ;;  %v2319_v49 = vpop.f32.mrb[15].mxu0 }
 0x68e   : > { %2323 = vmatmul.mubr.msk.bf16.vlgmr.msra.gmra.mrb[20].mxu1 %vm471_vm3, %v908_v48 }
 0x68f   : > { %2334 = vmatprep.mubr.msk.bf16.mxu1 %vm2630_vm0, %v2629_v1 }
 0x691   : > { %v1001_v50 = vpop.f32.mrb[16].mxu0 }
 0x692   : > { %v2330_v51 = vpop.f32.mrb[17].mxu0  ;;  %v1007_v52 = vsel %vm518_vm5, %v1001_v50, -inf }
 0x693   : > { %1008 = vmax.xlane.f32.xlu0 %v1007_v52  ;;  %v1004_v53 = vpop.f32.mrb[18].mxu0 }
 0x694   : > { %v2331_v54 = vpop.f32.mrb[19].mxu0 }
 0x6a9   : > { %1018 = vrot.lane.b32.xlu0 %v2801_v31, %s2635_s15 }
 0x720   : > { %v1009_v55 = vpop.xlane.xlu0 %1008 }
 0x721   : > { %v1010_v56 = vsub.f32 %v1001_v50, %v1009_v55 }
 0x723   : > { %v1011_v57 = vmul.f32 1.442695, %v1010_v56 }
 0x724   : > { %v1019_v58 = vpop.permute.xlu0 %1018 }
 0x725   : > { %2541 = vpow2.f32 %v1011_v57  ;;  %v1024_v59 = vsel %vm533_vm4, %v1019_v58, 0 }
 0x726   : > { %2333 = vmatpush3.bf16.msra.mxu1 %v1024_v59 }
 0x727   : > { %2344 = vmatprep.subr.bf16.mxu1 %v2629_v1 }
 0x72f   : > { %v2542_v60 = vpop.eup %2541 }
 0x730   : > { %v1013_v62 = vsel %vm518_vm5, %v2542_v60, 0.0  ;;  %v1017_v63 = vpack.c.bf16 %v2542_v60, %v2542_v60 }
 0x731   : > { %1014 = vadd.xlane.f32.xlu0 %v1013_v62 }
 0x732   : > { %2335 = vmatmul.mubr.msk.bf16.vlgmr.msra.gmra.mrb[24].mxu1 %vm518_vm5, %v1017_v63 }
 0x733   : > { %2345 = vmatpush3.bf16.xpose.msra.mxu1 %v1128_v0  ;;  %2346 = vmatprep.mubr.msk.bf16.mxu1 %vm2630_vm0, %v2629_v1 }
 0x734   : > { %2356 = vmatprep.subr.bf16.mxu1 %v2629_v1 }
 0x73a   : > { %2347 = vmatmul.mubr.msk.bf16.vlgmr.msra.gmra.mrb[28].mxu1 %vm471_vm3, %v1121_v2 }
 0x73b   : > { %2358 = vmatprep.mubr.msk.bf16.mxu1 %vm2630_vm0, %v2629_v1  ;;  %2357 = vmatpush3.bf16.msra.mxu1 %v1236_v44  ;;  %v1553_v44 = vld [vmem:[%s3112_s3 + $0xc] sm:$0x3] }
 0x73c   : > { %2368 = vmatprep.subr.bf16.mxu1 %v2629_v1 }
 0x747   : > { %1181 = vrot.lane.b32.xlu0 %v2801_v31, %s2636_s30  ;;  %s2639_s30 = smov 100  }
 0x74b   : > { %1279 = vrot.lane.b32.xlu0 %v2778_v15, %s2637_s14 }
 0x761   : > { %v950_v3 = vpop.f32.mrb[20].mxu1 }
 0x762   : > { %v956_v4 = vadd.f32 %v950_v3, %v2847_v21  ;;  %v2324_v5 = vpop.f32.mrb[21].mxu1 }
 0x763   : > { %v953_v6 = vpop.f32.mrb[22].mxu1 }
 0x764   : > { %v2325_v7 = vpop.f32.mrb[23].mxu1 }
 0x7be   : > { %v1015_v11 = vpop.xlane.xlu0 %1014 }
 0x7bf   : > { %2543 = vrcp.f32 %v1015_v11  ;;  %v2513_v11 = vld [vmem:[%s3112_s3 + $0x8] ss:$0 sps:$4 sm:$0xcc]  }
 0x7c2   : > { %v1182_v17 = vpop.permute.xlu0 %1181 }
 0x7c3   : > { %v1187_v22 = vsel %vm533_vm4, %v1182_v17, 0 }
 0x7c6   : > { %v1280_v37 = vpop.permute.xlu0 %1279 }
 0x7c9   : > { %v2544_v12 = vpop.eup %2543 }
 0x805   : > { %v1060_v13 = vpop.f32.mrb[24].mxu1 }
 0x806   : > { %v1066_v14 = vmul.f32 %v2544_v12, %v1060_v13  ;;  %v2336_v16 = vpop.f32.mrb[25].mxu1  ;;  %v1394_v12 = vrot.slane %v2513_v11, 2 }
 0x807   : > { %v1063_v18 = vpop.f32.mrb[26].mxu1 }
 0x808   : > { %v1067_v20 = vpack.c.bf16 %v1066_v14, %v1066_v14  ;;  %v2337_v21 = vpop.f32.mrb[27].mxu1  ;;  %v1399_v13 = vsel %vm708_vm6, %v1394_v12, 0 }
 0x80a   : > { %2341 = vmatmul.mubr.msk.bf16.vlgmr.msra.gmra.mrb[20].mxu0 %vm471_vm3, %v1067_v20 }
 0x80b   : > { %2351 = vmatpush3.bf16.msra.mxu0 %v1187_v22  ;;  %2352 = vmatprep.mubr.msk.bf16.mxu0 %vm2630_vm0, %v2629_v1 }
 0x80c   : > { %2362 = vmatprep.subr.bf16.mxu0 %v2629_v1 }
 0x80d   : > { %v1164_v23 = vpop.f32.mrb[28].mxu1 }
 0x80e   : > { %v2348_v24 = vpop.f32.mrb[29].mxu1  ;;  %v1170_v25 = vsel %vm518_vm5, %v1164_v23, -inf }
 0x80f   : > { %1171 = vmax.xlane.f32.xlu1 %v1170_v25  ;;  %v1167_v26 = vpop.f32.mrb[30].mxu1 }
 0x810   : > { %v2349_v27 = vpop.f32.mrb[31].mxu1 }
 0x820   : > { %1281 = vrot.lane.b32.xlu1 %v2784_v19, %s2637_s14 }
 0x89c   : > { %v1172_v28 = vpop.xlane.xlu1 %1171 }
 0x89d   : > { %v1173_v29 = vsub.f32 %v1164_v23, %v1172_v28 }
 0x89f   : > { %v1174_v30 = vmul.f32 1.442695, %v1173_v29 }
 0x8a0   : > { %v1282_v33 = vpop.permute.xlu1 %1281 }
 0x8a1   : > { %2545 = vpow2.f32 %v1174_v30  ;;  %v1287_v36 = vsel %vm471_vm3, %v1282_v33, 0 }
 0x8ab   : > { %v2546_v32 = vpop.eup %2545 }
 0x8ac   : > { %v1176_v34 = vsel %vm518_vm5, %v2546_v32, 0.0  ;;  %v1180_v35 = vpack.c.bf16 %v2546_v32, %v2546_v32 }
 0x8ad   : > { %1177 = vadd.xlane.f32.xlu1 %v1176_v34 }
 0x8ae   : > { %2353 = vmatmul.mubr.msk.bf16.vlgmr.msra.gmra.mrb[24].mxu0 %vm518_vm5, %v1180_v35 }
 0x8af   : > { %2363 = vmatpush3.bf16.xpose.msra.mxu0 %v1287_v36  ;;  %2364 = vmatprep.mubr.msk.bf16.mxu0 %vm2630_vm0, %v2629_v1 }
 0x8b0   : > { %2374 = vmatprep.subr.bf16.mxu0 %v2629_v1 }
 0x8b6   : > { %2365 = vmatmul.mubr.msk.bf16.vlgmr.msra.gmra.mrb[28].mxu0 %vm471_vm3, %v1280_v37 }
 0x8b7   : > { %2376 = vmatprep.mubr.msk.bf16.mxu0 %vm2630_vm0, %v2629_v1  ;;  %2375 = vmatpush3.bf16.msra.mxu0 %v1399_v13 }
 0x8b8   : > { %2386 = vmatprep.subr.bf16.mxu0 %v2629_v1 }
 0x8be   : > { %1444 = vrot.lane.b32.xlu1 %v2784_v19, %s2638_s22 }
 0x8c2   : > { %1442 = vrot.lane.b32.xlu1 %v2778_v15, %s2638_s22 }
 0x8dd   : > { %v1113_v38 = vpop.f32.mrb[20].mxu0 }
 0x8de   : > { %v1119_v39 = vadd.f32 %v1113_v38, %v956_v4  ;;  %v2342_v40 = vpop.f32.mrb[21].mxu0 }
 0x8df   : > { %v1116_v41 = vpop.f32.mrb[22].mxu0 }
 0x8e0   : > { %v2343_v42 = vpop.f32.mrb[23].mxu0 }
 0x93a   : > { %v1178_v45 = vpop.xlane.xlu1 %1177 }
 0x93b   : > { %2547 = vrcp.f32 %v1178_v45  ;;  %v1558_v45 = vsel %vm708_vm6, %v1553_v44, 0 }
 0x93e   : > { %v1445_v0 = vpop.permute.xlu1 %1444 }
 0x93f   : > { %v1450_v4 = vsel %vm471_vm3, %v1445_v0, 0 }
 0x942   : > { %v1443_v5 = vpop.permute.xlu1 %1442 }
 0x945   : > { %v2548_v46 = vpop.eup %2547 }
 0x981   : > { %v1223_v47 = vpop.f32.mrb[24].mxu0 }
 0x982   : > { %v1229_v48 = vmul.f32 %v2548_v46, %v1223_v47  ;;  %v2354_v49 = vpop.f32.mrb[25].mxu0 }
 0x983   : > { %v1226_v50 = vpop.f32.mrb[26].mxu0 }
 0x984   : > { %v1230_v51 = vpack.c.bf16 %v1229_v48, %v1229_v48  ;;  %v2355_v52 = vpop.f32.mrb[27].mxu0 }
 0x986   : > { %2359 = vmatmul.mubr.msk.bf16.vlgmr.msra.gmra.mrb[32].mxu1 %vm471_vm3, %v1230_v51 }
 0x987   : > { %2370 = vmatprep.mubr.msk.bf16.mxu1 %vm2630_vm0, %v2629_v1 }
 0x989   : > { %v1323_v53 = vpop.f32.mrb[28].mxu0 }
 0x98a   : > { %v2366_v54 = vpop.f32.mrb[29].mxu0  ;;  %v1329_v55 = vsel %vm518_vm5, %v1323_v53, -inf }
 0x98b   : > { %1330 = vmax.xlane.f32.xlu0 %v1329_v55  ;;  %v1326_v56 = vpop.f32.mrb[30].mxu0 }
 0x98c   : > { %v2367_v57 = vpop.f32.mrb[31].mxu0 }
 0x9a1   : > { %1340 = vrot.lane.b32.xlu0 %v2801_v31, %s2637_s14 }
 0xa18   : > { %v1331_v58 = vpop.xlane.xlu0 %1330 }
 0xa19   : > { %v1332_v59 = vsub.f32 %v1323_v53, %v1331_v58 }
 0xa1b   : > { %v1333_v60 = vmul.f32 1.442695, %v1332_v59 }
 0xa1c   : > { %v1341_v61 = vpop.permute.xlu0 %1340 }
 0xa1d   : > { %2549 = vpow2.f32 %v1333_v60  ;;  %v1346_v62 = vsel %vm533_vm4, %v1341_v61, 0 }
 0xa1e   : > { %2369 = vmatpush3.bf16.msra.mxu1 %v1346_v62 }
 0xa1f   : > { %2380 = vmatprep.subr.bf16.mxu1 %v2629_v1 }
 0xa27   : > { %v2550_v63 = vpop.eup %2549 }
 0xa28   : > { %v1335_v2 = vsel %vm518_vm5, %v2550_v63, 0.0  ;;  %v1339_v3 = vpack.c.bf16 %v2550_v63, %v2550_v63 }
 0xa29   : > { %1336 = vadd.xlane.f32.xlu0 %v1335_v2 }
 0xa2a   : > { %2371 = vmatmul.mubr.msk.bf16.vlgmr.msra.gmra.mrb[36].mxu1 %vm518_vm5, %v1339_v3 }
 0xa2b   : > { %2381 = vmatpush3.bf16.xpose.msra.mxu1 %v1450_v4  ;;  %2382 = vmatprep.mubr.msk.bf16.mxu1 %vm2630_vm0, %v2629_v1 }
 0xa2c   : > { %2392 = vmatprep.subr.bf16.mxu1 %v2629_v1 }
 0xa32   : > { %2383 = vmatmul.mubr.msk.bf16.vlgmr.msra.gmra.mrb[40].mxu1 %vm471_vm3, %v1443_v5 }
 0xa33   : > { %2394 = vmatprep.mubr.msk.bf16.mxu1 %vm2630_vm0, %v2629_v1  ;;  %2393 = vmatpush3.bf16.msra.mxu1 %v1558_v45 }
 0xa34   : > { %2404 = vmatprep.subr.bf16.mxu1 %v2629_v1 }
 0xa3f   : > { %1503 = vrot.lane.b32.xlu0 %v2801_v31, %s2638_s22  ;;  %s2133_s22 = sshll.u32 %s375_s16, 3 }
 0xa40   : > { %s377_s12 = scalar_lea.vmem [#allocation5], %s2133_s22  ;;  %s2640_s22 = smov [#allocation5]  }
 0xa41   : > { %s2070_s13 = sshll.u32 %s377_s12, 4  ;;  %s2569_s25 = sshll.u32 %s2640_s22, 4  ;;  %s3068_s13 = int_to_ptr.vmem [resolvable:$true] %s2070_s13  ;;  %s2570_s25 = int_to_ptr.vmem [resolvable:$false] %s2569_s25 }
 0xa42   : > { %s2571_s29 = scalar_lea.vmem %s2570_s25, 256  ;;  %p2572_p0 = scmp.lt.s32.totalorder %s3068_s13, %s2570_s25 }
 0xa43   : > { %1601 = vrot.lane.b32.xlu0 %v2778_v15, %s2639_s30 }
 0xa59   : > { %v1272_v6 = vpop.f32.mrb[32].mxu1 }
 0xa5a   : > { %v1278_v7 = vadd.f32 %v1272_v6, %v1119_v39  ;;  %v2360_v8 = vpop.f32.mrb[33].mxu1 }
 0xa5b   : > { %v1275_v9 = vpop.f32.mrb[34].mxu1 }
 0xa5c   : > { %v2361_v10 = vpop.f32.mrb[35].mxu1 }
 0xab6   : > { %v1337_v14 = vpop.xlane.xlu0 %1336 }
 0xab7   : > { %2551 = vrcp.f32 %v1337_v14 }
 0xaba   : > { %v1504_v20 = vpop.permute.xlu0 %1503 }
 0xabb   : > { %v1509_v24 = vsel %vm533_vm4, %v1504_v20, 0  ;;  %v2515_v20 = vld [vmem:[%s3114_s5] sm:$0xff]  }
 0xac1   : > { %v2552_v16 = vpop.eup %2551 }
 0xafd   : > { %v1382_v17 = vpop.f32.mrb[36].mxu1 }
 0xafe   : > { %v1388_v15 = vmul.f32 %v2552_v16, %v1382_v17  ;;  %v2372_v18 = vpop.f32.mrb[37].mxu1 }
 0xaff   : > { %v1385_v21 = vpop.f32.mrb[38].mxu1 }
 0xb00   : > { %v1389_v22 = vpack.c.bf16 %v1388_v15, %v1388_v15  ;;  %v2373_v23 = vpop.f32.mrb[39].mxu1  ;;  %v2516_v21 = vld [vmem:[%s3114_s5 + $0x8] sm:$0xff]  }
 0xb02   : > { %2377 = vmatmul.mubr.msk.bf16.vlgmr.msra.gmra.mrb[32].mxu0 %vm471_vm3, %v1389_v22  ;;  %v2517_v22 = vld [vmem:[%s3116_s7] sm:$0xff]  }
 0xb03   : > { %2387 = vmatpush3.bf16.msra.mxu0 %v1509_v24  ;;  %2388 = vmatprep.mubr.msk.bf16.mxu0 %vm2630_vm0, %v2629_v1  ;;  %v2171_v24 = vld [vmem:[%s3113_s4] ss:$0 sm:$0xff] }
 0xb04   : > { %2398 = vmatprep.subr.bf16.mxu0 %v2629_v1 }
 0xb05   : > { %v1486_v25 = vpop.f32.mrb[40].mxu1 }
 0xb06   : > { %v2384_v26 = vpop.f32.mrb[41].mxu1  ;;  %v1492_v27 = vsel %vm518_vm5, %v1486_v25, -inf }
 0xb07   : > { %1493 = vmax.xlane.f32.xlu1 %v1492_v27  ;;  %v1489_v28 = vpop.f32.mrb[42].mxu1 }
 0xb08   : > { %v2385_v29 = vpop.f32.mrb[43].mxu1 }
 0xb18   : > { %1603 = vrot.lane.b32.xlu1 %v2784_v19, %s2639_s30  ;;  %v1602_v19 = vpop.permute.xlu0 %1601 }
 0xb94   : > { %v1494_v30 = vpop.xlane.xlu1 %1493 }
 0xb95   : > { %v1495_v32 = vsub.f32 %v1486_v25, %v1494_v30 }
 0xb97   : > { %v1496_v33 = vmul.f32 1.442695, %v1495_v32  ;;  %v2518_v32 = vld [vmem:[%s3116_s7 + $0x8] sm:$0xff]  }
 0xb98   : > { %v1604_v35 = vpop.permute.xlu1 %1603 }
 0xb99   : > { %2553 = vpow2.f32 %v1496_v33  ;;  %v1609_v38 = vsel %vm471_vm3, %v1604_v35, 0  ;;  %v2519_v33 = vld [vmem:[%s3116_s7 + $0x10] sm:$0xff]   ;;  %v2521_v35 = vld [vmem:[%s3116_s7 + $0x20] sm:$0xff]  }
 0xba3   : > { %v2554_v34 = vpop.eup %2553 }
 0xba4   : > { %v1498_v36 = vsel %vm518_vm5, %v2554_v34, 0.0  ;;  %v1502_v37 = vpack.c.bf16 %v2554_v34, %v2554_v34  ;;  %v2520_v34 = vld [vmem:[%s3116_s7 + $0x18] sm:$0xff]  }
 0xba5   : > { %1499 = vadd.xlane.f32.xlu1 %v1498_v36  ;;  %v2522_v36 = vld [vmem:[%s3116_s7 + $0x28] sm:$0xff]  }
 0xba6   : > { %2389 = vmatmul.mubr.msk.bf16.vlgmr.msra.gmra.mrb[36].mxu0 %vm518_vm5, %v1502_v37  ;;  %v2523_v37 = vld [vmem:[%s3116_s7 + $0x30] sm:$0xff]  }
 0xba7   : > { %2399 = vmatpush3.bf16.xpose.msra.mxu0 %v1609_v38  ;;  %2400 = vmatprep.mubr.msk.bf16.mxu0 %vm2630_vm0, %v2629_v1  ;;  %v2524_v38 = vld [vmem:[%s3116_s7 + $0x38] sm:$0xff]  }
 0xba8   : > { %2410 = vmatprep.subr.bf16.mxu0 %v2629_v1 }
 0xbae   : > { %2401 = vmatmul.mubr.msk.bf16.vlgmr.msra.gmra.mrb[40].mxu0 %vm471_vm3, %v1602_v19  ;;  %v2172_v19 = vld [vmem:[%s3115_s6] ss:$0 sm:$0xff] }
 0xbaf   : > { %2412 = vmatprep.mubr.msk.bf16.mxu0 %vm2630_vm0, %v2629_v1 }
 0xbd5   : > { %v1435_v39 = vpop.f32.mrb[32].mxu0 }
 0xbd6   : > { %v1441_v40 = vadd.f32 %v1435_v39, %v1278_v7  ;;  %v2378_v41 = vpop.f32.mrb[33].mxu0 }
 0xbd7   : > { %v1438_v42 = vpop.f32.mrb[34].mxu0 }
 0xbd8   : > { %v2379_v43 = vpop.f32.mrb[35].mxu0 }
 0xc32   : > { %v1500_v46 = vpop.xlane.xlu1 %1499 }
 0xc33   : > { %2555 = vrcp.f32 %v1500_v46 }
 0xc3d   : > { %v2556_v47 = vpop.eup %2555 }
 0xc79   : > { %v1545_v48 = vpop.f32.mrb[36].mxu0 }
 0xc7a   : > { %v1551_v49 = vmul.f32 %v2556_v47, %v1545_v48  ;;  %v2390_v50 = vpop.f32.mrb[37].mxu0 }
 0xc7b   : > { %v1548_v51 = vpop.f32.mrb[38].mxu0 }
 0xc7c   : > { %v1552_v52 = vpack.c.bf16 %v1551_v49, %v1551_v49  ;;  %v2391_v53 = vpop.f32.mrb[39].mxu0 }
 0xc7e   : > { %2395 = vmatmul.mubr.msk.bf16.vlgmr.msra.gmra.mrb[44].mxu1 %vm471_vm3, %v1552_v52 }
 0xc7f   : > { %2406 = vmatprep.mubr.msk.bf16.mxu1 %vm2630_vm0, %v2629_v1 }
 0xc81   : > { %v1645_v54 = vpop.f32.mrb[40].mxu0 }
 0xc82   : > { %v2402_v55 = vpop.f32.mrb[41].mxu0  ;;  %v1651_v56 = vsel %vm518_vm5, %v1645_v54, -inf }
 0xc83   : > { %1652 = vmax.xlane.f32.xlu0 %v1651_v56  ;;  %v1648_v57 = vpop.f32.mrb[42].mxu0  ;;  %v2526_v55 = vld [vmem:[%s3118_s9 + $0x8] sm:$0xff]   ;;  %v2527_v56 = vld [vmem:[%s3118_s9 + $0x10] sm:$0xff]  }
 0xc84   : > { %v2403_v58 = vpop.f32.mrb[43].mxu0  ;;  %v2528_v57 = vld [vmem:[%s3118_s9 + $0x18] sm:$0xff]  }
 0xc85   : > { %v2176_v58 = vld [vmem:[%s3117_s8] ss:$0 sm:$0xff] }
 0xc99   : > { %1662 = vrot.lane.b32.xlu0 %v2801_v31, %s2639_s30  ;;  %v2514_v31 = vld [vmem:[%s3112_s3 + $0xc] ss:$0 sps:$4 sm:$0xcc]   ;;  %s2192_s30 = sshll.u32 %s2722_s21, 7  ;;  %s2057_s21 = scalar_lea.sflag [#allocation6], %s375_s16 }
 0xc9a   : > { %v1716_v4 = vrot.slane %v2514_v31, 2  ;;  %s3066_s0 = scalar_lea.hbm %s3120_s11, %s2192_s30 }
 0xc9c   : > { %v1721_v5 = vsel %vm708_vm6, %v1716_v4, 0 }
 0xc9d   : > { %2411 = vmatpush3.bf16.msra.mxu0 %v1721_v5 }
 0xc9e   : > { %2424 = vmatprep.subr.bf16.mxu0 %v2629_v1 }
 0xd10   : > { %v1653_v59 = vpop.xlane.xlu0 %1652 }
 0xd11   : > { %v1654_v60 = vsub.f32 %v1645_v54, %v1653_v59  ;;  %v2525_v54 = vld [vmem:[%s3118_s9] sm:$0xff]  }
 0xd13   : > { %v1655_v61 = vmul.f32 1.442695, %v1654_v60 }
 0xd14   : > { %v1663_v62 = vpop.permute.xlu0 %1662 }
 0xd15   : > { %2557 = vpow2.f32 %v1655_v61  ;;  %v1668_v63 = vsel %vm533_vm4, %v1663_v62, 0 }
 0xd16   : > { %2405 = vmatpush3.bf16.msra.mxu1 %v1668_v63 }
 0xd17   : > { %2416 = vmatprep.subr.bf16.mxu1 %v2629_v1 }
 0xd1f   : > { %v2558_v0 = vpop.eup %2557 }
 0xd20   : > { %v1657_v2 = vsel %vm518_vm5, %v2558_v0, 0.0  ;;  %v1661_v3 = vpack.c.bf16 %v2558_v0, %v2558_v0 }
 0xd21   : > { %1658 = vadd.xlane.f32.xlu1 %v1657_v2 }
 0xd22   : > { %2407 = vmatmul.mubr.msk.bf16.vlgmr.msra.gmra.mrb[48].mxu1 %vm518_vm5, %v1661_v3 }
 0xd23   : > { %2420 = vmatprep.mubr.msk.bf16.mxu1 %vm2630_vm0, %v2629_v1  ;;  %2417 = vmatpush3.bf16.msra.mxu1 %v2515_v20 }
 0xd24   : > { %2418 = vmatprep.subr.bf16.mxu1 %v2629_v1 }
 0xd27   : > { %2419 = vmatpush3.bf16.msra.mxu1 %v2516_v21 }
 0xd28   : > { %2444 = vmatprep.subr.bf16.mxu1 %v2629_v1 }
 0xd51   : > { %v1594_v6 = vpop.f32.mrb[44].mxu1 }
 0xd52   : > { %v1600_v7 = vadd.f32 %v1594_v6, %v1441_v40  ;;  %v2396_v8 = vpop.f32.mrb[45].mxu1 }
 0xd53   : > { %v1597_v9 = vpop.f32.mrb[46].mxu1 }
 0xd54   : > { %v2397_v10 = vpop.f32.mrb[47].mxu1  ;;  %v2185_v9 = vld [vmem:[%s3119_s10] ss:$0 sm:$0xff] }
 0xdae   : > { %v1659_v11 = vpop.xlane.xlu1 %1658 }
 0xdaf   : > { %2559 = vrcp.f32 %v1659_v11  ;;  %v2053_v11 = vld [vmem:[%s2767_s24] sm:$0xff]  ;;  %s2565_s24 = scalar_lea.vmem %s3068_s13, 128 }
 0xdb0   : > { %p2566_p11 = scmp.ne.s32.totalorder %s3068_s13, %s2565_s24  ;;  %p2573_p1 = scmp.lt.s32.totalorder %s2571_s29, %s2565_s24 }
 0xdb2   : > { %p2567_p12 = pnand %p2566_p11, %p2739_p5  ;;  %p2574_p2 = por %p2573_p1, %p2572_p0 }
 0xdb4   : > { %p2568_p13 = pneg %p2567_p12 }
 0xdb6   : > { %p2575_p3 = pnand %p2574_p2, %p2568_p13 }
 0xdb9   : > { %v2560_v12 = vpop.eup %2559 }
 0xdf5   : > { %v1704_v13 = vpop.f32.mrb[48].mxu1 }
 0xdf6   : > { %v1710_v14 = vmul.f32 %v2560_v12, %v1704_v13  ;;  %v2408_v16 = vpop.f32.mrb[49].mxu1 }
 0xdf7   : > { %v1707_v17 = vpop.f32.mrb[50].mxu1 }
 0xdf8   : > { %v1711_v15 = vpack.c.bf16 %v1710_v14, %v1710_v14  ;;  %v2409_v18 = vpop.f32.mrb[51].mxu1 }
 0xdfa   : > { %2413 = vmatmul.mubr.msk.bf16.vlgmr.msra.gmra.mrb[44].mxu0 %vm471_vm3, %v1711_v15 }
 0xdfb   : > { %2440 = vmatprep.mubr.msk.bf16.mxu0 %vm2630_vm0, %v2629_v1  ;;  %2425 = vmatpush3.bf16.msra.mxu0 %v2517_v22 }
 0xdfc   : > { %2426 = vmatprep.subr.bf16.mxu0 %v2629_v1 }
 0xdff   : > { %2427 = vmatpush3.bf16.msra.mxu0 %v2518_v32 }
 0xe00   : > { %2428 = vmatprep.subr.bf16.mxu0 %v2629_v1 }
 0xe03   : > { %2429 = vmatpush3.bf16.msra.mxu0 %v2519_v33 }
 0xe04   : > { %2430 = vmatprep.subr.bf16.mxu0 %v2629_v1 }
 0xe07   : > { %2431 = vmatpush3.bf16.msra.mxu0 %v2520_v34 }
 0xe08   : > { %2432 = vmatprep.subr.bf16.mxu0 %v2629_v1 }
 0xe0b   : > { %2433 = vmatpush3.bf16.msra.mxu0 %v2521_v35 }
 0xe0c   : > { %2434 = vmatprep.subr.bf16.mxu0 %v2629_v1 }
 0xe0f   : > { %2435 = vmatpush3.bf16.msra.mxu0 %v2522_v36 }
 0xe10   : > { %2436 = vmatprep.subr.bf16.mxu0 %v2629_v1 }
 0xe13   : > { %2437 = vmatpush3.bf16.msra.mxu0 %v2523_v37 }
 0xe14   : > { %2438 = vmatprep.subr.bf16.mxu0 %v2629_v1 }
 0xe17   : > { %2439 = vmatpush3.bf16.msra.mxu0 %v2524_v38 }
 0xecd   : > { %v1757_v23 = vpop.f32.mrb[44].mxu0 }
 0xece   : > { %v1763_v25 = vadd.f32 %v1757_v23, %v1600_v7  ;;  %v2414_v26 = vpop.f32.mrb[45].mxu0 }
 0xecf   : > { %v1760_v27 = vpop.f32.mrb[46].mxu0 }
 0xed0   : > { %v1771_v28 = vadd.f32 %v2171_v24, %v1763_v25  ;;  %v2415_v29 = vpop.f32.mrb[47].mxu0 }
 0xed2   : > { %v1772_v30 = vpack.c.bf16 %v1771_v28, %v1771_v28 }
 0xed4   : > { %2421 = vmatmul.mubr.msk.bf16.vlgmr.msra.gmra.mrb[52].mxu1 %vm408_vm1, %v1772_v30 }
 0xed5   : > { %2452 = vmatprep.mubr.msk.bf16.mxu1 %vm2630_vm0, %v2629_v1  ;;  %2445 = vmatpush3.bf16.msra.mxu1 %v2525_v54 }
 0xed6   : > { %2446 = vmatprep.subr.bf16.mxu1 %v2629_v1 }
 0xed9   : > { %2447 = vmatpush3.bf16.msra.mxu1 %v2526_v55 }
 0xeda   : > { %2448 = vmatprep.subr.bf16.mxu1 %v2629_v1 }
 0xedd   : > { %2449 = vmatpush3.bf16.msra.mxu1 %v2527_v56 }
 0xede   : > { %2450 = vmatprep.subr.bf16.mxu1 %v2629_v1 }
 0xee1   : > { %2451 = vmatpush3.bf16.msra.mxu1 %v2528_v57 }
 0xfa7   : > { %v1833_v39 = vpop.f32.mrb[52].mxu1 }
 0xfa8   : > { %v1834_v40 = vadd.f32 %v2172_v19, %v1833_v39  ;;  %v2422_v41 = vpop.f32.mrb[53].mxu1 }
 0xfa9   : > { %v1836_v42 = vpop.f32.mrb[54].mxu1 }
 0xfaa   : > { %v1840_v43 = vmul.f32 %v1834_v40, %v1834_v40  ;;  %v2423_v44 = vpop.f32.mrb[55].mxu1  ;;  %v1839_v50 = vmul.f32 0.5, %v1834_v40 }
 0xfac   : > { %v1841_v45 = vmul.f32 %v1840_v43, %v1834_v40 }
 0xfae   : > { %v1842_v46 = vmul.f32 0.044715, %v1841_v45 }
 0xfb0   : > { %v1843_v47 = vadd.f32 %v1842_v46, %v1834_v40 }
 0xfb2   : > { %v1844_v48 = vmul.f32 0.7978846, %v1843_v47 }
 0xfb4   : > { %2561 = vtanh.f32 %v1844_v48 }
 0xfbe   : > { %v2562_v49 = vpop.eup %2561 }
 0xfbf   : > { %v1846_v51 = vadd.f32 1.0, %v2562_v49 }
 0xfc1   : > { %v1847_v52 = vmul.f32 %v1846_v51, %v1839_v50 }
 0xfc3   : > { %v1848_v53 = vpack.c.bf16 %v1847_v52, %v1847_v52 }
 0xfc5   : > { %2441 = vmatmul.mubr.bf16.vlgmr.msra.gmra.mrb[48].mxu0 %v1848_v53 }
0x1098   : > { %v1954_v59 = vpop.f32.mrb[48].mxu0 }
0x1099   : > { %v1955_v60 = vadd.f32 %v2176_v58, %v1954_v59  ;;  %v2442_v61 = vpop.f32.mrb[49].mxu0 }
0x109a   : > { %v1957_v62 = vpop.f32.mrb[50].mxu0 }
0x109b   : > { %v1961_v63 = vmul.f32 %v1955_v60, %v1955_v60  ;;  %v2443_v0 = vpop.f32.mrb[51].mxu0  ;;  %v1960_v5 = vmul.f32 0.5, %v1955_v60 }
0x109d   : > { %v1962_v2 = vmul.f32 %v1961_v63, %v1955_v60 }
0x109f   : > { %v1963_v3 = vmul.f32 0.044715, %v1962_v2 }
0x10a1   : > { %v1964_v1 = vadd.f32 %v1963_v3, %v1955_v60 }
0x10a3   : > { %v1965_v31 = vmul.f32 0.7978846, %v1964_v1 }
0x10a5   : > { %2563 = vtanh.f32 %v1965_v31 }
0x10af   : > { %v2564_v4 = vpop.eup %2563 }
0x10b0   : > { %v1967_v6 = vadd.f32 1.0, %v2564_v4 }
0x10b2   : > { %v1968_v7 = vmul.f32 %v1967_v6, %v1960_v5 }
0x10b4   : > { %v1969_v8 = vpack.c.bf16 %v1968_v7, %v1968_v7 }
0x10b6   : > { %2453 = vmatmul.mubr.msk.bf16.vlgmr.msra.gmra.mrb[56].mxu1 %vm2009_vm7, %v1969_v8 }
0x1189   : > { %v2047_v10 = vpop.f32.mrb[56].mxu1 }
0x118a   : > { %v2048_v12 = vadd.f32 %v2185_v9, %v2047_v10  ;;  %v2454_v13 = vpop.f32.mrb[57].mxu1 }
0x118b   : > { %v2050_v14 = vpop.f32.mrb[58].mxu1 }
0x118c   : > { %v2054_v16 = vadd.f32 %v2053_v11, %v2048_v12  ;;  %v2455_v17 = vpop.f32.mrb[59].mxu1 }
0x118e   : > { %2055 = vst.msk [vmem:[%s377_s12] sm:$0xff] %vm408_vm1, %v2054_v16 }
0x118f   : > { %2578 = shalt.err (!%p2575_p3)
}
0x1190   : > { %s2579_s16 = scalar_lea.hbm %s3066_s0, 128  ;;  %s2583_s14 = scalar_lea.hbm %s3120_s11, 256 }
0x1191   : > { %p2580_p4 = scmp.ne.s32.totalorder %s3066_s0, %s2579_s16  ;;  %p2584_p9 = scmp.lt.u32.totalorder %s3066_s0, %s3120_s11 }
0x1192   : > { %p2585_p10 = scmp.lt.u32.totalorder %s2583_s14, %s2579_s16  ;;  %p2587_p12 = scmp.lt.u32.totalorder %s2579_s16, %s3066_s0 }
0x1193   : > { %p2581_p7 = pnand %p2580_p4, %p2739_p5 }
0x1194   : > { %p2586_p11 = por %p2585_p10, %p2584_p9 }
0x1195   : > { %p2582_p8 = pneg %p2581_p7 }
0x1196   : > { %p2588_p13 = por %p2587_p12, %p2586_p11 }
0x1198   : > { %p2589_p0 = pnand %p2588_p13, %p2582_p8 }
0x119a   : > { %2592 = shalt.err (!%p2589_p0)
}
0x119b   : > { %2456 = dma.vmem_to_hbm [thread:$0]  (%p2739_p5), %s3068_s13, 128, %s3066_s0, %s2057_s21  }
0x119c PF: > { %p2462_p1 = scmp.ge.s32.totalorder %s2627_s20, 2  ;;  %s2082_s24 = sand.u32 1, %s2615_s17  }
0x119d   : > { %s2083_s25 = scalar_lea.sflag [#allocation6], %s2082_s24 }
0x119e   : > { %p2459_p2 = pnand %p2462_p1, %p2743_p6 }
0x11a0   : > { %2610 = dma.done.wait (!%p2459_p2), %s2083_s25, 128  }
0x11a1   : > { %2612 = vsyncadd (!%p2459_p2), %s2083_s25, 4294967168  ;;  %p21_p3 = scmp.ge.s32.totalorder %s2726_s23, 4   ;;  %s3125_s17 = smov %s2619_s18 }
0x11a2   : > { %s3126_s18 = smov %s2623_s19  ;;  %s3127_s19 = smov %s2737_s26 }
0x11a3   : > { %s3128_s20 = smov %s2726_s23  ;;  %23 = sbr.rel (!%p21_p3) target bundleno = 5 (0x5), region = 99 }
0x11aa   :  { %2088 = vsyncpa [#allocation6], 1 }
0x11ab   :  { %2090 = vsyncpa [#allocation6 + $0x1], 1 }

// kernel: tpu_custom_call.1
= control target key start
LH: loop header
LB: loop body
LE: loop exit
PB: predicated region body
PF: predicated region fallthrough
CT: control target
= control target key end

     0   :  { %s3109_s0 = inlined_call_operand.vmem [shape: f32[2,8,32], index: 0, kind: input, shape index: {}]   ;;  %s3110_s1 = inlined_call_operand.vmem [shape: bf16[32,96], index: 1, kind: input, shape index: {}]   ;;  %s3111_s2 = inlined_call_operand.vmem [shape: f32[1,96], index: 2, kind: input, shape index: {}]   ;;  %s3112_s3 = inlined_call_operand.vmem [shape: bf16[32,32], index: 3, kind: input, shape index: {}]   ;;  %s3113_s4 = inlined_call_operand.vmem [shape: f32[1,32], index: 4, kind: input, shape index: {}]   ;;  %s3114_s5 = inlined_call_operand.vmem [shape: bf16[32,128], index: 5, kind: input, shape index: {}]   ;;  %s3115_s6 = inlined_call_operand.vmem [shape: f32[1,128], index: 6, kind: input, shape index: {}]   ;;  %s3116_s7 = inlined_call_operand.vmem [shape: bf16[128,64], index: 7, kind: input, shape index: {}]   ;;  %s3117_s8 = inlined_call_operand.vmem [shape: f32[1,64], index: 8, kind: input, shape index: {}]   ;;  %s3118_s9 = inlined_call_operand.vmem [shape: bf16[64,32], index: 9, kind: input, shape index: {}]   ;;  %s3119_s10 = inlined_call_operand.vmem [shape: f32[1,32], index: 10, kind: input, shape index: {}]   ;;  %s3120_s11 = inlined_call_operand.hbm [shape: f32[2,8,32], index: 11, kind: output, shape index: {}]  }
   0x1   :  { %3121 = sst [smem:[#allocation8_spill]] %s3109_s0 }
   0x2   :  { %16 = vsyncpa [#allocation6], 0 }
   0x3   :  { %18 = vsyncpa [#allocation6 + $0x1], 0  ;;  %s2701_s17 = smov 0   ;;  %s2703_s18 = smov 0  }
   0x4   :  { %s2705_s19 = smov 0   ;;  %s2707_s20 = smov 0  }
   0x5 LB: > { %s2722_s21 = sadd.s32 4294967295, %s2627_s20   ;;  %s2129_s22 = sadd.s32 4294967294, %s2627_s20   ;;  %s2627_s20 = sphi %s2707_s20, %s3128_s20   ;;  %s2623_s19 = sphi %s2705_s19, %s3127_s19   ;;  %s2619_s18 = sphi %s2703_s18, %s3126_s18   ;;  %s2615_s17 = sphi %s2701_s17, %s3125_s17  }
   0x6   : > { %s2726_s23 = sadd.s32 1, %s2627_s20   ;;  %s267_s24 = sadd.s32 1, %s2623_s19 }
   0x7   : > { %s264_s25 = ssub.s32 %s2627_s20, %s2726_s23  ;;  %p277_p0 = scmp.ne.s32.totalorder %s2623_s19, %s2619_s18 }
   0x8   : > { %p265_p1 = scmp.eq.s32.totalorder %s264_s25, 0  ;;  %p278_p2 = scmp.eq.s32.totalorder %s2722_s21, 1 }
   0x9   : > { %p283_p3 = scmp.ne.s32.totalorder %s2619_s18, %s2615_s17  ;;  %p284_p4 = scmp.eq.s32.totalorder %s2129_s22, 1 }
   0xa   : > { %s2737_s26 = scalar_select %p265_p1, %s2623_s19, %s267_s24  }
   0xb   : > { %p2739_p5 = por %p278_p2, %p277_p0  ;;  %p2743_p6 = por %p284_p4, %p283_p3 }
   0xc   : > { %p2132_p7 = scmp.ge.s32.totalorder %s2627_s20, 1  ;;  %p339_p8 = scmp.lt.s32.totalorder %s2627_s20, 3 }
   0xe   : > { %p340_p9 = pnand %p2132_p7, %p339_p8 }
   0xf   : > { %v2506_v0 = vld [vmem:[%s3110_s1] sm:$0xff] (!%p340_p9)   ;;  %v2629_v1 = vmov (!%p340_p9), 0.0   ;;  %v2507_v2 = vld [vmem:[%s3110_s1 + $0x8] sm:$0xff] (!%p340_p9)   ;;  %vm2630_vm0 = vmmov (!%p340_p9), 0   ;;  %p378_p10 = scmp.lt.s32.totalorder (!%p340_p9), %s2722_s21, 1  ;;  %s3124_s0 = sld [smem:[#allocation8_spill]] (!%p340_p9) }
  0x10   : > { %343 = sbr.rel (%p340_p9) target bundleno = 4508 (0x119c), region = 64  ;;  %2264 = vmatprep.subr.bf16.mxu1 (!%p340_p9), %v2629_v1  ;;  %2278 = vmatprep.subr.bf16.mxu0 (!%p340_p9), %v2629_v1  ;;  %vm408_vm1 = vcmask (!%p340_p9), 261120   ;;  %v2135_v5 = vld [vmem:[%s3111_s2] ss:$0 sm:$0xff] (!%p340_p9)  ;;  %vm454_vm2 = vcmask (!%p340_p9), 257024   ;;  %s2631_s30 = smov (!%p340_p9), 96  }
  0x11   : > { %2265 = vmatpush3.bf16.msra.mxu1 (!%p340_p9), %v2506_v0  ;;  %2268 = vmatprep.mubr.msk.bf16.mxu1 (!%p340_p9), %vm2630_vm0, %v2629_v1  ;;  %s2632_s12 = smov (!%p340_p9), 124   ;;  %s2633_s13 = smov (!%p340_p9), 64   ;;  %vm471_vm3 = vcmask (!%p340_p9), 31744   ;;  %vm533_vm4 = vcmask (!%p340_p9), 1043456   ;;  %vm518_vm5 = vcmask (!%p340_p9), 64512   ;;  %vm708_vm6 = vcmask (!%p340_p9), 1041408  }
  0x12   : > { %2266 = vmatprep.subr.bf16.mxu1 (!%p340_p9), %v2629_v1  ;;  %2280 = vmatprep.mubr.msk.bf16.mxu0 (!%p340_p9), %vm2630_vm0, %v2629_v1  ;;  %v579_v48 = vld [vmem:[%s3112_s3] sm:$0x3] (!%p340_p9)  ;;  %s2638_s22 = smov (!%p340_p9), 104   ;;  %vm2009_vm7 = vcmask (!%p340_p9), 523264   ;;  %s375_s16 = sand.u32 (!%p340_p9), 1, %s2619_s18  }
  0x13   : > { %v756_v52 = vsel (!%p340_p9), %vm708_vm6, %v579_v48, 0  ;;  %v2511_v53 = vld [vmem:[%s3112_s3] ss:$0 sps:$4 sm:$0xcc] (!%p340_p9)  }
  0x14   : > { %v704_v54 = vrot.slane (!%p340_p9), %v2511_v53, 2 }
  0x15   : > { %2267 = vmatpush3.bf16.msra.mxu1 (!%p340_p9), %v2507_v2 }
  0x16   : > { %2272 = vmatprep.subr.bf16.mxu1 (!%p340_p9), %v2629_v1  ;;  %v710_v55 = vsel (!%p340_p9), %vm708_vm6, %v704_v54, 0 }
  0x17   : > { %s379_s14 = scalar_select %p378_p10, %s2722_s21, 1 }
  0x19   : > { %s2134_s15 = sshll.u32 %s379_s14, 3  ;;  %s2634_s14 = smov 120  }
  0x1a   : > { %s2767_s24 = scalar_lea.vmem %s3124_s0, %s2134_s15  ;;  %s2635_s15 = smov 116  }
  0x1b   : > { %v383_v3 = vld [vmem:[%s2767_s24] sm:$0xff] }
  0x1c   : > { %v384_v4 = vpack.c.bf16 %v383_v3, %v383_v3 }
  0x1e   : > { %2269 = vmatmul.mubr.msk.bf16.vlgmr.msra.gmra.mrb[0].mxu1 %vm408_vm1, %v384_v4 }
  0x1f   : > { %2274 = vmatprep.mubr.msk.bf16.mxu1 %vm2630_vm0, %v2629_v1 }
  0xf1   : > { %v446_v6 = vpop.f32.mrb[0].mxu1 }
  0xf2   : > { %v447_v7 = vadd.f32 %v2135_v5, %v446_v6  ;;  %v2270_v8 = vpop.f32.mrb[1].mxu1 }
  0xf3   : > { %v449_v9 = vpop.f32.mrb[2].mxu1 }
  0xf4   : > { %v452_v10 = vmul.f32 0.5, %v447_v7  ;;  %v2271_v11 = vpop.f32.mrb[3].mxu1  ;;  %v2195_v12 = vpack.c.bf16 %v447_v7, %v447_v7 }
  0xf6   : > { %v453_v13 = vpack.c.bf16 %v452_v10, %v452_v10  ;;  %460 = vrot.lane.b32.xlu0 %v2195_v12, %s2631_s30  ;;  %s2636_s30 = smov 112  }
  0xf8   : > { %455 = vst.msk [vmem:[#allocation2] sm:$0xf] %vm454_vm2, %v453_v13 }
  0xff   : > { %v468_v14 = vld [vmem:[#allocation2] sm:$0xf] }
 0x100   : > { %v2778_v15 = vcombine.low %v468_v14, %v468_v14 }
 0x102   : > { %583 = vrot.lane.b32.xlu1 %v2778_v15, %s2632_s12 }
 0x106   : > { %464 = vrot.lane.b32.xlu1 %v2195_v12, %s2633_s13 }
 0x168   : > { %v461_v16 = vpop.permute.xlu0 %460 }
 0x169   : > { %463 = vst.msk [vmem:[#allocation3] sm:$0xf] %vm454_vm2, %v461_v16 }
 0x170   : > { %v469_v17 = vld [vmem:[#allocation3] sm:$0xf] }
 0x171   : > { %v476_v18 = vsel %vm471_vm3, %v469_v17, 0  ;;  %v2784_v19 = vcombine.low %v469_v17, %v469_v17 }
 0x172   : > { %2273 = vmatpush3.bf16.xpose.msra.mxu1 %v476_v18 }
 0x173   : > { %588 = vrot.lane.b32.xlu0 %v2784_v19, %s2632_s12  ;;  %2284 = vmatprep.subr.bf16.mxu1 %v2629_v1 }
 0x174   : > { %v584_v20 = vpop.permute.xlu1 %583 }
 0x178   : > { %v465_v21 = vpop.permute.xlu1 %464 }
 0x179   : > { %467 = vst.msk [vmem:[#allocation4] sm:$0xf] %vm454_vm2, %v465_v21  ;;  %2275 = vmatmul.mubr.msk.bf16.vlgmr.msra.gmra.mrb[4].mxu1 %vm471_vm3, %v468_v14 }
 0x17a   : > { %2286 = vmatprep.mubr.msk.bf16.mxu1 %vm2630_vm0, %v2629_v1 }
 0x180   : > { %v470_v22 = vld [vmem:[#allocation4] sm:$0xf] }
 0x181   : > { %v535_v23 = vsel %vm533_vm4, %v470_v22, 0  ;;  %v2801_v31 = vcombine.low %v470_v22, %v470_v22 }
 0x182   : > { %2279 = vmatpush3.bf16.msra.mxu0 %v535_v23 }
 0x183   : > { %2290 = vmatprep.subr.bf16.mxu0 %v2629_v1 }
 0x1e5   : > { %v589_v24 = vpop.permute.xlu0 %588 }
 0x1e6   : > { %v594_v25 = vsel %vm471_vm3, %v589_v24, 0 }
 0x1e7   : > { %2285 = vmatpush3.bf16.xpose.msra.mxu1 %v594_v25 }
 0x1e8   : > { %2296 = vmatprep.subr.bf16.mxu1 %v2629_v1 }
 0x1ee   : > { %2287 = vmatmul.mubr.msk.bf16.vlgmr.msra.gmra.mrb[8].mxu1 %vm471_vm3, %v584_v20 }
 0x1ef   : > { %2298 = vmatprep.mubr.msk.bf16.mxu1 %vm2630_vm0, %v2629_v1  ;;  %2297 = vmatpush3.bf16.msra.mxu1 %v710_v55 }
 0x1f0   : > { %2308 = vmatprep.subr.bf16.mxu1 %v2629_v1 }
 0x24c   : > { %v512_v26 = vpop.f32.mrb[4].mxu1 }
 0x24d   : > { %v2276_v27 = vpop.f32.mrb[5].mxu1  ;;  %v519_v28 = vsel %vm518_vm5, %v512_v26, -inf }
 0x24e   : > { %520 = vmax.xlane.f32.xlu0 %v519_v28  ;;  %v515_v29 = vpop.f32.mrb[6].mxu1 }
 0x24f   : > { %v2277_v30 = vpop.f32.mrb[7].mxu1 }
 0x264   : > { %650 = vrot.lane.b32.xlu0 %v2801_v31, %s2632_s12 }
 0x268   : > { %798 = vrot.lane.b32.xlu0 %v2778_v15, %s2634_s14 }
 0x2c1   : > { %v630_v32 = vpop.f32.mrb[8].mxu1 }
 0x2c2   : > { %v2288_v33 = vpop.f32.mrb[9].mxu1  ;;  %v636_v34 = vsel %vm518_vm5, %v630_v32, -inf }
 0x2c3   : > { %637 = vmax.xlane.f32.xlu1 %v636_v34  ;;  %v633_v35 = vpop.f32.mrb[10].mxu1 }
 0x2c4   : > { %v2289_v36 = vpop.f32.mrb[11].mxu1 }
 0x2db   : > { %v521_v37 = vpop.xlane.xlu0 %520 }
 0x2dc   : > { %v522_v38 = vsub.f32 %v512_v26, %v521_v37 }
 0x2de   : > { %v523_v39 = vmul.f32 1.442695, %v522_v38 }
 0x2df   : > { %v651_v41 = vpop.permute.xlu0 %650 }
 0x2e0   : > { %2529 = vpow2.f32 %v523_v39  ;;  %v656_v44 = vsel %vm533_vm4, %v651_v41, 0 }
 0x2e3   : > { %v799_v56 = vpop.permute.xlu0 %798 }
 0x2ea   : > { %v2530_v40 = vpop.eup %2529 }
 0x2eb   : > { %v525_v42 = vsel %vm518_vm5, %v2530_v40, 0.0  ;;  %v529_v43 = vpack.c.bf16 %v2530_v40, %v2530_v40  ;;  %v909_v40 = vld [vmem:[%s3112_s3 + $0x4] sm:$0x3] }
 0x2ec   : > { %526 = vadd.xlane.f32.xlu0 %v525_v42  ;;  %v914_v41 = vsel %vm708_vm6, %v909_v40, 0 }
 0x2ed   : > { %2281 = vmatmul.mubr.msk.bf16.vlgmr.msra.gmra.mrb[0].mxu0 %vm518_vm5, %v529_v43 }
 0x2ee   : > { %2291 = vmatpush3.bf16.msra.mxu0 %v656_v44  ;;  %2292 = vmatprep.mubr.msk.bf16.mxu0 %vm2630_vm0, %v2629_v1 }
 0x2ef   : > { %2302 = vmatprep.subr.bf16.mxu0 %v2629_v1 }
 0x302   : > { %859 = vrot.lane.b32.xlu0 %v2801_v31, %s2634_s14 }
 0x306   : > { %957 = vrot.lane.b32.xlu0 %v2778_v15, %s2635_s15 }
 0x350   : > { %v638_v45 = vpop.xlane.xlu1 %637 }
 0x351   : > { %v639_v46 = vsub.f32 %v630_v32, %v638_v45 }
 0x353   : > { %v640_v47 = vmul.f32 1.442695, %v639_v46 }
 0x355   : > { %2531 = vpow2.f32 %v640_v47 }
 0x35f   : > { %v2532_v49 = vpop.eup %2531 }
 0x360   : > { %v642_v50 = vsel %vm518_vm5, %v2532_v49, 0.0  ;;  %v646_v51 = vpack.c.bf16 %v2532_v49, %v2532_v49 }
 0x361   : > { %643 = vadd.xlane.f32.xlu1 %v642_v50 }
 0x362   : > { %2293 = vmatmul.mubr.msk.bf16.vlgmr.msra.gmra.mrb[4].mxu0 %vm518_vm5, %v646_v51 }
 0x363   : > { %2303 = vmatpush3.bf16.msra.mxu0 %v756_v52  ;;  %2304 = vmatprep.mubr.msk.bf16.mxu0 %vm2630_vm0, %v2629_v1 }
 0x364   : > { %2314 = vmatprep.subr.bf16.mxu0 %v2629_v1 }
 0x372   : > { %800 = vrot.lane.b32.xlu1 %v2784_v19, %s2634_s14  ;;  %s2637_s14 = smov 108  }
 0x379   : > { %v527_v57 = vpop.xlane.xlu0 %526 }
 0x37a   : > { %2533 = vrcp.f32 %v527_v57 }
 0x37d   : > { %v860_v62 = vpop.permute.xlu0 %859 }
 0x37e   : > { %v865_v3 = vsel %vm533_vm4, %v860_v62, 0 }
 0x381   : > { %v958_v39 = vpop.permute.xlu0 %957 }
 0x384   : > { %v2534_v58 = vpop.eup %2533 }
 0x3c0   : > { %v571_v59 = vpop.f32.mrb[0].mxu0 }
 0x3c1   : > { %v577_v60 = vmul.f32 %v2534_v58, %v571_v59  ;;  %v2282_v61 = vpop.f32.mrb[1].mxu0 }
 0x3c2   : > { %v574_v63 = vpop.f32.mrb[2].mxu0 }
 0x3c3   : > { %v578_v0 = vpack.c.bf16 %v577_v60, %v577_v60  ;;  %v2283_v2 = vpop.f32.mrb[3].mxu0 }
 0x3c5   : > { %2305 = vmatmul.mubr.msk.bf16.vlgmr.msra.gmra.mrb[8].mxu0 %vm471_vm3, %v578_v0 }
 0x3c6   : > { %2315 = vmatpush3.bf16.msra.mxu0 %v865_v3  ;;  %2316 = vmatprep.mubr.msk.bf16.mxu0 %vm2630_vm0, %v2629_v1 }
 0x3c7   : > { %2326 = vmatprep.subr.bf16.mxu0 %v2629_v1 }
 0x3ee   : > { %v644_v4 = vpop.xlane.xlu1 %643 }
 0x3ef   : > { %2535 = vrcp.f32 %v644_v4 }
 0x3f2   : > { %v801_v9 = vpop.permute.xlu1 %800 }
 0x3f3   : > { %v806_v13 = vsel %vm471_vm3, %v801_v9, 0 }
 0x3f9   : > { %v2536_v5 = vpop.eup %2535 }
 0x435   : > { %v692_v6 = vpop.f32.mrb[4].mxu0 }
 0x436   : > { %v698_v7 = vmul.f32 %v2536_v5, %v692_v6  ;;  %v2294_v8 = vpop.f32.mrb[5].mxu0 }
 0x437   : > { %v695_v10 = vpop.f32.mrb[6].mxu0  ;;  %v2512_v8 = vld [vmem:[%s3112_s3 + $0x4] ss:$0 sps:$4 sm:$0xcc]  }
 0x438   : > { %v699_v11 = vpack.c.bf16 %v698_v7, %v698_v7  ;;  %v2295_v12 = vpop.f32.mrb[7].mxu0  ;;  %v1072_v9 = vrot.slane %v2512_v8, 2 }
 0x43a   : > { %2299 = vmatmul.mubr.msk.bf16.vlgmr.msra.gmra.mrb[12].mxu1 %vm471_vm3, %v699_v11  ;;  %v1077_v10 = vsel %vm708_vm6, %v1072_v9, 0 }
 0x43b   : > { %2309 = vmatpush3.bf16.xpose.msra.mxu1 %v806_v13  ;;  %2310 = vmatprep.mubr.msk.bf16.mxu1 %vm2630_vm0, %v2629_v1 }
 0x43c   : > { %2320 = vmatprep.subr.bf16.mxu1 %v2629_v1 }
 0x442   : > { %2311 = vmatmul.mubr.msk.bf16.vlgmr.msra.gmra.mrb[16].mxu1 %vm471_vm3, %v799_v56 }
 0x443   : > { %2322 = vmatprep.mubr.msk.bf16.mxu1 %vm2630_vm0, %v2629_v1  ;;  %2321 = vmatpush3.bf16.msra.mxu1 %v914_v41 }
 0x444   : > { %2332 = vmatprep.subr.bf16.mxu1 %v2629_v1 }
 0x498   : > { %v792_v14 = vpop.f32.mrb[8].mxu0 }
 0x499   : > { %v2306_v16 = vpop.f32.mrb[9].mxu0 }
 0x49a   : > { %v795_v17 = vpop.f32.mrb[10].mxu0 }
 0x49b   : > { %v2307_v18 = vpop.f32.mrb[11].mxu0 }
 0x50d   : > { %v746_v20 = vpop.f32.mrb[12].mxu1 }
 0x50e   : > { %v2847_v21 = vadd.f32 %v792_v14, %v746_v20  ;;  %v2300_v22 = vpop.f32.mrb[13].mxu1 }
 0x50f   : > { %v749_v23 = vpop.f32.mrb[14].mxu1 }
 0x510   : > { %v2301_v24 = vpop.f32.mrb[15].mxu1 }
 0x515   : > { %v842_v25 = vpop.f32.mrb[16].mxu1 }
 0x516   : > { %v2312_v26 = vpop.f32.mrb[17].mxu1  ;;  %v848_v27 = vsel %vm518_vm5, %v842_v25, -inf }
 0x517   : > { %849 = vmax.xlane.f32.xlu1 %v848_v27  ;;  %v845_v28 = vpop.f32.mrb[18].mxu1 }
 0x518   : > { %v2313_v29 = vpop.f32.mrb[19].mxu1 }
 0x528   : > { %959 = vrot.lane.b32.xlu1 %v2784_v19, %s2635_s15 }
 0x5a4   : > { %v850_v30 = vpop.xlane.xlu1 %849 }
 0x5a5   : > { %v851_v32 = vsub.f32 %v842_v25, %v850_v30 }
 0x5a7   : > { %v852_v33 = vmul.f32 1.442695, %v851_v32 }
 0x5a8   : > { %v960_v35 = vpop.permute.xlu1 %959 }
 0x5a9   : > { %2537 = vpow2.f32 %v852_v33  ;;  %v965_v38 = vsel %vm471_vm3, %v960_v35, 0 }
 0x5b3   : > { %v2538_v34 = vpop.eup %2537 }
 0x5b4   : > { %v854_v36 = vsel %vm518_vm5, %v2538_v34, 0.0  ;;  %v858_v37 = vpack.c.bf16 %v2538_v34, %v2538_v34 }
 0x5b5   : > { %855 = vadd.xlane.f32.xlu1 %v854_v36 }
 0x5b6   : > { %2317 = vmatmul.mubr.msk.bf16.vlgmr.msra.gmra.mrb[12].mxu0 %vm518_vm5, %v858_v37 }
 0x5b7   : > { %2327 = vmatpush3.bf16.xpose.msra.mxu0 %v965_v38  ;;  %2328 = vmatprep.mubr.msk.bf16.mxu0 %vm2630_vm0, %v2629_v1 }
 0x5b8   : > { %2338 = vmatprep.subr.bf16.mxu0 %v2629_v1 }
 0x5be   : > { %2329 = vmatmul.mubr.msk.bf16.vlgmr.msra.gmra.mrb[16].mxu0 %vm471_vm3, %v958_v39 }
 0x5bf   : > { %2340 = vmatprep.mubr.msk.bf16.mxu0 %vm2630_vm0, %v2629_v1  ;;  %2339 = vmatpush3.bf16.msra.mxu0 %v1077_v10 }
 0x5c0   : > { %2350 = vmatprep.subr.bf16.mxu0 %v2629_v1 }
 0x5c6   : > { %1122 = vrot.lane.b32.xlu1 %v2784_v19, %s2636_s30 }
 0x5ca   : > { %1120 = vrot.lane.b32.xlu1 %v2778_v15, %s2636_s30 }
 0x642   : > { %v856_v42 = vpop.xlane.xlu1 %855 }
 0x643   : > { %2539 = vrcp.f32 %v856_v42 }
 0x646   : > { %v1123_v61 = vpop.permute.xlu1 %1122 }
 0x647   : > { %v1128_v0 = vsel %vm471_vm3, %v1123_v61, 0 }
 0x64a   : > { %v1121_v2 = vpop.permute.xlu1 %1120 }
 0x64d   : > { %v2540_v43 = vpop.eup %2539 }
 0x689   : > { %v901_v44 = vpop.f32.mrb[12].mxu0 }
 0x68a   : > { %v907_v45 = vmul.f32 %v2540_v43, %v901_v44  ;;  %v2318_v46 = vpop.f32.mrb[13].mxu0  ;;  %v1231_v43 = vld [vmem:[%s3112_s3 + $0x8] sm:$0x3] }
 0x68b   : > { %v904_v47 = vpop.f32.mrb[14].mxu0  ;;  %v1236_v44 = vsel %vm708_vm6, %v1231_v43, 0 }
 0x68c   : > { %v908_v48 = vpack.c.bf16 %v907_v45, %v907_v45  ;;  %v2319_v49 = vpop.f32.mrb[15].mxu0 }
 0x68e   : > { %2323 = vmatmul.mubr.msk.bf16.vlgmr.msra.gmra.mrb[20].mxu1 %vm471_vm3, %v908_v48 }
 0x68f   : > { %2334 = vmatprep.mubr.msk.bf16.mxu1 %vm2630_vm0, %v2629_v1 }
 0x691   : > { %v1001_v50 = vpop.f32.mrb[16].mxu0 }
 0x692   : > { %v2330_v51 = vpop.f32.mrb[17].mxu0  ;;  %v1007_v52 = vsel %vm518_vm5, %v1001_v50, -inf }
 0x693   : > { %1008 = vmax.xlane.f32.xlu0 %v1007_v52  ;;  %v1004_v53 = vpop.f32.mrb[18].mxu0 }
 0x694   : > { %v2331_v54 = vpop.f32.mrb[19].mxu0 }
 0x6a9   : > { %1018 = vrot.lane.b32.xlu0 %v2801_v31, %s2635_s15 }
 0x720   : > { %v1009_v55 = vpop.xlane.xlu0 %1008 }
 0x721   : > { %v1010_v56 = vsub.f32 %v1001_v50, %v1009_v55 }
 0x723   : > { %v1011_v57 = vmul.f32 1.442695, %v1010_v56 }
 0x724   : > { %v1019_v58 = vpop.permute.xlu0 %1018 }
 0x725   : > { %2541 = vpow2.f32 %v1011_v57  ;;  %v1024_v59 = vsel %vm533_vm4, %v1019_v58, 0 }
 0x726   : > { %2333 = vmatpush3.bf16.msra.mxu1 %v1024_v59 }
 0x727   : > { %2344 = vmatprep.subr.bf16.mxu1 %v2629_v1 }
 0x72f   : > { %v2542_v60 = vpop.eup %2541 }
 0x730   : > { %v1013_v62 = vsel %vm518_vm5, %v2542_v60, 0.0  ;;  %v1017_v63 = vpack.c.bf16 %v2542_v60, %v2542_v60 }
 0x731   : > { %1014 = vadd.xlane.f32.xlu0 %v1013_v62 }
 0x732   : > { %2335 = vmatmul.mubr.msk.bf16.vlgmr.msra.gmra.mrb[24].mxu1 %vm518_vm5, %v1017_v63 }
 0x733   : > { %2345 = vmatpush3.bf16.xpose.msra.mxu1 %v1128_v0  ;;  %2346 = vmatprep.mubr.msk.bf16.mxu1 %vm2630_vm0, %v2629_v1 }
 0x734   : > { %2356 = vmatprep.subr.bf16.mxu1 %v2629_v1 }
 0x73a   : > { %2347 = vmatmul.mubr.msk.bf16.vlgmr.msra.gmra.mrb[28].mxu1 %vm471_vm3, %v1121_v2 }
 0x73b   : > { %2358 = vmatprep.mubr.msk.bf16.mxu1 %vm2630_vm0, %v2629_v1  ;;  %2357 = vmatpush3.bf16.msra.mxu1 %v1236_v44  ;;  %v1553_v44 = vld [vmem:[%s3112_s3 + $0xc] sm:$0x3] }
 0x73c   : > { %2368 = vmatprep.subr.bf16.mxu1 %v2629_v1 }
 0x747   : > { %1181 = vrot.lane.b32.xlu0 %v2801_v31, %s2636_s30  ;;  %s2639_s30 = smov 100  }
 0x74b   : > { %1279 = vrot.lane.b32.xlu0 %v2778_v15, %s2637_s14 }
 0x761   : > { %v950_v3 = vpop.f32.mrb[20].mxu1 }
 0x762   : > { %v956_v4 = vadd.f32 %v950_v3, %v2847_v21  ;;  %v2324_v5 = vpop.f32.mrb[21].mxu1 }
 0x763   : > { %v953_v6 = vpop.f32.mrb[22].mxu1 }
 0x764   : > { %v2325_v7 = vpop.f32.mrb[23].mxu1 }
 0x7be   : > { %v1015_v11 = vpop.xlane.xlu0 %1014 }
 0x7bf   : > { %2543 = vrcp.f32 %v1015_v11  ;;  %v2513_v11 = vld [vmem:[%s3112_s3 + $0x8] ss:$0 sps:$4 sm:$0xcc]  }
 0x7c2   : > { %v1182_v17 = vpop.permute.xlu0 %1181 }
 0x7c3   : > { %v1187_v22 = vsel %vm533_vm4, %v1182_v17, 0 }
 0x7c6   : > { %v1280_v37 = vpop.permute.xlu0 %1279 }
 0x7c9   : > { %v2544_v12 = vpop.eup %2543 }
 0x805   : > { %v1060_v13 = vpop.f32.mrb[24].mxu1 }
 0x806   : > { %v1066_v14 = vmul.f32 %v2544_v12, %v1060_v13  ;;  %v2336_v16 = vpop.f32.mrb[25].mxu1  ;;  %v1394_v12 = vrot.slane %v2513_v11, 2 }
 0x807   : > { %v1063_v18 = vpop.f32.mrb[26].mxu1 }
 0x808   : > { %v1067_v20 = vpack.c.bf16 %v1066_v14, %v1066_v14  ;;  %v2337_v21 = vpop.f32.mrb[27].mxu1  ;;  %v1399_v13 = vsel %vm708_vm6, %v1394_v12, 0 }
 0x80a   : > { %2341 = vmatmul.mubr.msk.bf16.vlgmr.msra.gmra.mrb[20].mxu0 %vm471_vm3, %v1067_v20 }
 0x80b   : > { %2351 = vmatpush3.bf16.msra.mxu0 %v1187_v22  ;;  %2352 = vmatprep.mubr.msk.bf16.mxu0 %vm2630_vm0, %v2629_v1 }
 0x80c   : > { %2362 = vmatprep.subr.bf16.mxu0 %v2629_v1 }
 0x80d   : > { %v1164_v23 = vpop.f32.mrb[28].mxu1 }
 0x80e   : > { %v2348_v24 = vpop.f32.mrb[29].mxu1  ;;  %v1170_v25 = vsel %vm518_vm5, %v1164_v23, -inf }
 0x80f   : > { %1171 = vmax.xlane.f32.xlu1 %v1170_v25  ;;  %v1167_v26 = vpop.f32.mrb[30].mxu1 }
 0x810   : > { %v2349_v27 = vpop.f32.mrb[31].mxu1 }
 0x820   : > { %1281 = vrot.lane.b32.xlu1 %v2784_v19, %s2637_s14 }
 0x89c   : > { %v1172_v28 = vpop.xlane.xlu1 %1171 }
 0x89d   : > { %v1173_v29 = vsub.f32 %v1164_v23, %v1172_v28 }
 0x89f   : > { %v1174_v30 = vmul.f32 1.442695, %v1173_v29 }
 0x8a0   : > { %v1282_v33 = vpop.permute.xlu1 %1281 }
 0x8a1   : > { %2545 = vpow2.f32 %v1174_v30  ;;  %v1287_v36 = vsel %vm471_vm3, %v1282_v33, 0 }
 0x8ab   : > { %v2546_v32 = vpop.eup %2545 }
 0x8ac   : > { %v1176_v34 = vsel %vm518_vm5, %v2546_v32, 0.0  ;;  %v1180_v35 = vpack.c.bf16 %v2546_v32, %v2546_v32 }
 0x8ad   : > { %1177 = vadd.xlane.f32.xlu1 %v1176_v34 }
 0x8ae   : > { %2353 = vmatmul.mubr.msk.bf16.vlgmr.msra.gmra.mrb[24].mxu0 %vm518_vm5, %v1180_v35 }
 0x8af   : > { %2363 = vmatpush3.bf16.xpose.msra.mxu0 %v1287_v36  ;;  %2364 = vmatprep.mubr.msk.bf16.mxu0 %vm2630_vm0, %v2629_v1 }
 0x8b0   : > { %2374 = vmatprep.subr.bf16.mxu0 %v2629_v1 }
 0x8b6   : > { %2365 = vmatmul.mubr.msk.bf16.vlgmr.msra.gmra.mrb[28].mxu0 %vm471_vm3, %v1280_v37 }
 0x8b7   : > { %2376 = vmatprep.mubr.msk.bf16.mxu0 %vm2630_vm0, %v2629_v1  ;;  %2375 = vmatpush3.bf16.msra.mxu0 %v1399_v13 }
 0x8b8   : > { %2386 = vmatprep.subr.bf16.mxu0 %v2629_v1 }
 0x8be   : > { %1444 = vrot.lane.b32.xlu1 %v2784_v19, %s2638_s22 }
 0x8c2   : > { %1442 = vrot.lane.b32.xlu1 %v2778_v15, %s2638_s22 }
 0x8dd   : > { %v1113_v38 = vpop.f32.mrb[20].mxu0 }
 0x8de   : > { %v1119_v39 = vadd.f32 %v1113_v38, %v956_v4  ;;  %v2342_v40 = vpop.f32.mrb[21].mxu0 }
 0x8df   : > { %v1116_v41 = vpop.f32.mrb[22].mxu0 }
 0x8e0   : > { %v2343_v42 = vpop.f32.mrb[23].mxu0 }
 0x93a   : > { %v1178_v45 = vpop.xlane.xlu1 %1177 }
 0x93b   : > { %2547 = vrcp.f32 %v1178_v45  ;;  %v1558_v45 = vsel %vm708_vm6, %v1553_v44, 0 }
 0x93e   : > { %v1445_v0 = vpop.permute.xlu1 %1444 }
 0x93f   : > { %v1450_v4 = vsel %vm471_vm3, %v1445_v0, 0 }
 0x942   : > { %v1443_v5 = vpop.permute.xlu1 %1442 }
 0x945   : > { %v2548_v46 = vpop.eup %2547 }
 0x981   : > { %v1223_v47 = vpop.f32.mrb[24].mxu0 }
 0x982   : > { %v1229_v48 = vmul.f32 %v2548_v46, %v1223_v47  ;;  %v2354_v49 = vpop.f32.mrb[25].mxu0 }
 0x983   : > { %v1226_v50 = vpop.f32.mrb[26].mxu0 }
 0x984   : > { %v1230_v51 = vpack.c.bf16 %v1229_v48, %v1229_v48  ;;  %v2355_v52 = vpop.f32.mrb[27].mxu0 }
 0x986   : > { %2359 = vmatmul.mubr.msk.bf16.vlgmr.msra.gmra.mrb[32].mxu1 %vm471_vm3, %v1230_v51 }
 0x987   : > { %2370 = vmatprep.mubr.msk.bf16.mxu1 %vm2630_vm0, %v2629_v1 }
 0x989   : > { %v1323_v53 = vpop.f32.mrb[28].mxu0 }
 0x98a   : > { %v2366_v54 = vpop.f32.mrb[29].mxu0  ;;  %v1329_v55 = vsel %vm518_vm5, %v1323_v53, -inf }
 0x98b   : > { %1330 = vmax.xlane.f32.xlu0 %v1329_v55  ;;  %v1326_v56 = vpop.f32.mrb[30].mxu0 }
 0x98c   : > { %v2367_v57 = vpop.f32.mrb[31].mxu0 }
 0x9a1   : > { %1340 = vrot.lane.b32.xlu0 %v2801_v31, %s2637_s14 }
 0xa18   : > { %v1331_v58 = vpop.xlane.xlu0 %1330 }
 0xa19   : > { %v1332_v59 = vsub.f32 %v1323_v53, %v1331_v58 }
 0xa1b   : > { %v1333_v60 = vmul.f32 1.442695, %v1332_v59 }
 0xa1c   : > { %v1341_v61 = vpop.permute.xlu0 %1340 }
 0xa1d   : > { %2549 = vpow2.f32 %v1333_v60  ;;  %v1346_v62 = vsel %vm533_vm4, %v1341_v61, 0 }
 0xa1e   : > { %2369 = vmatpush3.bf16.msra.mxu1 %v1346_v62 }
 0xa1f   : > { %2380 = vmatprep.subr.bf16.mxu1 %v2629_v1 }
 0xa27   : > { %v2550_v63 = vpop.eup %2549 }
 0xa28   : > { %v1335_v2 = vsel %vm518_vm5, %v2550_v63, 0.0  ;;  %v1339_v3 = vpack.c.bf16 %v2550_v63, %v2550_v63 }
 0xa29   : > { %1336 = vadd.xlane.f32.xlu0 %v1335_v2 }
 0xa2a   : > { %2371 = vmatmul.mubr.msk.bf16.vlgmr.msra.gmra.mrb[36].mxu1 %vm518_vm5, %v1339_v3 }
 0xa2b   : > { %2381 = vmatpush3.bf16.xpose.msra.mxu1 %v1450_v4  ;;  %2382 = vmatprep.mubr.msk.bf16.mxu1 %vm2630_vm0, %v2629_v1 }
 0xa2c   : > { %2392 = vmatprep.subr.bf16.mxu1 %v2629_v1 }
 0xa32   : > { %2383 = vmatmul.mubr.msk.bf16.vlgmr.msra.gmra.mrb[40].mxu1 %vm471_vm3, %v1443_v5 }
 0xa33   : > { %2394 = vmatprep.mubr.msk.bf16.mxu1 %vm2630_vm0, %v2629_v1  ;;  %2393 = vmatpush3.bf16.msra.mxu1 %v1558_v45 }
 0xa34   : > { %2404 = vmatprep.subr.bf16.mxu1 %v2629_v1 }
 0xa3f   : > { %1503 = vrot.lane.b32.xlu0 %v2801_v31, %s2638_s22  ;;  %s2133_s22 = sshll.u32 %s375_s16, 3 }
 0xa40   : > { %s377_s12 = scalar_lea.vmem [#allocation5], %s2133_s22  ;;  %s2640_s22 = smov [#allocation5]  }
 0xa41   : > { %s2070_s13 = sshll.u32 %s377_s12, 4  ;;  %s2569_s25 = sshll.u32 %s2640_s22, 4  ;;  %s3068_s13 = int_to_ptr.vmem [resolvable:$true] %s2070_s13  ;;  %s2570_s25 = int_to_ptr.vmem [resolvable:$false] %s2569_s25 }
 0xa42   : > { %s2571_s29 = scalar_lea.vmem %s2570_s25, 256  ;;  %p2572_p0 = scmp.lt.s32.totalorder %s3068_s13, %s2570_s25 }
 0xa43   : > { %1601 = vrot.lane.b32.xlu0 %v2778_v15, %s2639_s30 }
 0xa59   : > { %v1272_v6 = vpop.f32.mrb[32].mxu1 }
 0xa5a   : > { %v1278_v7 = vadd.f32 %v1272_v6, %v1119_v39  ;;  %v2360_v8 = vpop.f32.mrb[33].mxu1 }
 0xa5b   : > { %v1275_v9 = vpop.f32.mrb[34].mxu1 }
 0xa5c   : > { %v2361_v10 = vpop.f32.mrb[35].mxu1 }
 0xab6   : > { %v1337_v14 = vpop.xlane.xlu0 %1336 }
 0xab7   : > { %2551 = vrcp.f32 %v1337_v14 }
 0xaba   : > { %v1504_v20 = vpop.permute.xlu0 %1503 }
 0xabb   : > { %v1509_v24 = vsel %vm533_vm4, %v1504_v20, 0  ;;  %v2515_v20 = vld [vmem:[%s3114_s5] sm:$0xff]  }
 0xac1   : > { %v2552_v16 = vpop.eup %2551 }
 0xafd   : > { %v1382_v17 = vpop.f32.mrb[36].mxu1 }
 0xafe   : > { %v1388_v15 = vmul.f32 %v2552_v16, %v1382_v17  ;;  %v2372_v18 = vpop.f32.mrb[37].mxu1 }
 0xaff   : > { %v1385_v21 = vpop.f32.mrb[38].mxu1 }
 0xb00   : > { %v1389_v22 = vpack.c.bf16 %v1388_v15, %v1388_v15  ;;  %v2373_v23 = vpop.f32.mrb[39].mxu1  ;;  %v2516_v21 = vld [vmem:[%s3114_s5 + $0x8] sm:$0xff]  }
 0xb02   : > { %2377 = vmatmul.mubr.msk.bf16.vlgmr.msra.gmra.mrb[32].mxu0 %vm471_vm3, %v1389_v22  ;;  %v2517_v22 = vld [vmem:[%s3116_s7] sm:$0xff]  }
 0xb03   : > { %2387 = vmatpush3.bf16.msra.mxu0 %v1509_v24  ;;  %2388 = vmatprep.mubr.msk.bf16.mxu0 %vm2630_vm0, %v2629_v1  ;;  %v2171_v24 = vld [vmem:[%s3113_s4] ss:$0 sm:$0xff] }
 0xb04   : > { %2398 = vmatprep.subr.bf16.mxu0 %v2629_v1 }
 0xb05   : > { %v1486_v25 = vpop.f32.mrb[40].mxu1 }
 0xb06   : > { %v2384_v26 = vpop.f32.mrb[41].mxu1  ;;  %v1492_v27 = vsel %vm518_vm5, %v1486_v25, -inf }
 0xb07   : > { %1493 = vmax.xlane.f32.xlu1 %v1492_v27  ;;  %v1489_v28 = vpop.f32.mrb[42].mxu1 }
 0xb08   : > { %v2385_v29 = vpop.f32.mrb[43].mxu1 }
 0xb18   : > { %1603 = vrot.lane.b32.xlu1 %v2784_v19, %s2639_s30  ;;  %v1602_v19 = vpop.permute.xlu0 %1601 }
 0xb94   : > { %v1494_v30 = vpop.xlane.xlu1 %1493 }
 0xb95   : > { %v1495_v32 = vsub.f32 %v1486_v25, %v1494_v30 }
 0xb97   : > { %v1496_v33 = vmul.f32 1.442695, %v1495_v32  ;;  %v2518_v32 = vld [vmem:[%s3116_s7 + $0x8] sm:$0xff]  }
 0xb98   : > { %v1604_v35 = vpop.permute.xlu1 %1603 }
 0xb99   : > { %2553 = vpow2.f32 %v1496_v33  ;;  %v1609_v38 = vsel %vm471_vm3, %v1604_v35, 0  ;;  %v2519_v33 = vld [vmem:[%s3116_s7 + $0x10] sm:$0xff]   ;;  %v2521_v35 = vld [vmem:[%s3116_s7 + $0x20] sm:$0xff]  }
 0xba3   : > { %v2554_v34 = vpop.eup %2553 }
 0xba4   : > { %v1498_v36 = vsel %vm518_vm5, %v2554_v34, 0.0  ;;  %v1502_v37 = vpack.c.bf16 %v2554_v34, %v2554_v34  ;;  %v2520_v34 = vld [vmem:[%s3116_s7 + $0x18] sm:$0xff]  }
 0xba5   : > { %1499 = vadd.xlane.f32.xlu1 %v1498_v36  ;;  %v2522_v36 = vld [vmem:[%s3116_s7 + $0x28] sm:$0xff]  }
 0xba6   : > { %2389 = vmatmul.mubr.msk.bf16.vlgmr.msra.gmra.mrb[36].mxu0 %vm518_vm5, %v1502_v37  ;;  %v2523_v37 = vld [vmem:[%s3116_s7 + $0x30] sm:$0xff]  }
 0xba7   : > { %2399 = vmatpush3.bf16.xpose.msra.mxu0 %v1609_v38  ;;  %2400 = vmatprep.mubr.msk.bf16.mxu0 %vm2630_vm0, %v2629_v1  ;;  %v2524_v38 = vld [vmem:[%s3116_s7 + $0x38] sm:$0xff]  }
 0xba8   : > { %2410 = vmatprep.subr.bf16.mxu0 %v2629_v1 }
 0xbae   : > { %2401 = vmatmul.mubr.msk.bf16.vlgmr.msra.gmra.mrb[40].mxu0 %vm471_vm3, %v1602_v19  ;;  %v2172_v19 = vld [vmem:[%s3115_s6] ss:$0 sm:$0xff] }
 0xbaf   : > { %2412 = vmatprep.mubr.msk.bf16.mxu0 %vm2630_vm0, %v2629_v1 }
 0xbd5   : > { %v1435_v39 = vpop.f32.mrb[32].mxu0 }
 0xbd6   : > { %v1441_v40 = vadd.f32 %v1435_v39, %v1278_v7  ;;  %v2378_v41 = vpop.f32.mrb[33].mxu0 }
 0xbd7   : > { %v1438_v42 = vpop.f32.mrb[34].mxu0 }
 0xbd8   : > { %v2379_v43 = vpop.f32.mrb[35].mxu0 }
 0xc32   : > { %v1500_v46 = vpop.xlane.xlu1 %1499 }
 0xc33   : > { %2555 = vrcp.f32 %v1500_v46 }
 0xc3d   : > { %v2556_v47 = vpop.eup %2555 }
 0xc79   : > { %v1545_v48 = vpop.f32.mrb[36].mxu0 }
 0xc7a   : > { %v1551_v49 = vmul.f32 %v2556_v47, %v1545_v48  ;;  %v2390_v50 = vpop.f32.mrb[37].mxu0 }
 0xc7b   : > { %v1548_v51 = vpop.f32.mrb[38].mxu0 }
 0xc7c   : > { %v1552_v52 = vpack.c.bf16 %v1551_v49, %v1551_v49  ;;  %v2391_v53 = vpop.f32.mrb[39].mxu0 }
 0xc7e   : > { %2395 = vmatmul.mubr.msk.bf16.vlgmr.msra.gmra.mrb[44].mxu1 %vm471_vm3, %v1552_v52 }
 0xc7f   : > { %2406 = vmatprep.mubr.msk.bf16.mxu1 %vm2630_vm0, %v2629_v1 }
 0xc81   : > { %v1645_v54 = vpop.f32.mrb[40].mxu0 }
 0xc82   : > { %v2402_v55 = vpop.f32.mrb[41].mxu0  ;;  %v1651_v56 = vsel %vm518_vm5, %v1645_v54, -inf }
 0xc83   : > { %1652 = vmax.xlane.f32.xlu0 %v1651_v56  ;;  %v1648_v57 = vpop.f32.mrb[42].mxu0  ;;  %v2526_v55 = vld [vmem:[%s3118_s9 + $0x8] sm:$0xff]   ;;  %v2527_v56 = vld [vmem:[%s3118_s9 + $0x10] sm:$0xff]  }
 0xc84   : > { %v2403_v58 = vpop.f32.mrb[43].mxu0  ;;  %v2528_v57 = vld [vmem:[%s3118_s9 + $0x18] sm:$0xff]  }
 0xc85   : > { %v2176_v58 = vld [vmem:[%s3117_s8] ss:$0 sm:$0xff] }
 0xc99   : > { %1662 = vrot.lane.b32.xlu0 %v2801_v31, %s2639_s30  ;;  %v2514_v31 = vld [vmem:[%s3112_s3 + $0xc] ss:$0 sps:$4 sm:$0xcc]   ;;  %s2192_s30 = sshll.u32 %s2722_s21, 7  ;;  %s2057_s21 = scalar_lea.sflag [#allocation6], %s375_s16 }
 0xc9a   : > { %v1716_v4 = vrot.slane %v2514_v31, 2  ;;  %s3066_s0 = scalar_lea.hbm %s3120_s11, %s2192_s30 }
 0xc9c   : > { %v1721_v5 = vsel %vm708_vm6, %v1716_v4, 0 }
 0xc9d   : > { %2411 = vmatpush3.bf16.msra.mxu0 %v1721_v5 }
 0xc9e   : > { %2424 = vmatprep.subr.bf16.mxu0 %v2629_v1 }
 0xd10   : > { %v1653_v59 = vpop.xlane.xlu0 %1652 }
 0xd11   : > { %v1654_v60 = vsub.f32 %v1645_v54, %v1653_v59  ;;  %v2525_v54 = vld [vmem:[%s3118_s9] sm:$0xff]  }
 0xd13   : > { %v1655_v61 = vmul.f32 1.442695, %v1654_v60 }
 0xd14   : > { %v1663_v62 = vpop.permute.xlu0 %1662 }
 0xd15   : > { %2557 = vpow2.f32 %v1655_v61  ;;  %v1668_v63 = vsel %vm533_vm4, %v1663_v62, 0 }
 0xd16   : > { %2405 = vmatpush3.bf16.msra.mxu1 %v1668_v63 }
 0xd17   : > { %2416 = vmatprep.subr.bf16.mxu1 %v2629_v1 }
 0xd1f   : > { %v2558_v0 = vpop.eup %2557 }
 0xd20   : > { %v1657_v2 = vsel %vm518_vm5, %v2558_v0, 0.0  ;;  %v1661_v3 = vpack.c.bf16 %v2558_v0, %v2558_v0 }
 0xd21   : > { %1658 = vadd.xlane.f32.xlu1 %v1657_v2 }
 0xd22   : > { %2407 = vmatmul.mubr.msk.bf16.vlgmr.msra.gmra.mrb[48].mxu1 %vm518_vm5, %v1661_v3 }
 0xd23   : > { %2420 = vmatprep.mubr.msk.bf16.mxu1 %vm2630_vm0, %v2629_v1  ;;  %2417 = vmatpush3.bf16.msra.mxu1 %v2515_v20 }
 0xd24   : > { %2418 = vmatprep.subr.bf16.mxu1 %v2629_v1 }
 0xd27   : > { %2419 = vmatpush3.bf16.msra.mxu1 %v2516_v21 }
 0xd28   : > { %2444 = vmatprep.subr.bf16.mxu1 %v2629_v1 }
 0xd51   : > { %v1594_v6 = vpop.f32.mrb[44].mxu1 }
 0xd52   : > { %v1600_v7 = vadd.f32 %v1594_v6, %v1441_v40  ;;  %v2396_v8 = vpop.f32.mrb[45].mxu1 }
 0xd53   : > { %v1597_v9 = vpop.f32.mrb[46].mxu1 }
 0xd54   : > { %v2397_v10 = vpop.f32.mrb[47].mxu1  ;;  %v2185_v9 = vld [vmem:[%s3119_s10] ss:$0 sm:$0xff] }
 0xdae   : > { %v1659_v11 = vpop.xlane.xlu1 %1658 }
 0xdaf   : > { %2559 = vrcp.f32 %v1659_v11  ;;  %v2053_v11 = vld [vmem:[%s2767_s24] sm:$0xff]  ;;  %s2565_s24 = scalar_lea.vmem %s3068_s13, 128 }
 0xdb0   : > { %p2566_p11 = scmp.ne.s32.totalorder %s3068_s13, %s2565_s24  ;;  %p2573_p1 = scmp.lt.s32.totalorder %s2571_s29, %s2565_s24 }
 0xdb2   : > { %p2567_p12 = pnand %p2566_p11, %p2739_p5  ;;  %p2574_p2 = por %p2573_p1, %p2572_p0 }
 0xdb4   : > { %p2568_p13 = pneg %p2567_p12 }
 0xdb6   : > { %p2575_p3 = pnand %p2574_p2, %p2568_p13 }
 0xdb9   : > { %v2560_v12 = vpop.eup %2559 }
 0xdf5   : > { %v1704_v13 = vpop.f32.mrb[48].mxu1 }
 0xdf6   : > { %v1710_v14 = vmul.f32 %v2560_v12, %v1704_v13  ;;  %v2408_v16 = vpop.f32.mrb[49].mxu1 }
 0xdf7   : > { %v1707_v17 = vpop.f32.mrb[50].mxu1 }
 0xdf8   : > { %v1711_v15 = vpack.c.bf16 %v1710_v14, %v1710_v14  ;;  %v2409_v18 = vpop.f32.mrb[51].mxu1 }
 0xdfa   : > { %2413 = vmatmul.mubr.msk.bf16.vlgmr.msra.gmra.mrb[44].mxu0 %vm471_vm3, %v1711_v15 }
 0xdfb   : > { %2440 = vmatprep.mubr.msk.bf16.mxu0 %vm2630_vm0, %v2629_v1  ;;  %2425 = vmatpush3.bf16.msra.mxu0 %v2517_v22 }
 0xdfc   : > { %2426 = vmatprep.subr.bf16.mxu0 %v2629_v1 }
 0xdff   : > { %2427 = vmatpush3.bf16.msra.mxu0 %v2518_v32 }
 0xe00   : > { %2428 = vmatprep.subr.bf16.mxu0 %v2629_v1 }
 0xe03   : > { %2429 = vmatpush3.bf16.msra.mxu0 %v2519_v33 }
 0xe04   : > { %2430 = vmatprep.subr.bf16.mxu0 %v2629_v1 }
 0xe07   : > { %2431 = vmatpush3.bf16.msra.mxu0 %v2520_v34 }
 0xe08   : > { %2432 = vmatprep.subr.bf16.mxu0 %v2629_v1 }
 0xe0b   : > { %2433 = vmatpush3.bf16.msra.mxu0 %v2521_v35 }
 0xe0c   : > { %2434 = vmatprep.subr.bf16.mxu0 %v2629_v1 }
 0xe0f   : > { %2435 = vmatpush3.bf16.msra.mxu0 %v2522_v36 }
 0xe10   : > { %2436 = vmatprep.subr.bf16.mxu0 %v2629_v1 }
 0xe13   : > { %2437 = vmatpush3.bf16.msra.mxu0 %v2523_v37 }
 0xe14   : > { %2438 = vmatprep.subr.bf16.mxu0 %v2629_v1 }
 0xe17   : > { %2439 = vmatpush3.bf16.msra.mxu0 %v2524_v38 }
 0xecd   : > { %v1757_v23 = vpop.f32.mrb[44].mxu0 }
 0xece   : > { %v1763_v25 = vadd.f32 %v1757_v23, %v1600_v7  ;;  %v2414_v26 = vpop.f32.mrb[45].mxu0 }
 0xecf   : > { %v1760_v27 = vpop.f32.mrb[46].mxu0 }
 0xed0   : > { %v1771_v28 = vadd.f32 %v2171_v24, %v1763_v25  ;;  %v2415_v29 = vpop.f32.mrb[47].mxu0 }
 0xed2   : > { %v1772_v30 = vpack.c.bf16 %v1771_v28, %v1771_v28 }
 0xed4   : > { %2421 = vmatmul.mubr.msk.bf16.vlgmr.msra.gmra.mrb[52].mxu1 %vm408_vm1, %v1772_v30 }
 0xed5   : > { %2452 = vmatprep.mubr.msk.bf16.mxu1 %vm2630_vm0, %v2629_v1  ;;  %2445 = vmatpush3.bf16.msra.mxu1 %v2525_v54 }
 0xed6   : > { %2446 = vmatprep.subr.bf16.mxu1 %v2629_v1 }
 0xed9   : > { %2447 = vmatpush3.bf16.msra.mxu1 %v2526_v55 }
 0xeda   : > { %2448 = vmatprep.subr.bf16.mxu1 %v2629_v1 }
 0xedd   : > { %2449 = vmatpush3.bf16.msra.mxu1 %v2527_v56 }
 0xede   : > { %2450 = vmatprep.subr.bf16.mxu1 %v2629_v1 }
 0xee1   : > { %2451 = vmatpush3.bf16.msra.mxu1 %v2528_v57 }
 0xfa7   : > { %v1833_v39 = vpop.f32.mrb[52].mxu1 }
 0xfa8   : > { %v1834_v40 = vadd.f32 %v2172_v19, %v1833_v39  ;;  %v2422_v41 = vpop.f32.mrb[53].mxu1 }
 0xfa9   : > { %v1836_v42 = vpop.f32.mrb[54].mxu1 }
 0xfaa   : > { %v1840_v43 = vmul.f32 %v1834_v40, %v1834_v40  ;;  %v2423_v44 = vpop.f32.mrb[55].mxu1  ;;  %v1839_v50 = vmul.f32 0.5, %v1834_v40 }
 0xfac   : > { %v1841_v45 = vmul.f32 %v1840_v43, %v1834_v40 }
 0xfae   : > { %v1842_v46 = vmul.f32 0.044715, %v1841_v45 }
 0xfb0   : > { %v1843_v47 = vadd.f32 %v1842_v46, %v1834_v40 }
 0xfb2   : > { %v1844_v48 = vmul.f32 0.7978846, %v1843_v47 }
 0xfb4   : > { %2561 = vtanh.f32 %v1844_v48 }
 0xfbe   : > { %v2562_v49 = vpop.eup %2561 }
 0xfbf   : > { %v1846_v51 = vadd.f32 1.0, %v2562_v49 }
 0xfc1   : > { %v1847_v52 = vmul.f32 %v1846_v51, %v1839_v50 }
 0xfc3   : > { %v1848_v53 = vpack.c.bf16 %v1847_v52, %v1847_v52 }
 0xfc5   : > { %2441 = vmatmul.mubr.bf16.vlgmr.msra.gmra.mrb[48].mxu0 %v1848_v53 }
0x1098   : > { %v1954_v59 = vpop.f32.mrb[48].mxu0 }
0x1099   : > { %v1955_v60 = vadd.f32 %v2176_v58, %v1954_v59  ;;  %v2442_v61 = vpop.f32.mrb[49].mxu0 }
0x109a   : > { %v1957_v62 = vpop.f32.mrb[50].mxu0 }
0x109b   : > { %v1961_v63 = vmul.f32 %v1955_v60, %v1955_v60  ;;  %v2443_v0 = vpop.f32.mrb[51].mxu0  ;;  %v1960_v5 = vmul.f32 0.5, %v1955_v60 }
0x109d   : > { %v1962_v2 = vmul.f32 %v1961_v63, %v1955_v60 }
0x109f   : > { %v1963_v3 = vmul.f32 0.044715, %v1962_v2 }
0x10a1   : > { %v1964_v1 = vadd.f32 %v1963_v3, %v1955_v60 }
0x10a3   : > { %v1965_v31 = vmul.f32 0.7978846, %v1964_v1 }
0x10a5   : > { %2563 = vtanh.f32 %v1965_v31 }
0x10af   : > { %v2564_v4 = vpop.eup %2563 }
0x10b0   : > { %v1967_v6 = vadd.f32 1.0, %v2564_v4 }
0x10b2   : > { %v1968_v7 = vmul.f32 %v1967_v6, %v1960_v5 }
0x10b4   : > { %v1969_v8 = vpack.c.bf16 %v1968_v7, %v1968_v7 }
0x10b6   : > { %2453 = vmatmul.mubr.msk.bf16.vlgmr.msra.gmra.mrb[56].mxu1 %vm2009_vm7, %v1969_v8 }
0x1189   : > { %v2047_v10 = vpop.f32.mrb[56].mxu1 }
0x118a   : > { %v2048_v12 = vadd.f32 %v2185_v9, %v2047_v10  ;;  %v2454_v13 = vpop.f32.mrb[57].mxu1 }
0x118b   : > { %v2050_v14 = vpop.f32.mrb[58].mxu1 }
0x118c   : > { %v2054_v16 = vadd.f32 %v2053_v11, %v2048_v12  ;;  %v2455_v17 = vpop.f32.mrb[59].mxu1 }
0x118e   : > { %2055 = vst.msk [vmem:[%s377_s12] sm:$0xff] %vm408_vm1, %v2054_v16 }
0x118f   : > { %2578 = shalt.err (!%p2575_p3)
}
0x1190   : > { %s2579_s16 = scalar_lea.hbm %s3066_s0, 128  ;;  %s2583_s14 = scalar_lea.hbm %s3120_s11, 256 }
0x1191   : > { %p2580_p4 = scmp.ne.s32.totalorder %s3066_s0, %s2579_s16  ;;  %p2584_p9 = scmp.lt.u32.totalorder %s3066_s0, %s3120_s11 }
0x1192   : > { %p2585_p10 = scmp.lt.u32.totalorder %s2583_s14, %s2579_s16  ;;  %p2587_p12 = scmp.lt.u32.totalorder %s2579_s16, %s3066_s0 }
0x1193   : > { %p2581_p7 = pnand %p2580_p4, %p2739_p5 }
0x1194   : > { %p2586_p11 = por %p2585_p10, %p2584_p9 }
0x1195   : > { %p2582_p8 = pneg %p2581_p7 }
0x1196   : > { %p2588_p13 = por %p2587_p12, %p2586_p11 }
0x1198   : > { %p2589_p0 = pnand %p2588_p13, %p2582_p8 }
0x119a   : > { %2592 = shalt.err (!%p2589_p0)
}
0x119b   : > { %2456 = dma.vmem_to_hbm [thread:$0]  (%p2739_p5), %s3068_s13, 128, %s3066_s0, %s2057_s21  }
0x119c PF: > { %p2462_p1 = scmp.ge.s32.totalorder %s2627_s20, 2  ;;  %s2082_s24 = sand.u32 1, %s2615_s17  }
0x119d   : > { %s2083_s25 = scalar_lea.sflag [#allocation6], %s2082_s24 }
0x119e   : > { %p2459_p2 = pnand %p2462_p1, %p2743_p6 }
0x11a0   : > { %2610 = dma.done.wait (!%p2459_p2), %s2083_s25, 128  }
0x11a1   : > { %2612 = vsyncadd (!%p2459_p2), %s2083_s25, 4294967168  ;;  %p21_p3 = scmp.ge.s32.totalorder %s2726_s23, 4   ;;  %s3125_s17 = smov %s2619_s18 }
0x11a2   : > { %s3126_s18 = smov %s2623_s19  ;;  %s3127_s19 = smov %s2737_s26 }
0x11a3   : > { %s3128_s20 = smov %s2726_s23  ;;  %23 = sbr.rel (!%p21_p3) target bundleno = 5 (0x5), region = 99 }
0x11aa   :  { %2088 = vsyncpa [#allocation6], 1 }
0x11ab   :  { %2090 = vsyncpa [#allocation6 + $0x1], 1 }

</bundles_post_ra>
